<compile_context>
chip_gen: v7x
topology: tpu7x:2x2x1
jax: 0.10.0
libtpu: 0.0.40
codegen_flags: <defaults>
</compile_context>

<pallas_src>
import functools

import jax
import jax.numpy as jnp
from jax.experimental import pallas as pl
from jax.experimental.pallas import tpu as pltpu

LANE = 128  # TPU lane width; feature AND node dims are padded to this.


# ----------------------------------------------------------------------------
# Fused Pallas kernel: whole APPNP_Model forward for the (small) graph
# ----------------------------------------------------------------------------
def _fused_appnp_kernel(*refs, K, alpha, num_layers, out_dim):
    """refs = (a_hat, x, w_1, b_1, ..., w_L, b_L, wc, bc, out)

      a_hat : (Np, Np)    (1-alpha) * gcn_norm adjacency, node axis padded,
                          padded rows/cols are exactly zero
      x     : (Np, LANE)  node features, both axes zero-padded
      w_l   : (LANE, LANE) Linear weight, pre-transposed + zero-padded
      b_l   : (1, LANE)    Linear bias, zero-padded
      wc    : (LANE, LANE) Conv1d(k=1) head weight (pre-transposed, padded)
      bc    : (1, LANE)    head bias (padded)
      out   : (Np, LANE)   log-softmax output; only [:N, :out_dim] is meaningful
    """
    a_ref, x_ref = refs[0], refs[1]
    o_ref = refs[-1]
    layer_refs = refs[2:2 + 2 * num_layers]
    wc_ref = refs[2 + 2 * num_layers]
    bc_ref = refs[3 + 2 * num_layers]

    a_hat = a_ref[...]          # already scaled by (1 - alpha)
    z = x_ref[...]

    for li in range(num_layers):
        w = layer_refs[2 * li][...]
        b = layer_refs[2 * li + 1][...]
        # Linear fused into the same kernel (no HBM round-trip for h).
        h = jnp.dot(z, w, preferred_element_type=jnp.float32) + b
        ah = alpha * h          # hoisted out of the K-loop (one vmul / layer)

        # APPNP: z_{k+1} = A_hat @ z_k + alpha*h,  z_0 = h.
        def body(_, zk, ah=ah):
            return jnp.dot(a_hat, zk, preferred_element_type=jnp.float32) + ah

        z = jax.lax.fori_loop(0, K, body, h, unroll=True)

        # forward() applies ReLU after each block only when layer > 1.
        if num_layers >= 2:
            z = jnp.maximum(z, 0.0)

    # Conv1d(filter_num, out_dim, kernel_size=1) == per-node linear.
    logits = jnp.dot(z, wc_ref[...], preferred_element_type=jnp.float32) + bc_ref[...]

    # log_softmax over the REAL class columns only (padded lanes masked out).
    # Kept in f32: the -1e30 sentinel would overflow bf16.
    cols = jax.lax.broadcasted_iota(jnp.int32, logits.shape, dimension=1)
    valid = cols < out_dim
    logits = jnp.where(valid, logits, jnp.float32(-1e30))
    m = jnp.max(logits, axis=-1, keepdims=True)
    ex = jnp.where(valid, jnp.exp(logits - m), 0.0)
    lse = jnp.log(jnp.sum(ex, axis=-1, keepdims=True))
    o_ref[...] = (logits - m - lse).astype(o_ref.dtype)


# ----------------------------------------------------------------------------
# Glue: gcn_norm (dense form) in plain JAX -- matches PyG's APPNP normalization
# ----------------------------------------------------------------------------
def gcn_norm_dense(edge_index, edge_weight, num_nodes):
    """Dense A such that propagate(x) == A @ x (self-loops, symmetric norm)."""
    src = edge_index[0]
    dst = edge_index[1]
    if edge_weight is None:
        edge_weight = jnp.ones(src.shape[0], dtype=jnp.float32)
    loop = jnp.arange(num_nodes, dtype=src.dtype)
    src = jnp.concatenate([src, loop])
    dst = jnp.concatenate([dst, loop])
    w = jnp.concatenate([edge_weight, jnp.ones(num_nodes, dtype=jnp.float32)])
    deg = jnp.zeros((num_nodes,), jnp.float32).at[dst].add(w)
    dinv = jnp.where(deg > 0, jax.lax.rsqrt(deg), 0.0)
    norm = dinv[src] * w * dinv[dst]
    A = jnp.zeros((num_nodes, num_nodes), jnp.float32).at[dst, src].add(norm)
    return A  # out[i] = sum_j A[i, j] * x[j]


def _pad2(m, rows, cols):
    m = jnp.asarray(m, jnp.float32)
    return jnp.pad(m, ((0, rows - m.shape[0]), (0, cols - m.shape[1])))


def _round_up(n, mult):
    return ((n + mult - 1) // mult) * mult


# ----------------------------------------------------------------------------
# One-time preparation (cached across forward calls): graph normalization,
# (1-alpha) pre-scaling, padding, weight pre-transposition.
# ----------------------------------------------------------------------------
def prepare_appnp(params, edge_index, num_nodes, *, alpha=0.1, layer=3):
    Np = _round_up(num_nodes, LANE)
    A = gcn_norm_dense(edge_index, None, num_nodes)
    # Fold (1 - alpha) into A once; padded rows/cols remain exactly zero so
    # padded (bias-only) rows of h cannot leak into real rows through A@z.
    A_hat = _pad2((1.0 - float(alpha)) * A, Np, Np)

    Ws, bs = [], []
    for li in range(layer):
        Ws.append(_pad2(params["W"][li].T, LANE, LANE))
        bs.append(_pad2(params["b"][li][None, :], 1, LANE))
    Wc = _pad2(params["Wc"].T, LANE, LANE)
    bc = _pad2(params["bc"][None, :], 1, LANE)

    return dict(A_hat=A_hat, Ws=Ws, bs=bs, Wc=Wc, bc=bc,
                Np=Np, num_nodes=num_nodes, out_dim=int(params["Wc"].shape[0]),
                alpha=float(alpha), layer=int(layer))


# ----------------------------------------------------------------------------
# Build a jitted forward closure over the prepared (cached) operands.
# ----------------------------------------------------------------------------
def make_appnp_forward(prepared, *, K=10):
    Np = prepared["Np"]
    N = prepared["num_nodes"]
    out_dim = prepared["out_dim"]
    layer = prepared["layer"]
    alpha = prepared["alpha"]

    in_specs = [
        pl.BlockSpec((Np, Np), lambda i: (0, 0)),      # A_hat
        pl.BlockSpec((Np, LANE), lambda i: (0, 0)),    # x
    ]
    for _ in range(layer):
        in_specs.append(pl.BlockSpec((LANE, LANE), lambda i: (0, 0)))  # W_l
        in_specs.append(pl.BlockSpec((1, LANE), lambda i: (0, 0)))     # b_l
    in_specs.append(pl.BlockSpec((LANE, LANE), lambda i: (0, 0)))      # Wc
    in_specs.append(pl.BlockSpec((1, LANE), lambda i: (0, 0)))         # bc

    # Advisory cost hint for XLA's scheduler around the custom call.
    mm_flops = 2 * Np * LANE * LANE          # (Np,LANE) @ (LANE,LANE)
    prop_flops = 2 * Np * Np * LANE          # (Np,Np)   @ (Np,LANE)
    flops = layer * (mm_flops + K * prop_flops) + mm_flops
    transcendentals = Np * LANE + Np         # exp + log in log_softmax
    bytes_accessed = 4 * (Np * Np + Np * LANE
                          + layer * (LANE * LANE + LANE)
                          + LANE * LANE + LANE
                          + Np * LANE)
    cost = pl.CostEstimate(flops=flops, transcendentals=transcendentals,
                           bytes_accessed=bytes_accessed)

    kern = functools.partial(_fused_appnp_kernel, K=K, alpha=alpha,
                             num_layers=layer, out_dim=out_dim)
    call = pl.pallas_call(
        kern,
        out_shape=jax.ShapeDtypeStruct((Np, LANE), jnp.float32),
        grid=(1,),
        in_specs=in_specs,
        out_specs=pl.BlockSpec((Np, LANE), lambda i: (0, 0)),
        cost_estimate=cost,
        compiler_params=pltpu.CompilerParams(
            dimension_semantics=("arbitrary",)),
    )

    weight_args = []
    for li in range(layer):
        weight_args.append(prepared["Ws"][li])
        weight_args.append(prepared["bs"][li])
    weight_args.append(prepared["Wc"])
    weight_args.append(prepared["bc"])

    @jax.jit
    def forward(x):
        xp = _pad2(x, Np, LANE)
        out = call(prepared["A_hat"], xp, *weight_args)
        return out[:N, :out_dim]

    return forward
    # TODO(synk): dropout is skipped (module constructed with dropout=False).


# ----------------------------------------------------------------------------
# Pure-JAX reference (mirrors the PyTorch forward semantics)
# ----------------------------------------------------------------------------
def appnp_model_reference(params, x, edge_index, *, K=10, alpha=0.1, layer=3):
    N = x.shape[0]
    A = gcn_norm_dense(edge_index, None, N)
    z = x
    for li in range(layer):
        h = z @ params["W"][li].T + params["b"][li]
        z = h
        for _ in range(K):
            z = (1.0 - alpha) * (A @ z) + alpha * h
        if layer >= 2:
            z = jnp.maximum(z, 0.0)
    logits = z @ params["Wc"].T + params["bc"]
    return jax.nn.log_softmax(logits, axis=1)


# ----------------------------------------------------------------------------
# Main
# ----------------------------------------------------------------------------
if __name__ == "__main__":
    N = 32            # number of graph nodes
    input_dim = 16
    filter_num = 16
    out_dim = 4
    layer = 3         # module default
    E = 64            # number of edges

    key = jax.random.PRNGKey(0)
    keys = jax.random.split(key, 12)

    x = jax.random.normal(keys[0], (N, input_dim), jnp.float32)
    edge_index = jnp.stack([
        jax.random.randint(keys[1], (E,), 0, N),
        jax.random.randint(keys[2], (E,), 0, N),
    ])

    params = {
        "W": [0.2 * jax.random.normal(keys[3], (filter_num, input_dim), jnp.float32),
              0.2 * jax.random.normal(keys[4], (filter_num, filter_num), jnp.float32),
              0.2 * jax.random.normal(keys[5], (filter_num, filter_num), jnp.float32)],
        "b": [0.1 * jax.random.normal(keys[6], (filter_num,), jnp.float32),
              0.1 * jax.random.normal(keys[7], (filter_num,), jnp.float32),
              0.1 * jax.random.normal(keys[8], (filter_num,), jnp.float32)],
        # Conv1d(filter_num, out_dim, kernel_size=1): weight (out_dim, filter_num, 1) -> 2D
        "Wc": 0.2 * jax.random.normal(keys[9], (out_dim, filter_num), jnp.float32),
        "bc": 0.1 * jax.random.normal(keys[10], (out_dim,), jnp.float32),
    }

    # One-time graph/weight preparation (cached), then a jitted fused forward.
    prepared = prepare_appnp(params, edge_index, N, alpha=0.1, layer=layer)
    forward = make_appnp_forward(prepared, K=10)

    out = jax.block_until_ready(forward(x))

    ref = appnp_model_reference(params, x, edge_index, K=10, alpha=0.1, layer=layer)
    assert out.shape == (N, out_dim)
    assert jnp.allclose(out, ref, rtol=1e-3, atol=1e-3), "mismatch vs reference"

    print("KERNEL_OK")
</pallas_src>

<mosaic_0001>
module attributes {stable_mosaic.version = 11 : i64} {
  func.func @_fused_appnp_kernel(%arg0: i32, %arg1: memref<128x128xf32, #tpu.memory_space<vmem>>, %arg2: memref<128x128xf32, #tpu.memory_space<vmem>>, %arg3: memref<128x128xf32, #tpu.memory_space<vmem>>, %arg4: memref<1x128xf32, #tpu.memory_space<vmem>>, %arg5: memref<128x128xf32, #tpu.memory_space<vmem>>, %arg6: memref<1x128xf32, #tpu.memory_space<vmem>>, %arg7: memref<128x128xf32, #tpu.memory_space<vmem>>, %arg8: memref<1x128xf32, #tpu.memory_space<vmem>>, %arg9: memref<128x128xf32, #tpu.memory_space<vmem>>, %arg10: memref<1x128xf32, #tpu.memory_space<vmem>>, %arg11: memref<128x128xf32, #tpu.memory_space<vmem>>) attributes {dimension_semantics = [#tpu.dimension_semantics<arbitrary>], iteration_bounds = array<i64: 1>, scalar_prefetch = 0 : i64, scratch_operands = 0 : i64, tpu.core_type = #tpu.core_type<tc>, window_params = [{pipeline_mode = #tpu.pipeline_mode<synchronous>, transform_indices = @transform_0, window_bounds = array<i64: 128, 128>}, {pipeline_mode = #tpu.pipeline_mode<synchronous>, transform_indices = @transform_1, window_bounds = array<i64: 128, 128>}, {pipeline_mode = #tpu.pipeline_mode<synchronous>, transform_indices = @transform_2, window_bounds = array<i64: 128, 128>}, {pipeline_mode = #tpu.pipeline_mode<synchronous>, transform_indices = @transform_3, window_bounds = array<i64: 1, 128>}, {pipeline_mode = #tpu.pipeline_mode<synchronous>, transform_indices = @transform_4, window_bounds = array<i64: 128, 128>}, {pipeline_mode = #tpu.pipeline_mode<synchronous>, transform_indices = @transform_5, window_bounds = array<i64: 1, 128>}, {pipeline_mode = #tpu.pipeline_mode<synchronous>, transform_indices = @transform_6, window_bounds = array<i64: 128, 128>}, {pipeline_mode = #tpu.pipeline_mode<synchronous>, transform_indices = @transform_7, window_bounds = array<i64: 1, 128>}, {pipeline_mode = #tpu.pipeline_mode<synchronous>, transform_indices = @transform_8, window_bounds = array<i64: 128, 128>}, {pipeline_mode = #tpu.pipeline_mode<synchronous>, transform_indices = @transform_9, window_bounds = array<i64: 1, 128>}, {pipeline_mode = #tpu.pipeline_mode<synchronous>, transform_indices = @transform_10, window_bounds = array<i64: 128, 128>}]} {
    %c0 = arith.constant 0 : index
    %c0_0 = arith.constant 0 : index
    %0 = vector.load %arg1[%c0, %c0_0] : memref<128x128xf32, #tpu.memory_space<vmem>>, vector<128x128xf32>
    %c0_1 = arith.constant 0 : index
    %c0_2 = arith.constant 0 : index
    %1 = vector.load %arg2[%c0_1, %c0_2] : memref<128x128xf32, #tpu.memory_space<vmem>>, vector<128x128xf32>
    %c0_3 = arith.constant 0 : index
    %c0_4 = arith.constant 0 : index
    %2 = vector.load %arg3[%c0_3, %c0_4] : memref<128x128xf32, #tpu.memory_space<vmem>>, vector<128x128xf32>
    %c0_5 = arith.constant 0 : index
    %c0_6 = arith.constant 0 : index
    %3 = vector.load %arg4[%c0_5, %c0_6] : memref<1x128xf32, #tpu.memory_space<vmem>>, vector<1x128xf32>
    %cst = arith.constant dense<0.000000e+00> : vector<128x128xf32>
    %4 = tpu.matmul %1, %2, %cst {dimension_numbers = #tpu.dot_dimension_numbers<[1], [0], [0], [1], [0, 0, 1, 1], [], []>} : vector<128x128xf32>, vector<128x128xf32>, vector<128x128xf32> -> vector<128x128xf32>
    %5 = vector.broadcast %3 : vector<1x128xf32> to vector<128x128xf32>
    %6 = arith.addf %4, %5 : vector<128x128xf32>
    %cst_7 = arith.constant 1.000000e-01 : f32
    %7 = vector.broadcast %cst_7 : f32 to vector<128x128xf32>
    %8 = arith.mulf %7, %6 : vector<128x128xf32>
    %c0_i32 = arith.constant 0 : i32
    %cst_8 = arith.constant dense<0.000000e+00> : vector<128x128xf32>
    %9 = tpu.matmul %0, %6, %cst_8 {dimension_numbers = #tpu.dot_dimension_numbers<[1], [0], [0], [1], [0, 0, 1, 1], [], []>} : vector<128x128xf32>, vector<128x128xf32>, vector<128x128xf32> -> vector<128x128xf32>
    %10 = arith.addf %9, %8 : vector<128x128xf32>
    %c1_i32 = arith.constant 1 : i32
    %cst_9 = arith.constant dense<0.000000e+00> : vector<128x128xf32>
    %11 = tpu.matmul %0, %10, %cst_9 {dimension_numbers = #tpu.dot_dimension_numbers<[1], [0], [0], [1], [0, 0, 1, 1], [], []>} : vector<128x128xf32>, vector<128x128xf32>, vector<128x128xf32> -> vector<128x128xf32>
    %12 = arith.addf %11, %8 : vector<128x128xf32>
    %c2_i32 = arith.constant 2 : i32
    %cst_10 = arith.constant dense<0.000000e+00> : vector<128x128xf32>
    %13 = tpu.matmul %0, %12, %cst_10 {dimension_numbers = #tpu.dot_dimension_numbers<[1], [0], [0], [1], [0, 0, 1, 1], [], []>} : vector<128x128xf32>, vector<128x128xf32>, vector<128x128xf32> -> vector<128x128xf32>
    %14 = arith.addf %13, %8 : vector<128x128xf32>
    %c3_i32 = arith.constant 3 : i32
    %cst_11 = arith.constant dense<0.000000e+00> : vector<128x128xf32>
    %15 = tpu.matmul %0, %14, %cst_11 {dimension_numbers = #tpu.dot_dimension_numbers<[1], [0], [0], [1], [0, 0, 1, 1], [], []>} : vector<128x128xf32>, vector<128x128xf32>, vector<128x128xf32> -> vector<128x128xf32>
    %16 = arith.addf %15, %8 : vector<128x128xf32>
    %c4_i32 = arith.constant 4 : i32
    %cst_12 = arith.constant dense<0.000000e+00> : vector<128x128xf32>
    %17 = tpu.matmul %0, %16, %cst_12 {dimension_numbers = #tpu.dot_dimension_numbers<[1], [0], [0], [1], [0, 0, 1, 1], [], []>} : vector<128x128xf32>, vector<128x128xf32>, vector<128x128xf32> -> vector<128x128xf32>
    %18 = arith.addf %17, %8 : vector<128x128xf32>
    %c5_i32 = arith.constant 5 : i32
    %cst_13 = arith.constant dense<0.000000e+00> : vector<128x128xf32>
    %19 = tpu.matmul %0, %18, %cst_13 {dimension_numbers = #tpu.dot_dimension_numbers<[1], [0], [0], [1], [0, 0, 1, 1], [], []>} : vector<128x128xf32>, vector<128x128xf32>, vector<128x128xf32> -> vector<128x128xf32>
    %20 = arith.addf %19, %8 : vector<128x128xf32>
    %c6_i32 = arith.constant 6 : i32
    %cst_14 = arith.constant dense<0.000000e+00> : vector<128x128xf32>
    %21 = tpu.matmul %0, %20, %cst_14 {dimension_numbers = #tpu.dot_dimension_numbers<[1], [0], [0], [1], [0, 0, 1, 1], [], []>} : vector<128x128xf32>, vector<128x128xf32>, vector<128x128xf32> -> vector<128x128xf32>
    %22 = arith.addf %21, %8 : vector<128x128xf32>
    %c7_i32 = arith.constant 7 : i32
    %cst_15 = arith.constant dense<0.000000e+00> : vector<128x128xf32>
    %23 = tpu.matmul %0, %22, %cst_15 {dimension_numbers = #tpu.dot_dimension_numbers<[1], [0], [0], [1], [0, 0, 1, 1], [], []>} : vector<128x128xf32>, vector<128x128xf32>, vector<128x128xf32> -> vector<128x128xf32>
    %24 = arith.addf %23, %8 : vector<128x128xf32>
    %c8_i32 = arith.constant 8 : i32
    %cst_16 = arith.constant dense<0.000000e+00> : vector<128x128xf32>
    %25 = tpu.matmul %0, %24, %cst_16 {dimension_numbers = #tpu.dot_dimension_numbers<[1], [0], [0], [1], [0, 0, 1, 1], [], []>} : vector<128x128xf32>, vector<128x128xf32>, vector<128x128xf32> -> vector<128x128xf32>
    %26 = arith.addf %25, %8 : vector<128x128xf32>
    %c9_i32 = arith.constant 9 : i32
    %cst_17 = arith.constant dense<0.000000e+00> : vector<128x128xf32>
    %27 = tpu.matmul %0, %26, %cst_17 {dimension_numbers = #tpu.dot_dimension_numbers<[1], [0], [0], [1], [0, 0, 1, 1], [], []>} : vector<128x128xf32>, vector<128x128xf32>, vector<128x128xf32> -> vector<128x128xf32>
    %28 = arith.addf %27, %8 : vector<128x128xf32>
    %cst_18 = arith.constant 0.000000e+00 : f32
    %29 = vector.broadcast %cst_18 : f32 to vector<128x128xf32>
    %30 = arith.maximumf %28, %29 : vector<128x128xf32>
    %c0_19 = arith.constant 0 : index
    %c0_20 = arith.constant 0 : index
    %31 = vector.load %arg5[%c0_19, %c0_20] : memref<128x128xf32, #tpu.memory_space<vmem>>, vector<128x128xf32>
    %c0_21 = arith.constant 0 : index
    %c0_22 = arith.constant 0 : index
    %32 = vector.load %arg6[%c0_21, %c0_22] : memref<1x128xf32, #tpu.memory_space<vmem>>, vector<1x128xf32>
    %cst_23 = arith.constant dense<0.000000e+00> : vector<128x128xf32>
    %33 = tpu.matmul %30, %31, %cst_23 {dimension_numbers = #tpu.dot_dimension_numbers<[1], [0], [0], [1], [0, 0, 1, 1], [], []>} : vector<128x128xf32>, vector<128x128xf32>, vector<128x128xf32> -> vector<128x128xf32>
    %34 = vector.broadcast %32 : vector<1x128xf32> to vector<128x128xf32>
    %35 = arith.addf %33, %34 : vector<128x128xf32>
    %cst_24 = arith.constant 1.000000e-01 : f32
    %36 = vector.broadcast %cst_24 : f32 to vector<128x128xf32>
    %37 = arith.mulf %36, %35 : vector<128x128xf32>
    %c0_i32_25 = arith.constant 0 : i32
    %cst_26 = arith.constant dense<0.000000e+00> : vector<128x128xf32>
    %38 = tpu.matmul %0, %35, %cst_26 {dimension_numbers = #tpu.dot_dimension_numbers<[1], [0], [0], [1], [0, 0, 1, 1], [], []>} : vector<128x128xf32>, vector<128x128xf32>, vector<128x128xf32> -> vector<128x128xf32>
    %39 = arith.addf %38, %37 : vector<128x128xf32>
    %c1_i32_27 = arith.constant 1 : i32
    %cst_28 = arith.constant dense<0.000000e+00> : vector<128x128xf32>
    %40 = tpu.matmul %0, %39, %cst_28 {dimension_numbers = #tpu.dot_dimension_numbers<[1], [0], [0], [1], [0, 0, 1, 1], [], []>} : vector<128x128xf32>, vector<128x128xf32>, vector<128x128xf32> -> vector<128x128xf32>
    %41 = arith.addf %40, %37 : vector<128x128xf32>
    %c2_i32_29 = arith.constant 2 : i32
    %cst_30 = arith.constant dense<0.000000e+00> : vector<128x128xf32>
    %42 = tpu.matmul %0, %41, %cst_30 {dimension_numbers = #tpu.dot_dimension_numbers<[1], [0], [0], [1], [0, 0, 1, 1], [], []>} : vector<128x128xf32>, vector<128x128xf32>, vector<128x128xf32> -> vector<128x128xf32>
    %43 = arith.addf %42, %37 : vector<128x128xf32>
    %c3_i32_31 = arith.constant 3 : i32
    %cst_32 = arith.constant dense<0.000000e+00> : vector<128x128xf32>
    %44 = tpu.matmul %0, %43, %cst_32 {dimension_numbers = #tpu.dot_dimension_numbers<[1], [0], [0], [1], [0, 0, 1, 1], [], []>} : vector<128x128xf32>, vector<128x128xf32>, vector<128x128xf32> -> vector<128x128xf32>
    %45 = arith.addf %44, %37 : vector<128x128xf32>
    %c4_i32_33 = arith.constant 4 : i32
    %cst_34 = arith.constant dense<0.000000e+00> : vector<128x128xf32>
    %46 = tpu.matmul %0, %45, %cst_34 {dimension_numbers = #tpu.dot_dimension_numbers<[1], [0], [0], [1], [0, 0, 1, 1], [], []>} : vector<128x128xf32>, vector<128x128xf32>, vector<128x128xf32> -> vector<128x128xf32>
    %47 = arith.addf %46, %37 : vector<128x128xf32>
    %c5_i32_35 = arith.constant 5 : i32
    %cst_36 = arith.constant dense<0.000000e+00> : vector<128x128xf32>
    %48 = tpu.matmul %0, %47, %cst_36 {dimension_numbers = #tpu.dot_dimension_numbers<[1], [0], [0], [1], [0, 0, 1, 1], [], []>} : vector<128x128xf32>, vector<128x128xf32>, vector<128x128xf32> -> vector<128x128xf32>
    %49 = arith.addf %48, %37 : vector<128x128xf32>
    %c6_i32_37 = arith.constant 6 : i32
    %cst_38 = arith.constant dense<0.000000e+00> : vector<128x128xf32>
    %50 = tpu.matmul %0, %49, %cst_38 {dimension_numbers = #tpu.dot_dimension_numbers<[1], [0], [0], [1], [0, 0, 1, 1], [], []>} : vector<128x128xf32>, vector<128x128xf32>, vector<128x128xf32> -> vector<128x128xf32>
    %51 = arith.addf %50, %37 : vector<128x128xf32>
    %c7_i32_39 = arith.constant 7 : i32
    %cst_40 = arith.constant dense<0.000000e+00> : vector<128x128xf32>
    %52 = tpu.matmul %0, %51, %cst_40 {dimension_numbers = #tpu.dot_dimension_numbers<[1], [0], [0], [1], [0, 0, 1, 1], [], []>} : vector<128x128xf32>, vector<128x128xf32>, vector<128x128xf32> -> vector<128x128xf32>
    %53 = arith.addf %52, %37 : vector<128x128xf32>
    %c8_i32_41 = arith.constant 8 : i32
    %cst_42 = arith.constant dense<0.000000e+00> : vector<128x128xf32>
    %54 = tpu.matmul %0, %53, %cst_42 {dimension_numbers = #tpu.dot_dimension_numbers<[1], [0], [0], [1], [0, 0, 1, 1], [], []>} : vector<128x128xf32>, vector<128x128xf32>, vector<128x128xf32> -> vector<128x128xf32>
    %55 = arith.addf %54, %37 : vector<128x128xf32>
    %c9_i32_43 = arith.constant 9 : i32
    %cst_44 = arith.constant dense<0.000000e+00> : vector<128x128xf32>
    %56 = tpu.matmul %0, %55, %cst_44 {dimension_numbers = #tpu.dot_dimension_numbers<[1], [0], [0], [1], [0, 0, 1, 1], [], []>} : vector<128x128xf32>, vector<128x128xf32>, vector<128x128xf32> -> vector<128x128xf32>
    %57 = arith.addf %56, %37 : vector<128x128xf32>
    %cst_45 = arith.constant 0.000000e+00 : f32
    %58 = vector.broadcast %cst_45 : f32 to vector<128x128xf32>
    %59 = arith.maximumf %57, %58 : vector<128x128xf32>
    %c0_46 = arith.constant 0 : index
    %c0_47 = arith.constant 0 : index
    %60 = vector.load %arg7[%c0_46, %c0_47] : memref<128x128xf32, #tpu.memory_space<vmem>>, vector<128x128xf32>
    %c0_48 = arith.constant 0 : index
    %c0_49 = arith.constant 0 : index
    %61 = vector.load %arg8[%c0_48, %c0_49] : memref<1x128xf32, #tpu.memory_space<vmem>>, vector<1x128xf32>
    %cst_50 = arith.constant dense<0.000000e+00> : vector<128x128xf32>
    %62 = tpu.matmul %59, %60, %cst_50 {dimension_numbers = #tpu.dot_dimension_numbers<[1], [0], [0], [1], [0, 0, 1, 1], [], []>} : vector<128x128xf32>, vector<128x128xf32>, vector<128x128xf32> -> vector<128x128xf32>
    %63 = vector.broadcast %61 : vector<1x128xf32> to vector<128x128xf32>
    %64 = arith.addf %62, %63 : vector<128x128xf32>
    %cst_51 = arith.constant 1.000000e-01 : f32
    %65 = vector.broadcast %cst_51 : f32 to vector<128x128xf32>
    %66 = arith.mulf %65, %64 : vector<128x128xf32>
    %c0_i32_52 = arith.constant 0 : i32
    %cst_53 = arith.constant dense<0.000000e+00> : vector<128x128xf32>
    %67 = tpu.matmul %0, %64, %cst_53 {dimension_numbers = #tpu.dot_dimension_numbers<[1], [0], [0], [1], [0, 0, 1, 1], [], []>} : vector<128x128xf32>, vector<128x128xf32>, vector<128x128xf32> -> vector<128x128xf32>
    %68 = arith.addf %67, %66 : vector<128x128xf32>
    %c1_i32_54 = arith.constant 1 : i32
    %cst_55 = arith.constant dense<0.000000e+00> : vector<128x128xf32>
    %69 = tpu.matmul %0, %68, %cst_55 {dimension_numbers = #tpu.dot_dimension_numbers<[1], [0], [0], [1], [0, 0, 1, 1], [], []>} : vector<128x128xf32>, vector<128x128xf32>, vector<128x128xf32> -> vector<128x128xf32>
    %70 = arith.addf %69, %66 : vector<128x128xf32>
    %c2_i32_56 = arith.constant 2 : i32
    %cst_57 = arith.constant dense<0.000000e+00> : vector<128x128xf32>
    %71 = tpu.matmul %0, %70, %cst_57 {dimension_numbers = #tpu.dot_dimension_numbers<[1], [0], [0], [1], [0, 0, 1, 1], [], []>} : vector<128x128xf32>, vector<128x128xf32>, vector<128x128xf32> -> vector<128x128xf32>
    %72 = arith.addf %71, %66 : vector<128x128xf32>
    %c3_i32_58 = arith.constant 3 : i32
    %cst_59 = arith.constant dense<0.000000e+00> : vector<128x128xf32>
    %73 = tpu.matmul %0, %72, %cst_59 {dimension_numbers = #tpu.dot_dimension_numbers<[1], [0], [0], [1], [0, 0, 1, 1], [], []>} : vector<128x128xf32>, vector<128x128xf32>, vector<128x128xf32> -> vector<128x128xf32>
    %74 = arith.addf %73, %66 : vector<128x128xf32>
    %c4_i32_60 = arith.constant 4 : i32
    %cst_61 = arith.constant dense<0.000000e+00> : vector<128x128xf32>
    %75 = tpu.matmul %0, %74, %cst_61 {dimension_numbers = #tpu.dot_dimension_numbers<[1], [0], [0], [1], [0, 0, 1, 1], [], []>} : vector<128x128xf32>, vector<128x128xf32>, vector<128x128xf32> -> vector<128x128xf32>
    %76 = arith.addf %75, %66 : vector<128x128xf32>
    %c5_i32_62 = arith.constant 5 : i32
    %cst_63 = arith.constant dense<0.000000e+00> : vector<128x128xf32>
    %77 = tpu.matmul %0, %76, %cst_63 {dimension_numbers = #tpu.dot_dimension_numbers<[1], [0], [0], [1], [0, 0, 1, 1], [], []>} : vector<128x128xf32>, vector<128x128xf32>, vector<128x128xf32> -> vector<128x128xf32>
    %78 = arith.addf %77, %66 : vector<128x128xf32>
    %c6_i32_64 = arith.constant 6 : i32
    %cst_65 = arith.constant dense<0.000000e+00> : vector<128x128xf32>
    %79 = tpu.matmul %0, %78, %cst_65 {dimension_numbers = #tpu.dot_dimension_numbers<[1], [0], [0], [1], [0, 0, 1, 1], [], []>} : vector<128x128xf32>, vector<128x128xf32>, vector<128x128xf32> -> vector<128x128xf32>
    %80 = arith.addf %79, %66 : vector<128x128xf32>
    %c7_i32_66 = arith.constant 7 : i32
    %cst_67 = arith.constant dense<0.000000e+00> : vector<128x128xf32>
    %81 = tpu.matmul %0, %80, %cst_67 {dimension_numbers = #tpu.dot_dimension_numbers<[1], [0], [0], [1], [0, 0, 1, 1], [], []>} : vector<128x128xf32>, vector<128x128xf32>, vector<128x128xf32> -> vector<128x128xf32>
    %82 = arith.addf %81, %66 : vector<128x128xf32>
    %c8_i32_68 = arith.constant 8 : i32
    %cst_69 = arith.constant dense<0.000000e+00> : vector<128x128xf32>
    %83 = tpu.matmul %0, %82, %cst_69 {dimension_numbers = #tpu.dot_dimension_numbers<[1], [0], [0], [1], [0, 0, 1, 1], [], []>} : vector<128x128xf32>, vector<128x128xf32>, vector<128x128xf32> -> vector<128x128xf32>
    %84 = arith.addf %83, %66 : vector<128x128xf32>
    %c9_i32_70 = arith.constant 9 : i32
    %cst_71 = arith.constant dense<0.000000e+00> : vector<128x128xf32>
    %85 = tpu.matmul %0, %84, %cst_71 {dimension_numbers = #tpu.dot_dimension_numbers<[1], [0], [0], [1], [0, 0, 1, 1], [], []>} : vector<128x128xf32>, vector<128x128xf32>, vector<128x128xf32> -> vector<128x128xf32>
    %86 = arith.addf %85, %66 : vector<128x128xf32>
    %cst_72 = arith.constant 0.000000e+00 : f32
    %87 = vector.broadcast %cst_72 : f32 to vector<128x128xf32>
    %88 = arith.maximumf %86, %87 : vector<128x128xf32>
    %c0_73 = arith.constant 0 : index
    %c0_74 = arith.constant 0 : index
    %89 = vector.load %arg9[%c0_73, %c0_74] : memref<128x128xf32, #tpu.memory_space<vmem>>, vector<128x128xf32>
    %cst_75 = arith.constant dense<0.000000e+00> : vector<128x128xf32>
    %90 = tpu.matmul %88, %89, %cst_75 {dimension_numbers = #tpu.dot_dimension_numbers<[1], [0], [0], [1], [0, 0, 1, 1], [], []>} : vector<128x128xf32>, vector<128x128xf32>, vector<128x128xf32> -> vector<128x128xf32>
    %c0_76 = arith.constant 0 : index
    %c0_77 = arith.constant 0 : index
    %91 = vector.load %arg10[%c0_76, %c0_77] : memref<1x128xf32, #tpu.memory_space<vmem>>, vector<1x128xf32>
    %92 = vector.broadcast %91 : vector<1x128xf32> to vector<128x128xf32>
    %93 = arith.addf %90, %92 : vector<128x128xf32>
    %94 = tpu.iota {dimensions = array<i32: 1>} : vector<128x128xi32>
    %c4_i32_78 = arith.constant 4 : i32
    %95 = vector.broadcast %c4_i32_78 : i32 to vector<128x128xi32>
    %96 = arith.cmpi slt, %94, %95 : vector<128x128xi32>
    %cst_79 = arith.constant -1.000000e+30 : f32
    %97 = vector.broadcast %cst_79 : f32 to vector<128x128xf32>
    %98 = arith.select %96, %93, %97 : vector<128x128xi1>, vector<128x128xf32>
    %cst_80 = arith.constant dense<0xFF800000> : vector<128xf32>
    %99 = vector.multi_reduction <maximumf>, %98, %cst_80 [1] : vector<128x128xf32> to vector<128xf32>
    %100 = vector.shape_cast %99 : vector<128xf32> to vector<128x1xf32>
    %101 = vector.broadcast %100 : vector<128x1xf32> to vector<128x128xf32>
    %102 = arith.subf %98, %101 : vector<128x128xf32>
    %103 = math.exp %102 : vector<128x128xf32>
    %cst_81 = arith.constant 0.000000e+00 : f32
    %104 = vector.broadcast %cst_81 : f32 to vector<128x128xf32>
    %105 = arith.select %96, %103, %104 : vector<128x128xi1>, vector<128x128xf32>
    %cst_82 = arith.constant dense<0.000000e+00> : vector<128xf32>
    %106 = vector.multi_reduction <add>, %105, %cst_82 [1] : vector<128x128xf32> to vector<128xf32>
    %107 = vector.shape_cast %106 : vector<128xf32> to vector<128x1xf32>
    %108 = math.log %107 : vector<128x1xf32>
    %109 = vector.broadcast %100 : vector<128x1xf32> to vector<128x128xf32>
    %110 = arith.subf %98, %109 : vector<128x128xf32>
    %111 = vector.broadcast %108 : vector<128x1xf32> to vector<128x128xf32>
    %112 = arith.subf %110, %111 : vector<128x128xf32>
    %c0_83 = arith.constant 0 : index
    %c0_84 = arith.constant 0 : index
    %113 = vector.load %arg11[%c0_83, %c0_84] : memref<128x128xf32, #tpu.memory_space<vmem>>, vector<128x128xf32>
    tpu.vector_store %arg11[%c0_83, %c0_84], %112 {strides = array<i32>} : memref<128x128xf32, #tpu.memory_space<vmem>>, vector<128x128xf32>,
    return
  }
  func.func @transform_0(%arg0: i32) -> (i32, i32) {
    %c0_i32 = arith.constant 0 : i32
    %c0_i32_0 = arith.constant 0 : i32
    %c0_i32_1 = arith.constant 0 : i32
    return %c0_i32, %c0_i32_0 : i32, i32
  }
  func.func @transform_1(%arg0: i32) -> (i32, i32) {
    %c0_i32 = arith.constant 0 : i32
    %c0_i32_0 = arith.constant 0 : i32
    %c0_i32_1 = arith.constant 0 : i32
    return %c0_i32, %c0_i32_0 : i32, i32
  }
  func.func @transform_2(%arg0: i32) -> (i32, i32) {
    %c0_i32 = arith.constant 0 : i32
    %c0_i32_0 = arith.constant 0 : i32
    %c0_i32_1 = arith.constant 0 : i32
    return %c0_i32, %c0_i32_0 : i32, i32
  }
  func.func @transform_3(%arg0: i32) -> (i32, i32) {
    %c0_i32 = arith.constant 0 : i32
    %c0_i32_0 = arith.constant 0 : i32
    %c0_i32_1 = arith.constant 0 : i32
    return %c0_i32, %c0_i32_0 : i32, i32
  }
  func.func @transform_4(%arg0: i32) -> (i32, i32) {
    %c0_i32 = arith.constant 0 : i32
    %c0_i32_0 = arith.constant 0 : i32
    %c0_i32_1 = arith.constant 0 : i32
    return %c0_i32, %c0_i32_0 : i32, i32
  }
  func.func @transform_5(%arg0: i32) -> (i32, i32) {
    %c0_i32 = arith.constant 0 : i32
    %c0_i32_0 = arith.constant 0 : i32
    %c0_i32_1 = arith.constant 0 : i32
    return %c0_i32, %c0_i32_0 : i32, i32
  }
  func.func @transform_6(%arg0: i32) -> (i32, i32) {
    %c0_i32 = arith.constant 0 : i32
    %c0_i32_0 = arith.constant 0 : i32
    %c0_i32_1 = arith.constant 0 : i32
    return %c0_i32, %c0_i32_0 : i32, i32
  }
  func.func @transform_7(%arg0: i32) -> (i32, i32) {
    %c0_i32 = arith.constant 0 : i32
    %c0_i32_0 = arith.constant 0 : i32
    %c0_i32_1 = arith.constant 0 : i32
    return %c0_i32, %c0_i32_0 : i32, i32
  }
  func.func @transform_8(%arg0: i32) -> (i32, i32) {
    %c0_i32 = arith.constant 0 : i32
    %c0_i32_0 = arith.constant 0 : i32
    %c0_i32_1 = arith.constant 0 : i32
    return %c0_i32, %c0_i32_0 : i32, i32
  }
  func.func @transform_9(%arg0: i32) -> (i32, i32) {
    %c0_i32 = arith.constant 0 : i32
    %c0_i32_0 = arith.constant 0 : i32
    %c0_i32_1 = arith.constant 0 : i32
    return %c0_i32, %c0_i32_0 : i32, i32
  }
  func.func @transform_10(%arg0: i32) -> (i32, i32) {
    %c0_i32 = arith.constant 0 : i32
    %c0_i32_0 = arith.constant 0 : i32
    %c0_i32_1 = arith.constant 0 : i32
    return %c0_i32, %c0_i32_0 : i32, i32
  }
}

</mosaic_0001>

<bundles_post_ra>
// kernel: forward.1
= control target key start
LH: loop header
LB: loop body
LE: loop exit
PB: predicated region body
PF: predicated region fallthrough
CT: control target
= control target key end

     0   :  { %15 = vsyncpa [#allocation3], 0  ;;  %s11628_s0 = inlined_call_operand.hbm [shape: f32[128,128], index: 0, kind: input, shape index: {}]   ;;  %s11629_s1 = inlined_call_operand.vmem [shape: f32[128,128], index: 1, kind: input, shape index: {}]   ;;  %s11630_s2 = inlined_call_operand.hbm [shape: f32[128,128], index: 2, kind: input, shape index: {}]   ;;  %s11631_s3 = inlined_call_operand.vmem [shape: f32[1,128], index: 3, kind: input, shape index: {}]   ;;  %s11632_s4 = inlined_call_operand.hbm [shape: f32[128,128], index: 4, kind: input, shape index: {}]   ;;  %s11633_s5 = inlined_call_operand.vmem [shape: f32[1,128], index: 5, kind: input, shape index: {}]   ;;  %s11634_s6 = inlined_call_operand.hbm [shape: f32[128,128], index: 6, kind: input, shape index: {}]   ;;  %s11635_s7 = inlined_call_operand.vmem [shape: f32[1,128], index: 7, kind: input, shape index: {}]   ;;  %s11636_s8 = inlined_call_operand.vmem [shape: f32[128,128], index: 8, kind: input, shape index: {}]   ;;  %s11637_s9 = inlined_call_operand.vmem [shape: f32[1,128], index: 9, kind: input, shape index: {}]   ;;  %s11638_s10 = inlined_call_operand.vmem [shape: f32[128,128], index: 10, kind: output, shape index: {}]  }
   0x1   :  { %16 = vsyncpa [#allocation5], 0 }
   0x2   :  { %17 = vsyncpa [#allocation8], 0  ;;  %s9770_s13 = smov [#allocation4]   ;;  %s9771_s15 = smov [#allocation2]  }
   0x3   :  { %s37_s14 = sshll.u32 %s9770_s13, 4  ;;  %s23_s16 = sshll.u32 %s9771_s15, 4  ;;  %s38_s14 = int_to_ptr.vmem [resolvable:$true] %s37_s14  ;;  %s9831_s16 = int_to_ptr.vmem [resolvable:$true] %s23_s16 }
   0x4   :  { %s9676_s19 = scalar_lea.hbm %s11630_s2, 2048 }
   0x5   :  { %p9677_p0 = scmp.ne.s32.totalorder %s11630_s2, %s9676_s19  ;;  %p9680_p1 = scmp.lt.u32.totalorder %s9676_s19, %s11630_s2 }
   0x7   :  { %p9682_p2 = pnand %p9680_p1, %p9677_p0 }
   0x9   :  { %9685 = shalt.err (!%p9682_p2)
}
   0xa   :  { %s9686_s24 = scalar_lea.vmem %s38_s14, 2048  ;;  %p9691_p4 = scmp.lt.s32.totalorder %s38_s14, %s38_s14 }
   0xb   :  { %p9687_p3 = scmp.ne.s32.totalorder %s38_s14, %s9686_s24  ;;  %p9692_p5 = scmp.lt.s32.totalorder %s9686_s24, %s9686_s24 }
   0xd   :  { %p9693_p6 = por %p9692_p5, %p9691_p4 }
   0xf   :  { %p9694_p7 = pnand %p9693_p6, %p9687_p3 }
  0x11   :  { %9697 = shalt.err (!%p9694_p7)
}
  0x12   :  { %s9772_s25 = smov 128   ;;  %s9773_s26 = smov 8  }
  0x13   :  { %43 = dma.hbm_to_vmem [thread:$0]  %s11630_s2, 2048, %s38_s14, [#allocation5], %s9772_s25, %s9772_s25, %s9773_s26  }
  0x14   :  { %s9698_s11 = scalar_lea.hbm %s11628_s0, 2048 }
  0x15   :  { %p9699_p8 = scmp.ne.s32.totalorder %s11628_s0, %s9698_s11  ;;  %p9702_p9 = scmp.lt.u32.totalorder %s9698_s11, %s11628_s0 }
  0x17   :  { %p9704_p10 = pnand %p9702_p9, %p9699_p8 }
  0x19   :  { %9707 = shalt.err (!%p9704_p10)
}
  0x1a   :  { %s9708_s18 = scalar_lea.vmem %s9831_s16, 2048  ;;  %p9713_p12 = scmp.lt.s32.totalorder %s9831_s16, %s9831_s16 }
  0x1b   :  { %p9709_p11 = scmp.ne.s32.totalorder %s9831_s16, %s9708_s18  ;;  %p9714_p13 = scmp.lt.s32.totalorder %s9708_s18, %s9708_s18 }
  0x1d   :  { %p9715_p0 = por %p9714_p13, %p9713_p12 }
  0x1f   :  { %p9716_p1 = pnand %p9715_p0, %p9709_p11 }
  0x21   :  { %9719 = shalt.err (!%p9716_p1)
}
  0x22   :  { %29 = dma.hbm_to_vmem [thread:$0]  %s11628_s0, 2048, %s9831_s16, [#allocation3], %s9772_s25, %s9772_s25, %s9773_s26  }
  0x23   :  { %s9774_s19 = smov [#allocation6]   ;;  %s9775_s21 = smov [#allocation7]  }
  0x24   :  { %s51_s20 = sshll.u32 %s9774_s19, 4  ;;  %s65_s22 = sshll.u32 %s9775_s21, 4  ;;  %s52_s20 = int_to_ptr.vmem [resolvable:$true] %s51_s20  ;;  %s9868_s22 = int_to_ptr.vmem [resolvable:$true] %s65_s22 }
  0x25   :  { %s9720_s27 = scalar_lea.hbm %s11632_s4, 2048 }
  0x26   :  { %p9721_p2 = scmp.ne.s32.totalorder %s11632_s4, %s9720_s27  ;;  %p9724_p3 = scmp.lt.u32.totalorder %s9720_s27, %s11632_s4 }
  0x28   :  { %p9726_p4 = pnand %p9724_p3, %p9721_p2 }
  0x2a   :  { %9729 = shalt.err (!%p9726_p4)
}
  0x2b   :  { %s9730_s0 = scalar_lea.vmem %s52_s20, 2048  ;;  %p9735_p6 = scmp.lt.s32.totalorder %s52_s20, %s52_s20 }
  0x2c   :  { %p9731_p5 = scmp.ne.s32.totalorder %s52_s20, %s9730_s0  ;;  %p9736_p7 = scmp.lt.s32.totalorder %s9730_s0, %s9730_s0 }
  0x2e   :  { %p9737_p8 = por %p9736_p7, %p9735_p6 }
  0x30   :  { %p9738_p9 = pnand %p9737_p8, %p9731_p5 }
  0x32   :  { %9741 = shalt.err (!%p9738_p9)
}
  0x33   :  { %57 = dma.hbm_to_vmem [thread:$0]  %s11632_s4, 2048, %s52_s20, [#allocation5], %s9772_s25, %s9772_s25, %s9773_s26  }
  0x34   :  { %s9742_s17 = scalar_lea.hbm %s11634_s6, 2048 }
  0x35   :  { %p9743_p10 = scmp.ne.s32.totalorder %s11634_s6, %s9742_s17  ;;  %p9746_p11 = scmp.lt.u32.totalorder %s9742_s17, %s11634_s6 }
  0x37   :  { %p9748_p12 = pnand %p9746_p11, %p9743_p10 }
  0x39   :  { %9751 = shalt.err (!%p9748_p12)
}
  0x3a   :  { %s9752_s21 = scalar_lea.vmem %s9868_s22, 2048  ;;  %p9757_p0 = scmp.lt.s32.totalorder %s9868_s22, %s9868_s22 }
  0x3b   :  { %p9753_p13 = scmp.ne.s32.totalorder %s9868_s22, %s9752_s21  ;;  %p9758_p1 = scmp.lt.s32.totalorder %s9752_s21, %s9752_s21 }
  0x3d   :  { %p9759_p2 = por %p9758_p1, %p9757_p0 }
  0x3f   :  { %p9760_p3 = pnand %p9759_p2, %p9753_p13 }
  0x41   :  { %9763 = shalt.err (!%p9760_p3)
}
  0x42   :  { %71 = dma.hbm_to_vmem [thread:$0]  %s11634_s6, 2048, %s9868_s22, [#allocation8], %s9772_s25, %s9772_s25, %s9773_s26  }
  0x43   :  { %9764 = dma.done.wait [#allocation3], 2048  }
  0x44   :  { %9765 = vsyncadd [#allocation3], 4294965248 }
  0x45   :  { %9766 = dma.done.wait [#allocation5], 4096  }
  0x46   :  { %9767 = vsyncadd [#allocation5], 4294963200 }
  0x47   :  { %9768 = dma.done.wait [#allocation8], 2048  }
  0x48   :  { %9769 = vsyncadd [#allocation8], 4294965248  ;;  %v122_v0 = vld [vmem:[#allocation4] sm:$0xff]  ;;  %v123_v1 = vld [vmem:[#allocation4 + $0x8] sm:$0xff] }
  0x49   :  { %v124_v2 = vld [vmem:[#allocation4 + $0x10] sm:$0xff]  ;;  %v8454_v3 = vpack.c.bf16 %v123_v1, %v122_v0  ;;  %v125_v4 = vld [vmem:[#allocation4 + $0x18] sm:$0xff]  ;;  %v126_v6 = vld [vmem:[#allocation4 + $0x20] sm:$0xff] }
  0x4a   :  { %v8458_v5 = vpack.c.bf16 %v125_v4, %v124_v2  ;;  %v127_v7 = vld [vmem:[#allocation4 + $0x28] sm:$0xff]  ;;  %v106_v9 = vld [vmem:[%s11629_s1] sm:$0xff]  ;;  %v128_v10 = vld [vmem:[#allocation4 + $0x30] sm:$0xff] }
  0x4b   :  { %8455 = vmatprep.subr.bf16.mxu0 %v8454_v3  ;;  %v8462_v8 = vpack.c.bf16 %v127_v7, %v126_v6  ;;  %v129_v11 = vld [vmem:[#allocation4 + $0x38] sm:$0xff]  ;;  %6582 = vmatprep.mubr.f32.mxu0 %v106_v9  ;;  %v130_v13 = vld [vmem:[#allocation4 + $0x40] sm:$0xff]  ;;  %v131_v14 = vld [vmem:[#allocation4 + $0x48] sm:$0xff] }
  0x4c   :  { %8457 = vmatpush3.bf16.msra.mxu0 %v8454_v3  ;;  %v8466_v12 = vpack.c.bf16 %v129_v11, %v128_v10  ;;  %v8470_v15 = vpack.c.bf16 %v131_v14, %v130_v13  ;;  %v132_v16 = vld [vmem:[#allocation4 + $0x50] sm:$0xff]  ;;  %v133_v17 = vld [vmem:[#allocation4 + $0x58] sm:$0xff]  ;;  %v134_v19 = vld [vmem:[#allocation4 + $0x60] sm:$0xff] }
  0x4d   :  { %8459 = vmatprep.subr.bf16.mxu0 %v8458_v5  ;;  %v8474_v18 = vpack.c.bf16 %v133_v17, %v132_v16  ;;  %v135_v20 = vld [vmem:[#allocation4 + $0x68] sm:$0xff]  ;;  %v136_v22 = vld [vmem:[#allocation4 + $0x70] sm:$0xff]  ;;  %v137_v23 = vld [vmem:[#allocation4 + $0x78] sm:$0xff] }
  0x4e   :  { %v8478_v21 = vpack.c.bf16 %v135_v20, %v134_v19  ;;  %v8482_v24 = vpack.c.bf16 %v137_v23, %v136_v22  ;;  %v107_v25 = vld [vmem:[%s11629_s1 + $0x8] sm:$0xff]  ;;  %v108_v26 = vld [vmem:[%s11629_s1 + $0x10] sm:$0xff]  ;;  %v109_v27 = vld [vmem:[%s11629_s1 + $0x18] sm:$0xff] }
  0x4f   :  { %v110_v28 = vld [vmem:[%s11629_s1 + $0x20] sm:$0xff]  ;;  %v111_v29 = vld [vmem:[%s11629_s1 + $0x28] sm:$0xff]  ;;  %v112_v30 = vld [vmem:[%s11629_s1 + $0x30] sm:$0xff] }
  0x50   :  { %8461 = vmatpush3.bf16.msra.mxu0 %v8458_v5  ;;  %v113_v31 = vld [vmem:[%s11629_s1 + $0x38] sm:$0xff]  ;;  %v114_v32 = vld [vmem:[%s11629_s1 + $0x40] sm:$0xff]  ;;  %v115_v33 = vld [vmem:[%s11629_s1 + $0x48] sm:$0xff] }
  0x51   :  { %8463 = vmatprep.subr.bf16.mxu0 %v8462_v8  ;;  %v116_v34 = vld [vmem:[%s11629_s1 + $0x50] sm:$0xff]  ;;  %v117_v35 = vld [vmem:[%s11629_s1 + $0x58] sm:$0xff]  ;;  %v118_v36 = vld [vmem:[%s11629_s1 + $0x60] sm:$0xff] }
  0x52   :  { %v119_v37 = vld [vmem:[%s11629_s1 + $0x68] sm:$0xff]  ;;  %v120_v38 = vld [vmem:[%s11629_s1 + $0x70] sm:$0xff]  ;;  %v121_v39 = vld [vmem:[%s11629_s1 + $0x78] sm:$0xff] }
  0x53   :  { %v9953_v40 = vld [vmem:[#allocation2] sm:$0xff]  ;;  %v10010_v19 = vld [vmem:[#allocation2 + $0x10] sm:$0xff]  ;;  %v10014_v20 = vld [vmem:[#allocation2 + $0x18] sm:$0xff] }
  0x54   :  { %8465 = vmatpush3.bf16.msra.mxu0 %v8462_v8  ;;  %6638 = vmatprep.mubr.f32.mxu1 %v9953_v40  ;;  %v5458_v41 = vld [vmem:[%s11631_s3] ss:$0 sm:$0xff]  ;;  %v10020_v22 = vld [vmem:[#allocation2 + $0x28] sm:$0xff]  ;;  %v10022_v23 = vld [vmem:[#allocation2 + $0x30] sm:$0xff] }
  0x55   :  { %8467 = vmatprep.subr.bf16.mxu0 %v8466_v12 }
  0x58   :  { %8469 = vmatpush3.bf16.msra.mxu0 %v8466_v12 }
  0x59   :  { %8471 = vmatprep.subr.bf16.mxu0 %v8470_v15 }
  0x5c   :  { %8473 = vmatpush3.bf16.msra.mxu0 %v8470_v15 }
  0x5d   :  { %8475 = vmatprep.subr.bf16.mxu0 %v8474_v18 }
  0x60   :  { %8477 = vmatpush3.bf16.msra.mxu0 %v8474_v18  ;;  %v10008_v18 = vld [vmem:[#allocation2 + $0x8] sm:$0xff] }
  0x61   :  { %8479 = vmatprep.subr.bf16.mxu0 %v8478_v21 }
  0x64   :  { %8481 = vmatpush3.bf16.msra.mxu0 %v8478_v21  ;;  %v10016_v21 = vld [vmem:[#allocation2 + $0x20] sm:$0xff] }
  0x65   :  { %8483 = vmatprep.subr.bf16.mxu0 %v8482_v24 }
  0x68   :  { %8485 = vmatpush3.bf16.msra.mxu0 %v8482_v24  ;;  %v10026_v24 = vld [vmem:[#allocation2 + $0x38] sm:$0xff] }
  0x6b   :  { %6583 = vmatmul.mubr.f32.vlgmr.msra.gmra.mrb[0].mxu0 %v107_v25  ;;  %v10028_v25 = vld [vmem:[#allocation2 + $0x40] sm:$0xff] }
  0x6c   :  { %6585 = vmatprep.mubr.f32.mxu0 %v108_v26  ;;  %v10032_v26 = vld [vmem:[#allocation2 + $0x48] sm:$0xff] }
  0x6f   :  { %6586 = vmatmul.mubr.f32.gmra.mrb[2].mxu0 %v109_v27  ;;  %v10034_v27 = vld [vmem:[#allocation2 + $0x50] sm:$0xff] }
  0x70   :  { %6588 = vmatprep.mubr.f32.mxu0 %v110_v28  ;;  %v10038_v28 = vld [vmem:[#allocation2 + $0x58] sm:$0xff] }
  0x73   :  { %6589 = vmatmul.mubr.f32.gmra.mrb[4].mxu0 %v111_v29  ;;  %v10040_v29 = vld [vmem:[#allocation2 + $0x60] sm:$0xff] }
  0x74   :  { %6591 = vmatprep.mubr.f32.mxu0 %v112_v30  ;;  %v10044_v30 = vld [vmem:[#allocation2 + $0x68] sm:$0xff] }
  0x77   :  { %6592 = vmatmul.mubr.f32.gmra.mrb[6].mxu0 %v113_v31  ;;  %v10046_v31 = vld [vmem:[#allocation2 + $0x70] sm:$0xff] }
  0x78   :  { %6594 = vmatprep.mubr.f32.mxu0 %v114_v32  ;;  %v10050_v32 = vld [vmem:[#allocation2 + $0x78] sm:$0xff] }
  0x7b   :  { %6595 = vmatmul.mubr.f32.gmra.mrb[8].mxu0 %v115_v33 }
  0x7c   :  { %6597 = vmatprep.mubr.f32.mxu0 %v116_v34 }
  0x7f   :  { %6598 = vmatmul.mubr.f32.gmra.mrb[10].mxu0 %v117_v35 }
  0x80   :  { %6600 = vmatprep.mubr.f32.mxu0 %v118_v36 }
  0x83   :  { %6601 = vmatmul.mubr.f32.gmra.mrb[12].mxu0 %v119_v37 }
  0x84   :  { %6603 = vmatprep.mubr.f32.mxu0 %v120_v38 }
  0x87   :  { %6604 = vmatmul.mubr.f32.gmra.mrb[14].mxu0 %v121_v39 }
  0x88   :  { %6694 = vmatprep.mubr.f32.mxu0 %v9953_v40 }
 0x13e   :  { %v6584_v42 = vpop.f32.mrb[0].mxu0 }
 0x13f   :  { %v211_v43 = vpop.f32.mrb[1].mxu0  ;;  %v9960_v44 = vadd.f32 %v6584_v42, %v5458_v41 }
 0x140   :  { %v9962_v45 = vadd.f32 %v5458_v41, %v211_v43 }
 0x141   :  { %v10055_v33 = vmul.f32 0.1, %v9960_v44 }
 0x142   :  { %v6587_v46 = vpop.f32.mrb[2].mxu0  ;;  %v8486_v47 = vpack.c.bf16 %v9960_v44, %v9962_v45  ;;  %v10058_v34 = vmul.f32 0.1, %v9962_v45 }
 0x143   :  { %v9966_v48 = vadd.f32 %v6587_v46, %v5458_v41  ;;  %v221_v49 = vpop.f32.mrb[3].mxu0 }
 0x144   :  { %v9968_v50 = vadd.f32 %v5458_v41, %v221_v49  ;;  %8487 = vmatprep.subr.bf16.mxu1 %v8486_v47 }
 0x145   :  { %8489 = vmatpush3.bf16.msra.mxu1 %v8486_v47  ;;  %v10063_v39 = vmul.f32 0.1, %v9966_v48 }
 0x146   :  { %v6590_v51 = vpop.f32.mrb[4].mxu0  ;;  %v8490_v52 = vpack.c.bf16 %v9966_v48, %v9968_v50 }
 0x147   :  { %v9972_v53 = vadd.f32 %v6590_v51, %v5458_v41  ;;  %v231_v54 = vpop.f32.mrb[5].mxu0 }
 0x148   :  { %v9974_v55 = vadd.f32 %v5458_v41, %v231_v54  ;;  %8491 = vmatprep.subr.bf16.mxu1 %v8490_v52 }
 0x149   :  { %8493 = vmatpush3.bf16.msra.mxu1 %v8490_v52  ;;  %v10071_v47 = vmul.f32 0.1, %v9972_v53 }
 0x14a   :  { %v6593_v56 = vpop.f32.mrb[6].mxu0  ;;  %v8494_v57 = vpack.c.bf16 %v9972_v53, %v9974_v55  ;;  %v10074_v49 = vmul.f32 0.1, %v9974_v55 }
 0x14b   :  { %v9978_v58 = vadd.f32 %v6593_v56, %v5458_v41  ;;  %v241_v59 = vpop.f32.mrb[7].mxu0 }
 0x14c   :  { %v9980_v60 = vadd.f32 %v5458_v41, %v241_v59  ;;  %8495 = vmatprep.subr.bf16.mxu1 %v8494_v57 }
 0x14d   :  { %8497 = vmatpush3.bf16.msra.mxu1 %v8494_v57  ;;  %v10079_v56 = vmul.f32 0.1, %v9978_v58 }
 0x14e   :  { %v6596_v61 = vpop.f32.mrb[8].mxu0  ;;  %v8498_v62 = vpack.c.bf16 %v9978_v58, %v9980_v60  ;;  %v10082_v57 = vmul.f32 0.1, %v9980_v60 }
 0x14f   :  { %v9984_v63 = vadd.f32 %v6596_v61, %v5458_v41  ;;  %v251_v0 = vpop.f32.mrb[9].mxu0 }
 0x150   :  { %v9986_v1 = vadd.f32 %v5458_v41, %v251_v0  ;;  %8499 = vmatprep.subr.bf16.mxu1 %v8498_v62 }
 0x151   :  { %8501 = vmatpush3.bf16.msra.mxu1 %v8498_v62  ;;  %v10087_v0 = vmul.f32 0.1, %v9984_v63 }
 0x152   :  { %v6599_v2 = vpop.f32.mrb[10].mxu0  ;;  %v8502_v3 = vpack.c.bf16 %v9984_v63, %v9986_v1 }
 0x153   :  { %v9990_v4 = vadd.f32 %v6599_v2, %v5458_v41  ;;  %v261_v5 = vpop.f32.mrb[11].mxu0  ;;  %v10090_v2 = vmul.f32 0.1, %v9986_v1 }
 0x154   :  { %v9992_v6 = vadd.f32 %v5458_v41, %v261_v5  ;;  %8503 = vmatprep.subr.bf16.mxu1 %v8502_v3 }
 0x155   :  { %8505 = vmatpush3.bf16.msra.mxu1 %v8502_v3 }
 0x156   :  { %v6602_v7 = vpop.f32.mrb[12].mxu0  ;;  %v8506_v8 = vpack.c.bf16 %v9990_v4, %v9992_v6 }
 0x157   :  { %v9996_v9 = vadd.f32 %v6602_v7, %v5458_v41  ;;  %v271_v10 = vpop.f32.mrb[13].mxu0 }
 0x158   :  { %v9998_v11 = vadd.f32 %v5458_v41, %v271_v10  ;;  %8507 = vmatprep.subr.bf16.mxu1 %v8506_v8  ;;  %v10098_v10 = vmul.f32 0.1, %v9992_v6 }
 0x159   :  { %8509 = vmatpush3.bf16.msra.mxu1 %v8506_v8  ;;  %v10095_v8 = vmul.f32 0.1, %v9990_v4 }
 0x15a   :  { %v6605_v12 = vpop.f32.mrb[14].mxu0  ;;  %v8510_v13 = vpack.c.bf16 %v9996_v9, %v9998_v11 }
 0x15b   :  { %v10002_v14 = vadd.f32 %v6605_v12, %v5458_v41  ;;  %v281_v15 = vpop.f32.mrb[15].mxu0 }
 0x15c   :  { %v10004_v16 = vadd.f32 %v5458_v41, %v281_v15  ;;  %8511 = vmatprep.subr.bf16.mxu1 %v8510_v13  ;;  %v10066_v41 = vmul.f32 0.1, %v9968_v50 }
 0x15d   :  { %8513 = vmatpush3.bf16.msra.mxu1 %v8510_v13 }
 0x15e   :  { %v8514_v17 = vpack.c.bf16 %v10002_v14, %v10004_v16 }
 0x160   :  { %8515 = vmatprep.subr.bf16.mxu1 %v8514_v17 }
 0x161   :  { %8517 = vmatpush3.bf16.msra.mxu1 %v8514_v17  ;;  %v10103_v17 = vmul.f32 0.1, %v9996_v9 }
 0x164   :  { %6639 = vmatmul.mubr.f32.vlgmr.msra.gmra.mrb[0].mxu1 %v10008_v18 }
 0x165   :  { %6641 = vmatprep.mubr.f32.mxu1 %v10010_v19 }
 0x168   :  { %6642 = vmatmul.mubr.f32.gmra.mrb[2].mxu1 %v10014_v20 }
 0x169   :  { %6644 = vmatprep.mubr.f32.mxu1 %v10016_v21 }
 0x16c   :  { %6645 = vmatmul.mubr.f32.gmra.mrb[4].mxu1 %v10020_v22 }
 0x16d   :  { %6647 = vmatprep.mubr.f32.mxu1 %v10022_v23 }
 0x170   :  { %6648 = vmatmul.mubr.f32.gmra.mrb[6].mxu1 %v10026_v24 }
 0x171   :  { %6650 = vmatprep.mubr.f32.mxu1 %v10028_v25 }
 0x174   :  { %6651 = vmatmul.mubr.f32.gmra.mrb[8].mxu1 %v10032_v26 }
 0x175   :  { %6653 = vmatprep.mubr.f32.mxu1 %v10034_v27 }
 0x178   :  { %6654 = vmatmul.mubr.f32.gmra.mrb[10].mxu1 %v10038_v28 }
 0x179   :  { %6656 = vmatprep.mubr.f32.mxu1 %v10040_v29 }
 0x17c   :  { %6657 = vmatmul.mubr.f32.gmra.mrb[12].mxu1 %v10044_v30 }
 0x17d   :  { %6659 = vmatprep.mubr.f32.mxu1 %v10046_v31 }
 0x180   :  { %6660 = vmatmul.mubr.f32.gmra.mrb[14].mxu1 %v10050_v32 }
 0x181   :  { %6750 = vmatprep.mubr.f32.mxu1 %v9953_v40 }
 0x237   :  { %v6640_v35 = vpop.f32.mrb[0].mxu1 }
 0x238   :  { %v378_v36 = vadd.f32 %v6640_v35, %v10055_v33  ;;  %v372_v37 = vpop.f32.mrb[1].mxu1  ;;  %v10106_v35 = vmul.f32 0.1, %v9998_v11 }
 0x239   :  { %v373_v38 = vadd.f32 %v372_v37, %v10058_v34 }
 0x23b   :  { %v6643_v42 = vpop.f32.mrb[2].mxu1  ;;  %v8518_v43 = vpack.c.bf16 %v378_v36, %v373_v38 }
 0x23c   :  { %v388_v44 = vadd.f32 %v6643_v42, %v10063_v39  ;;  %v382_v46 = vpop.f32.mrb[3].mxu1  ;;  %v10111_v42 = vmul.f32 0.1, %v10002_v14 }
 0x23d   :  { %v383_v45 = vadd.f32 %v382_v46, %v10066_v41  ;;  %8519 = vmatprep.subr.bf16.mxu0 %v8518_v43 }
 0x23e   :  { %8521 = vmatpush3.bf16.msra.mxu0 %v8518_v43  ;;  %v10114_v43 = vmul.f32 0.1, %v10004_v16 }
 0x23f   :  { %v6646_v48 = vpop.f32.mrb[4].mxu1  ;;  %v8522_v51 = vpack.c.bf16 %v388_v44, %v383_v45 }
 0x240   :  { %v398_v50 = vadd.f32 %v6646_v48, %v10071_v47  ;;  %v392_v52 = vpop.f32.mrb[5].mxu1 }
 0x241   :  { %v393_v54 = vadd.f32 %v392_v52, %v10074_v49  ;;  %8523 = vmatprep.subr.bf16.mxu0 %v8522_v51 }
 0x242   :  { %8525 = vmatpush3.bf16.msra.mxu0 %v8522_v51 }
 0x243   :  { %v6649_v53 = vpop.f32.mrb[6].mxu1  ;;  %v8526_v59 = vpack.c.bf16 %v398_v50, %v393_v54 }
 0x244   :  { %v408_v55 = vadd.f32 %v6649_v53, %v10079_v56  ;;  %v402_v61 = vpop.f32.mrb[7].mxu1 }
 0x245   :  { %v403_v62 = vadd.f32 %v402_v61, %v10082_v57  ;;  %8527 = vmatprep.subr.bf16.mxu0 %v8526_v59 }
 0x246   :  { %8529 = vmatpush3.bf16.msra.mxu0 %v8526_v59 }
 0x247   :  { %v6652_v58 = vpop.f32.mrb[8].mxu1  ;;  %v8530_v3 = vpack.c.bf16 %v408_v55, %v403_v62 }
 0x248   :  { %v418_v60 = vadd.f32 %v6652_v58, %v10087_v0  ;;  %v412_v5 = vpop.f32.mrb[9].mxu1 }
 0x249   :  { %v413_v7 = vadd.f32 %v412_v5, %v10090_v2  ;;  %8531 = vmatprep.subr.bf16.mxu0 %v8530_v3 }
 0x24a   :  { %8533 = vmatpush3.bf16.msra.mxu0 %v8530_v3 }
 0x24b   :  { %v6655_v63 = vpop.f32.mrb[10].mxu1  ;;  %v8534_v12 = vpack.c.bf16 %v418_v60, %v413_v7 }
 0x24c   :  { %v428_v1 = vadd.f32 %v6655_v63, %v10095_v8  ;;  %v422_v13 = vpop.f32.mrb[11].mxu1 }
 0x24d   :  { %v423_v15 = vadd.f32 %v422_v13, %v10098_v10  ;;  %8535 = vmatprep.subr.bf16.mxu0 %v8534_v12 }
 0x24e   :  { %8537 = vmatpush3.bf16.msra.mxu0 %v8534_v12 }
 0x24f   :  { %v6658_v4 = vpop.f32.mrb[12].mxu1  ;;  %v8538_v36 = vpack.c.bf16 %v428_v1, %v423_v15 }
 0x250   :  { %v438_v6 = vadd.f32 %v6658_v4, %v10103_v17  ;;  %v432_v37 = vpop.f32.mrb[13].mxu1 }
 0x251   :  { %v433_v38 = vadd.f32 %v432_v37, %v10106_v35  ;;  %8539 = vmatprep.subr.bf16.mxu0 %v8538_v36 }
 0x252   :  { %8541 = vmatpush3.bf16.msra.mxu0 %v8538_v36 }
 0x253   :  { %v6661_v9 = vpop.f32.mrb[14].mxu1  ;;  %v8542_v44 = vpack.c.bf16 %v438_v6, %v433_v38 }
 0x254   :  { %v448_v11 = vadd.f32 %v6661_v9, %v10111_v42  ;;  %v442_v46 = vpop.f32.mrb[15].mxu1 }
 0x255   :  { %v443_v45 = vadd.f32 %v442_v46, %v10114_v43  ;;  %8543 = vmatprep.subr.bf16.mxu0 %v8542_v44 }
 0x256   :  { %8545 = vmatpush3.bf16.msra.mxu0 %v8542_v44 }
 0x257   :  { %v8546_v48 = vpack.c.bf16 %v448_v11, %v443_v45 }
 0x259   :  { %8547 = vmatprep.subr.bf16.mxu0 %v8546_v48 }
 0x25a   :  { %8549 = vmatpush3.bf16.msra.mxu0 %v8546_v48 }
 0x25d   :  { %6695 = vmatmul.mubr.f32.vlgmr.msra.gmra.mrb[16].mxu0 %v10008_v18 }
 0x25e   :  { %6697 = vmatprep.mubr.f32.mxu0 %v10010_v19 }
 0x261   :  { %6698 = vmatmul.mubr.f32.gmra.mrb[18].mxu0 %v10014_v20 }
 0x262   :  { %6700 = vmatprep.mubr.f32.mxu0 %v10016_v21 }
 0x265   :  { %6701 = vmatmul.mubr.f32.gmra.mrb[20].mxu0 %v10020_v22 }
 0x266   :  { %6703 = vmatprep.mubr.f32.mxu0 %v10022_v23 }
 0x269   :  { %6704 = vmatmul.mubr.f32.gmra.mrb[22].mxu0 %v10026_v24 }
 0x26a   :  { %6706 = vmatprep.mubr.f32.mxu0 %v10028_v25 }
 0x26d   :  { %6707 = vmatmul.mubr.f32.gmra.mrb[24].mxu0 %v10032_v26 }
 0x26e   :  { %6709 = vmatprep.mubr.f32.mxu0 %v10034_v27 }
 0x271   :  { %6710 = vmatmul.mubr.f32.gmra.mrb[26].mxu0 %v10038_v28 }
 0x272   :  { %6712 = vmatprep.mubr.f32.mxu0 %v10040_v29 }
 0x275   :  { %6713 = vmatmul.mubr.f32.gmra.mrb[28].mxu0 %v10044_v30 }
 0x276   :  { %6715 = vmatprep.mubr.f32.mxu0 %v10046_v31 }
 0x279   :  { %6716 = vmatmul.mubr.f32.gmra.mrb[30].mxu0 %v10050_v32 }
 0x27a   :  { %6806 = vmatprep.mubr.f32.mxu0 %v9953_v40 }
 0x330   :  { %v6696_v14 = vpop.f32.mrb[16].mxu0 }
 0x331   :  { %v523_v16 = vadd.f32 %v6696_v14, %v10055_v33  ;;  %v517_v51 = vpop.f32.mrb[17].mxu0 }
 0x332   :  { %v518_v50 = vadd.f32 %v517_v51, %v10058_v34 }
 0x334   :  { %v8550_v52 = vpack.c.bf16 %v523_v16, %v518_v50  ;;  %v6699_v54 = vpop.f32.mrb[18].mxu0 }
 0x335   :  { %v533_v53 = vadd.f32 %v6699_v54, %v10063_v39  ;;  %v527_v59 = vpop.f32.mrb[19].mxu0 }
 0x336   :  { %v528_v55 = vadd.f32 %v527_v59, %v10066_v41  ;;  %8551 = vmatprep.subr.bf16.mxu1 %v8550_v52 }
 0x337   :  { %8553 = vmatpush3.bf16.msra.mxu1 %v8550_v52 }
 0x338   :  { %v8554_v61 = vpack.c.bf16 %v533_v53, %v528_v55  ;;  %v6702_v62 = vpop.f32.mrb[20].mxu0 }
 0x339   :  { %v543_v58 = vadd.f32 %v6702_v62, %v10071_v47  ;;  %v537_v3 = vpop.f32.mrb[21].mxu0 }
 0x33a   :  { %v538_v60 = vadd.f32 %v537_v3, %v10074_v49  ;;  %8555 = vmatprep.subr.bf16.mxu1 %v8554_v61 }
 0x33b   :  { %8557 = vmatpush3.bf16.msra.mxu1 %v8554_v61 }
 0x33c   :  { %v8558_v5 = vpack.c.bf16 %v543_v58, %v538_v60  ;;  %v6705_v7 = vpop.f32.mrb[22].mxu0 }
 0x33d   :  { %v553_v63 = vadd.f32 %v6705_v7, %v10079_v56  ;;  %v547_v12 = vpop.f32.mrb[23].mxu0 }
 0x33e   :  { %v548_v1 = vadd.f32 %v547_v12, %v10082_v57  ;;  %8559 = vmatprep.subr.bf16.mxu1 %v8558_v5 }
 0x33f   :  { %8561 = vmatpush3.bf16.msra.mxu1 %v8558_v5 }
 0x340   :  { %v8562_v13 = vpack.c.bf16 %v553_v63, %v548_v1  ;;  %v6708_v15 = vpop.f32.mrb[24].mxu0 }
 0x341   :  { %v563_v4 = vadd.f32 %v6708_v15, %v10087_v0  ;;  %v557_v36 = vpop.f32.mrb[25].mxu0 }
 0x342   :  { %v558_v6 = vadd.f32 %v557_v36, %v10090_v2  ;;  %8563 = vmatprep.subr.bf16.mxu1 %v8562_v13 }
 0x343   :  { %8565 = vmatpush3.bf16.msra.mxu1 %v8562_v13 }
 0x344   :  { %v8566_v37 = vpack.c.bf16 %v563_v4, %v558_v6  ;;  %v6711_v38 = vpop.f32.mrb[26].mxu0 }
 0x345   :  { %v573_v9 = vadd.f32 %v6711_v38, %v10095_v8  ;;  %v567_v44 = vpop.f32.mrb[27].mxu0 }
 0x346   :  { %v568_v11 = vadd.f32 %v567_v44, %v10098_v10  ;;  %8567 = vmatprep.subr.bf16.mxu1 %v8566_v37 }
 0x347   :  { %8569 = vmatpush3.bf16.msra.mxu1 %v8566_v37 }
 0x348   :  { %v8570_v46 = vpack.c.bf16 %v573_v9, %v568_v11  ;;  %v6714_v45 = vpop.f32.mrb[28].mxu0 }
 0x349   :  { %v583_v48 = vadd.f32 %v6714_v45, %v10103_v17  ;;  %v577_v14 = vpop.f32.mrb[29].mxu0 }
 0x34a   :  { %v578_v16 = vadd.f32 %v577_v14, %v10106_v35  ;;  %8571 = vmatprep.subr.bf16.mxu1 %v8570_v46 }
 0x34b   :  { %8573 = vmatpush3.bf16.msra.mxu1 %v8570_v46 }
 0x34c   :  { %v8574_v51 = vpack.c.bf16 %v583_v48, %v578_v16  ;;  %v6717_v50 = vpop.f32.mrb[30].mxu0 }
 0x34d   :  { %v593_v52 = vadd.f32 %v6717_v50, %v10111_v42  ;;  %v587_v54 = vpop.f32.mrb[31].mxu0 }
 0x34e   :  { %v588_v53 = vadd.f32 %v587_v54, %v10114_v43  ;;  %8575 = vmatprep.subr.bf16.mxu1 %v8574_v51 }
 0x34f   :  { %8577 = vmatpush3.bf16.msra.mxu1 %v8574_v51 }
 0x350   :  { %v8578_v59 = vpack.c.bf16 %v593_v52, %v588_v53 }
 0x352   :  { %8579 = vmatprep.subr.bf16.mxu1 %v8578_v59 }
 0x353   :  { %8581 = vmatpush3.bf16.msra.mxu1 %v8578_v59 }
 0x356   :  { %6751 = vmatmul.mubr.f32.vlgmr.msra.gmra.mrb[16].mxu1 %v10008_v18 }
 0x357   :  { %6753 = vmatprep.mubr.f32.mxu1 %v10010_v19 }
 0x35a   :  { %6754 = vmatmul.mubr.f32.gmra.mrb[18].mxu1 %v10014_v20 }
 0x35b   :  { %6756 = vmatprep.mubr.f32.mxu1 %v10016_v21 }
 0x35e   :  { %6757 = vmatmul.mubr.f32.gmra.mrb[20].mxu1 %v10020_v22 }
 0x35f   :  { %6759 = vmatprep.mubr.f32.mxu1 %v10022_v23 }
 0x362   :  { %6760 = vmatmul.mubr.f32.gmra.mrb[22].mxu1 %v10026_v24 }
 0x363   :  { %6762 = vmatprep.mubr.f32.mxu1 %v10028_v25 }
 0x366   :  { %6763 = vmatmul.mubr.f32.gmra.mrb[24].mxu1 %v10032_v26 }
 0x367   :  { %6765 = vmatprep.mubr.f32.mxu1 %v10034_v27 }
 0x36a   :  { %6766 = vmatmul.mubr.f32.gmra.mrb[26].mxu1 %v10038_v28 }
 0x36b   :  { %6768 = vmatprep.mubr.f32.mxu1 %v10040_v29 }
 0x36e   :  { %6769 = vmatmul.mubr.f32.gmra.mrb[28].mxu1 %v10044_v30 }
 0x36f   :  { %6771 = vmatprep.mubr.f32.mxu1 %v10046_v31 }
 0x372   :  { %6772 = vmatmul.mubr.f32.gmra.mrb[30].mxu1 %v10050_v32 }
 0x373   :  { %6862 = vmatprep.mubr.f32.mxu1 %v9953_v40 }
 0x429   :  { %v6752_v55 = vpop.f32.mrb[16].mxu1 }
 0x42a   :  { %v668_v61 = vadd.f32 %v6752_v55, %v10055_v33  ;;  %v662_v62 = vpop.f32.mrb[17].mxu1 }
 0x42b   :  { %v663_v58 = vadd.f32 %v662_v62, %v10058_v34 }
 0x42d   :  { %v8582_v3 = vpack.c.bf16 %v668_v61, %v663_v58  ;;  %v6755_v60 = vpop.f32.mrb[18].mxu1 }
 0x42e   :  { %v678_v5 = vadd.f32 %v6755_v60, %v10063_v39  ;;  %v672_v7 = vpop.f32.mrb[19].mxu1 }
 0x42f   :  { %v673_v63 = vadd.f32 %v672_v7, %v10066_v41  ;;  %8583 = vmatprep.subr.bf16.mxu0 %v8582_v3 }
 0x430   :  { %8585 = vmatpush3.bf16.msra.mxu0 %v8582_v3 }
 0x431   :  { %v8586_v12 = vpack.c.bf16 %v678_v5, %v673_v63  ;;  %v6758_v1 = vpop.f32.mrb[20].mxu1 }
 0x432   :  { %v688_v13 = vadd.f32 %v6758_v1, %v10071_v47  ;;  %v682_v15 = vpop.f32.mrb[21].mxu1 }
 0x433   :  { %v683_v4 = vadd.f32 %v682_v15, %v10074_v49  ;;  %8587 = vmatprep.subr.bf16.mxu0 %v8586_v12 }
 0x434   :  { %8589 = vmatpush3.bf16.msra.mxu0 %v8586_v12 }
 0x435   :  { %v8590_v36 = vpack.c.bf16 %v688_v13, %v683_v4  ;;  %v6761_v6 = vpop.f32.mrb[22].mxu1 }
 0x436   :  { %v698_v37 = vadd.f32 %v6761_v6, %v10079_v56  ;;  %v692_v38 = vpop.f32.mrb[23].mxu1 }
 0x437   :  { %v693_v9 = vadd.f32 %v692_v38, %v10082_v57  ;;  %8591 = vmatprep.subr.bf16.mxu0 %v8590_v36 }
 0x438   :  { %8593 = vmatpush3.bf16.msra.mxu0 %v8590_v36 }
 0x439   :  { %v8594_v44 = vpack.c.bf16 %v698_v37, %v693_v9  ;;  %v6764_v11 = vpop.f32.mrb[24].mxu1 }
 0x43a   :  { %v708_v46 = vadd.f32 %v6764_v11, %v10087_v0  ;;  %v702_v45 = vpop.f32.mrb[25].mxu1 }
 0x43b   :  { %v703_v48 = vadd.f32 %v702_v45, %v10090_v2  ;;  %8595 = vmatprep.subr.bf16.mxu0 %v8594_v44 }
 0x43c   :  { %8597 = vmatpush3.bf16.msra.mxu0 %v8594_v44 }
 0x43d   :  { %v8598_v14 = vpack.c.bf16 %v708_v46, %v703_v48  ;;  %v6767_v16 = vpop.f32.mrb[26].mxu1 }
 0x43e   :  { %v718_v51 = vadd.f32 %v6767_v16, %v10095_v8  ;;  %v712_v50 = vpop.f32.mrb[27].mxu1 }
 0x43f   :  { %v713_v52 = vadd.f32 %v712_v50, %v10098_v10  ;;  %8599 = vmatprep.subr.bf16.mxu0 %v8598_v14 }
 0x440   :  { %8601 = vmatpush3.bf16.msra.mxu0 %v8598_v14 }
 0x441   :  { %v8602_v54 = vpack.c.bf16 %v718_v51, %v713_v52  ;;  %v6770_v53 = vpop.f32.mrb[28].mxu1 }
 0x442   :  { %v728_v59 = vadd.f32 %v6770_v53, %v10103_v17  ;;  %v722_v55 = vpop.f32.mrb[29].mxu1 }
 0x443   :  { %v723_v61 = vadd.f32 %v722_v55, %v10106_v35  ;;  %8603 = vmatprep.subr.bf16.mxu0 %v8602_v54 }
 0x444   :  { %8605 = vmatpush3.bf16.msra.mxu0 %v8602_v54 }
 0x445   :  { %v8606_v62 = vpack.c.bf16 %v728_v59, %v723_v61  ;;  %v6773_v58 = vpop.f32.mrb[30].mxu1 }
 0x446   :  { %v738_v3 = vadd.f32 %v6773_v58, %v10111_v42  ;;  %v732_v60 = vpop.f32.mrb[31].mxu1 }
 0x447   :  { %v733_v5 = vadd.f32 %v732_v60, %v10114_v43  ;;  %8607 = vmatprep.subr.bf16.mxu0 %v8606_v62 }
 0x448   :  { %8609 = vmatpush3.bf16.msra.mxu0 %v8606_v62 }
 0x449   :  { %v8610_v7 = vpack.c.bf16 %v738_v3, %v733_v5 }
 0x44b   :  { %8611 = vmatprep.subr.bf16.mxu0 %v8610_v7 }
 0x44c   :  { %8613 = vmatpush3.bf16.msra.mxu0 %v8610_v7 }
 0x44f   :  { %6807 = vmatmul.mubr.f32.vlgmr.msra.gmra.mrb[32].mxu0 %v10008_v18 }
 0x450   :  { %6809 = vmatprep.mubr.f32.mxu0 %v10010_v19 }
 0x453   :  { %6810 = vmatmul.mubr.f32.gmra.mrb[34].mxu0 %v10014_v20 }
 0x454   :  { %6812 = vmatprep.mubr.f32.mxu0 %v10016_v21 }
 0x457   :  { %6813 = vmatmul.mubr.f32.gmra.mrb[36].mxu0 %v10020_v22 }
 0x458   :  { %6815 = vmatprep.mubr.f32.mxu0 %v10022_v23 }
 0x45b   :  { %6816 = vmatmul.mubr.f32.gmra.mrb[38].mxu0 %v10026_v24 }
 0x45c   :  { %6818 = vmatprep.mubr.f32.mxu0 %v10028_v25 }
 0x45f   :  { %6819 = vmatmul.mubr.f32.gmra.mrb[40].mxu0 %v10032_v26 }
 0x460   :  { %6821 = vmatprep.mubr.f32.mxu0 %v10034_v27 }
 0x463   :  { %6822 = vmatmul.mubr.f32.gmra.mrb[42].mxu0 %v10038_v28 }
 0x464   :  { %6824 = vmatprep.mubr.f32.mxu0 %v10040_v29 }
 0x467   :  { %6825 = vmatmul.mubr.f32.gmra.mrb[44].mxu0 %v10044_v30 }
 0x468   :  { %6827 = vmatprep.mubr.f32.mxu0 %v10046_v31 }
 0x46b   :  { %6828 = vmatmul.mubr.f32.gmra.mrb[46].mxu0 %v10050_v32 }
 0x46c   :  { %6918 = vmatprep.mubr.f32.mxu0 %v9953_v40 }
 0x522   :  { %v6808_v63 = vpop.f32.mrb[32].mxu0 }
 0x523   :  { %v813_v12 = vadd.f32 %v6808_v63, %v10055_v33  ;;  %v807_v1 = vpop.f32.mrb[33].mxu0 }
 0x524   :  { %v808_v13 = vadd.f32 %v807_v1, %v10058_v34 }
 0x526   :  { %v8614_v15 = vpack.c.bf16 %v813_v12, %v808_v13  ;;  %v6811_v4 = vpop.f32.mrb[34].mxu0 }
 0x527   :  { %v823_v36 = vadd.f32 %v6811_v4, %v10063_v39  ;;  %v817_v6 = vpop.f32.mrb[35].mxu0 }
 0x528   :  { %v818_v37 = vadd.f32 %v817_v6, %v10066_v41  ;;  %8615 = vmatprep.subr.bf16.mxu1 %v8614_v15 }
 0x529   :  { %8617 = vmatpush3.bf16.msra.mxu1 %v8614_v15 }
 0x52a   :  { %v8618_v38 = vpack.c.bf16 %v823_v36, %v818_v37  ;;  %v6814_v9 = vpop.f32.mrb[36].mxu0 }
 0x52b   :  { %v833_v44 = vadd.f32 %v6814_v9, %v10071_v47  ;;  %v827_v11 = vpop.f32.mrb[37].mxu0 }
 0x52c   :  { %v828_v46 = vadd.f32 %v827_v11, %v10074_v49  ;;  %8619 = vmatprep.subr.bf16.mxu1 %v8618_v38 }
 0x52d   :  { %8621 = vmatpush3.bf16.msra.mxu1 %v8618_v38 }
 0x52e   :  { %v8622_v45 = vpack.c.bf16 %v833_v44, %v828_v46  ;;  %v6817_v48 = vpop.f32.mrb[38].mxu0 }
 0x52f   :  { %v843_v14 = vadd.f32 %v6817_v48, %v10079_v56  ;;  %v837_v16 = vpop.f32.mrb[39].mxu0 }
 0x530   :  { %v838_v51 = vadd.f32 %v837_v16, %v10082_v57  ;;  %8623 = vmatprep.subr.bf16.mxu1 %v8622_v45 }
 0x531   :  { %8625 = vmatpush3.bf16.msra.mxu1 %v8622_v45 }
 0x532   :  { %v8626_v50 = vpack.c.bf16 %v843_v14, %v838_v51  ;;  %v6820_v52 = vpop.f32.mrb[40].mxu0 }
 0x533   :  { %v853_v54 = vadd.f32 %v6820_v52, %v10087_v0  ;;  %v847_v53 = vpop.f32.mrb[41].mxu0 }
 0x534   :  { %v848_v59 = vadd.f32 %v847_v53, %v10090_v2  ;;  %8627 = vmatprep.subr.bf16.mxu1 %v8626_v50 }
 0x535   :  { %8629 = vmatpush3.bf16.msra.mxu1 %v8626_v50 }
 0x536   :  { %v8630_v55 = vpack.c.bf16 %v853_v54, %v848_v59  ;;  %v6823_v61 = vpop.f32.mrb[42].mxu0 }
 0x537   :  { %v863_v62 = vadd.f32 %v6823_v61, %v10095_v8  ;;  %v857_v58 = vpop.f32.mrb[43].mxu0 }
 0x538   :  { %v858_v3 = vadd.f32 %v857_v58, %v10098_v10  ;;  %8631 = vmatprep.subr.bf16.mxu1 %v8630_v55 }
 0x539   :  { %8633 = vmatpush3.bf16.msra.mxu1 %v8630_v55 }
 0x53a   :  { %v8634_v60 = vpack.c.bf16 %v863_v62, %v858_v3  ;;  %v6826_v5 = vpop.f32.mrb[44].mxu0 }
 0x53b   :  { %v873_v7 = vadd.f32 %v6826_v5, %v10103_v17  ;;  %v867_v63 = vpop.f32.mrb[45].mxu0 }
 0x53c   :  { %v868_v12 = vadd.f32 %v867_v63, %v10106_v35  ;;  %8635 = vmatprep.subr.bf16.mxu1 %v8634_v60 }
 0x53d   :  { %8637 = vmatpush3.bf16.msra.mxu1 %v8634_v60 }
 0x53e   :  { %v8638_v1 = vpack.c.bf16 %v873_v7, %v868_v12  ;;  %v6829_v13 = vpop.f32.mrb[46].mxu0 }
 0x53f   :  { %v883_v15 = vadd.f32 %v6829_v13, %v10111_v42  ;;  %v877_v4 = vpop.f32.mrb[47].mxu0 }
 0x540   :  { %v878_v36 = vadd.f32 %v877_v4, %v10114_v43  ;;  %8639 = vmatprep.subr.bf16.mxu1 %v8638_v1 }
 0x541   :  { %8641 = vmatpush3.bf16.msra.mxu1 %v8638_v1 }
 0x542   :  { %v8642_v6 = vpack.c.bf16 %v883_v15, %v878_v36 }
 0x544   :  { %8643 = vmatprep.subr.bf16.mxu1 %v8642_v6 }
 0x545   :  { %8645 = vmatpush3.bf16.msra.mxu1 %v8642_v6 }
 0x548   :  { %6863 = vmatmul.mubr.f32.vlgmr.msra.gmra.mrb[32].mxu1 %v10008_v18 }
 0x549   :  { %6865 = vmatprep.mubr.f32.mxu1 %v10010_v19 }
 0x54c   :  { %6866 = vmatmul.mubr.f32.gmra.mrb[34].mxu1 %v10014_v20 }
 0x54d   :  { %6868 = vmatprep.mubr.f32.mxu1 %v10016_v21 }
 0x550   :  { %6869 = vmatmul.mubr.f32.gmra.mrb[36].mxu1 %v10020_v22 }
 0x551   :  { %6871 = vmatprep.mubr.f32.mxu1 %v10022_v23 }
 0x554   :  { %6872 = vmatmul.mubr.f32.gmra.mrb[38].mxu1 %v10026_v24 }
 0x555   :  { %6874 = vmatprep.mubr.f32.mxu1 %v10028_v25 }
 0x558   :  { %6875 = vmatmul.mubr.f32.gmra.mrb[40].mxu1 %v10032_v26 }
 0x559   :  { %6877 = vmatprep.mubr.f32.mxu1 %v10034_v27 }
 0x55c   :  { %6878 = vmatmul.mubr.f32.gmra.mrb[42].mxu1 %v10038_v28 }
 0x55d   :  { %6880 = vmatprep.mubr.f32.mxu1 %v10040_v29 }
 0x560   :  { %6881 = vmatmul.mubr.f32.gmra.mrb[44].mxu1 %v10044_v30 }
 0x561   :  { %6883 = vmatprep.mubr.f32.mxu1 %v10046_v31 }
 0x564   :  { %6884 = vmatmul.mubr.f32.gmra.mrb[46].mxu1 %v10050_v32 }
 0x565   :  { %6974 = vmatprep.mubr.f32.mxu1 %v9953_v40 }
 0x61b   :  { %v6864_v37 = vpop.f32.mrb[32].mxu1 }
 0x61c   :  { %v958_v38 = vadd.f32 %v6864_v37, %v10055_v33  ;;  %v952_v9 = vpop.f32.mrb[33].mxu1 }
 0x61d   :  { %v953_v44 = vadd.f32 %v952_v9, %v10058_v34 }
 0x61f   :  { %v8646_v11 = vpack.c.bf16 %v958_v38, %v953_v44  ;;  %v6867_v46 = vpop.f32.mrb[34].mxu1 }
 0x620   :  { %v968_v45 = vadd.f32 %v6867_v46, %v10063_v39  ;;  %v962_v48 = vpop.f32.mrb[35].mxu1 }
 0x621   :  { %v963_v14 = vadd.f32 %v962_v48, %v10066_v41  ;;  %8647 = vmatprep.subr.bf16.mxu0 %v8646_v11 }
 0x622   :  { %8649 = vmatpush3.bf16.msra.mxu0 %v8646_v11 }
 0x623   :  { %v8650_v16 = vpack.c.bf16 %v968_v45, %v963_v14  ;;  %v6870_v51 = vpop.f32.mrb[36].mxu1 }
 0x624   :  { %v978_v50 = vadd.f32 %v6870_v51, %v10071_v47  ;;  %v972_v52 = vpop.f32.mrb[37].mxu1 }
 0x625   :  { %v973_v54 = vadd.f32 %v972_v52, %v10074_v49  ;;  %8651 = vmatprep.subr.bf16.mxu0 %v8650_v16 }
 0x626   :  { %8653 = vmatpush3.bf16.msra.mxu0 %v8650_v16 }
 0x627   :  { %v8654_v53 = vpack.c.bf16 %v978_v50, %v973_v54  ;;  %v6873_v59 = vpop.f32.mrb[38].mxu1 }
 0x628   :  { %v988_v55 = vadd.f32 %v6873_v59, %v10079_v56  ;;  %v982_v61 = vpop.f32.mrb[39].mxu1 }
 0x629   :  { %v983_v62 = vadd.f32 %v982_v61, %v10082_v57  ;;  %8655 = vmatprep.subr.bf16.mxu0 %v8654_v53 }
 0x62a   :  { %8657 = vmatpush3.bf16.msra.mxu0 %v8654_v53 }
 0x62b   :  { %v8658_v58 = vpack.c.bf16 %v988_v55, %v983_v62  ;;  %v6876_v3 = vpop.f32.mrb[40].mxu1 }
 0x62c   :  { %v998_v60 = vadd.f32 %v6876_v3, %v10087_v0  ;;  %v992_v5 = vpop.f32.mrb[41].mxu1 }
 0x62d   :  { %v993_v7 = vadd.f32 %v992_v5, %v10090_v2  ;;  %8659 = vmatprep.subr.bf16.mxu0 %v8658_v58 }
 0x62e   :  { %8661 = vmatpush3.bf16.msra.mxu0 %v8658_v58 }
 0x62f   :  { %v8662_v63 = vpack.c.bf16 %v998_v60, %v993_v7  ;;  %v6879_v12 = vpop.f32.mrb[42].mxu1 }
 0x630   :  { %v1008_v1 = vadd.f32 %v6879_v12, %v10095_v8  ;;  %v1002_v13 = vpop.f32.mrb[43].mxu1 }
 0x631   :  { %v1003_v15 = vadd.f32 %v1002_v13, %v10098_v10  ;;  %8663 = vmatprep.subr.bf16.mxu0 %v8662_v63 }
 0x632   :  { %8665 = vmatpush3.bf16.msra.mxu0 %v8662_v63 }
 0x633   :  { %v8666_v4 = vpack.c.bf16 %v1008_v1, %v1003_v15  ;;  %v6882_v36 = vpop.f32.mrb[44].mxu1 }
 0x634   :  { %v1018_v6 = vadd.f32 %v6882_v36, %v10103_v17  ;;  %v1012_v37 = vpop.f32.mrb[45].mxu1 }
 0x635   :  { %v1013_v38 = vadd.f32 %v1012_v37, %v10106_v35  ;;  %8667 = vmatprep.subr.bf16.mxu0 %v8666_v4 }
 0x636   :  { %8669 = vmatpush3.bf16.msra.mxu0 %v8666_v4 }
 0x637   :  { %v8670_v9 = vpack.c.bf16 %v1018_v6, %v1013_v38  ;;  %v6885_v44 = vpop.f32.mrb[46].mxu1 }
 0x638   :  { %v1028_v11 = vadd.f32 %v6885_v44, %v10111_v42  ;;  %v1022_v46 = vpop.f32.mrb[47].mxu1 }
 0x639   :  { %v1023_v45 = vadd.f32 %v1022_v46, %v10114_v43  ;;  %8671 = vmatprep.subr.bf16.mxu0 %v8670_v9 }
 0x63a   :  { %8673 = vmatpush3.bf16.msra.mxu0 %v8670_v9 }
 0x63b   :  { %v8674_v48 = vpack.c.bf16 %v1028_v11, %v1023_v45 }
 0x63d   :  { %8675 = vmatprep.subr.bf16.mxu0 %v8674_v48 }
 0x63e   :  { %8677 = vmatpush3.bf16.msra.mxu0 %v8674_v48 }
 0x641   :  { %6919 = vmatmul.mubr.f32.vlgmr.msra.gmra.mrb[48].mxu0 %v10008_v18 }
 0x642   :  { %6921 = vmatprep.mubr.f32.mxu0 %v10010_v19 }
 0x645   :  { %6922 = vmatmul.mubr.f32.gmra.mrb[50].mxu0 %v10014_v20 }
 0x646   :  { %6924 = vmatprep.mubr.f32.mxu0 %v10016_v21 }
 0x649   :  { %6925 = vmatmul.mubr.f32.gmra.mrb[52].mxu0 %v10020_v22 }
 0x64a   :  { %6927 = vmatprep.mubr.f32.mxu0 %v10022_v23 }
 0x64d   :  { %6928 = vmatmul.mubr.f32.gmra.mrb[54].mxu0 %v10026_v24 }
 0x64e   :  { %6930 = vmatprep.mubr.f32.mxu0 %v10028_v25 }
 0x651   :  { %6931 = vmatmul.mubr.f32.gmra.mrb[56].mxu0 %v10032_v26 }
 0x652   :  { %6933 = vmatprep.mubr.f32.mxu0 %v10034_v27 }
 0x655   :  { %6934 = vmatmul.mubr.f32.gmra.mrb[58].mxu0 %v10038_v28 }
 0x656   :  { %6936 = vmatprep.mubr.f32.mxu0 %v10040_v29 }
 0x659   :  { %6937 = vmatmul.mubr.f32.gmra.mrb[60].mxu0 %v10044_v30 }
 0x65a   :  { %6939 = vmatprep.mubr.f32.mxu0 %v10046_v31 }
 0x65d   :  { %6940 = vmatmul.mubr.f32.gmra.mrb[62].mxu0 %v10050_v32 }
 0x65e   :  { %7030 = vmatprep.mubr.f32.mxu0 %v9953_v40 }
 0x714   :  { %v6920_v14 = vpop.f32.mrb[48].mxu0 }
 0x715   :  { %v1103_v16 = vadd.f32 %v6920_v14, %v10055_v33  ;;  %v1097_v51 = vpop.f32.mrb[49].mxu0 }
 0x716   :  { %v1098_v50 = vadd.f32 %v1097_v51, %v10058_v34 }
 0x718   :  { %v8678_v52 = vpack.c.bf16 %v1103_v16, %v1098_v50  ;;  %v6923_v54 = vpop.f32.mrb[50].mxu0 }
 0x719   :  { %v1113_v53 = vadd.f32 %v6923_v54, %v10063_v39  ;;  %v1107_v59 = vpop.f32.mrb[51].mxu0 }
 0x71a   :  { %v1108_v55 = vadd.f32 %v1107_v59, %v10066_v41  ;;  %8679 = vmatprep.subr.bf16.mxu1 %v8678_v52 }
 0x71b   :  { %8681 = vmatpush3.bf16.msra.mxu1 %v8678_v52 }
 0x71c   :  { %v8682_v61 = vpack.c.bf16 %v1113_v53, %v1108_v55  ;;  %v6926_v62 = vpop.f32.mrb[52].mxu0 }
 0x71d   :  { %v1123_v58 = vadd.f32 %v6926_v62, %v10071_v47  ;;  %v1117_v40 = vpop.f32.mrb[53].mxu0 }
 0x71e   :  { %v1118_v3 = vadd.f32 %v1117_v40, %v10074_v49  ;;  %8683 = vmatprep.subr.bf16.mxu1 %v8682_v61 }
 0x71f   :  { %8685 = vmatpush3.bf16.msra.mxu1 %v8682_v61 }
 0x720   :  { %v8686_v60 = vpack.c.bf16 %v1123_v58, %v1118_v3  ;;  %v6929_v5 = vpop.f32.mrb[54].mxu0 }
 0x721   :  { %v1133_v7 = vadd.f32 %v6929_v5, %v10079_v56  ;;  %v1127_v63 = vpop.f32.mrb[55].mxu0 }
 0x722   :  { %v1128_v12 = vadd.f32 %v1127_v63, %v10082_v57  ;;  %8687 = vmatprep.subr.bf16.mxu1 %v8686_v60 }
 0x723   :  { %8689 = vmatpush3.bf16.msra.mxu1 %v8686_v60 }
 0x724   :  { %v8690_v1 = vpack.c.bf16 %v1133_v7, %v1128_v12  ;;  %v6932_v13 = vpop.f32.mrb[56].mxu0 }
 0x725   :  { %v1143_v15 = vadd.f32 %v6932_v13, %v10087_v0  ;;  %v1137_v4 = vpop.f32.mrb[57].mxu0 }
 0x726   :  { %v1138_v36 = vadd.f32 %v1137_v4, %v10090_v2  ;;  %8691 = vmatprep.subr.bf16.mxu1 %v8690_v1 }
 0x727   :  { %8693 = vmatpush3.bf16.msra.mxu1 %v8690_v1 }
 0x728   :  { %v8694_v6 = vpack.c.bf16 %v1143_v15, %v1138_v36  ;;  %v6935_v37 = vpop.f32.mrb[58].mxu0 }
 0x729   :  { %v1153_v38 = vadd.f32 %v6935_v37, %v10095_v8  ;;  %v1147_v9 = vpop.f32.mrb[59].mxu0 }
 0x72a   :  { %v1148_v44 = vadd.f32 %v1147_v9, %v10098_v10  ;;  %8695 = vmatprep.subr.bf16.mxu1 %v8694_v6 }
 0x72b   :  { %8697 = vmatpush3.bf16.msra.mxu1 %v8694_v6 }
 0x72c   :  { %v8698_v11 = vpack.c.bf16 %v1153_v38, %v1148_v44  ;;  %v6938_v46 = vpop.f32.mrb[60].mxu0 }
 0x72d   :  { %v1163_v45 = vadd.f32 %v6938_v46, %v10103_v17  ;;  %v1157_v48 = vpop.f32.mrb[61].mxu0 }
 0x72e   :  { %v1158_v14 = vadd.f32 %v1157_v48, %v10106_v35  ;;  %8699 = vmatprep.subr.bf16.mxu1 %v8698_v11 }
 0x72f   :  { %8701 = vmatpush3.bf16.msra.mxu1 %v8698_v11 }
 0x730   :  { %v8702_v16 = vpack.c.bf16 %v1163_v45, %v1158_v14  ;;  %v6941_v51 = vpop.f32.mrb[62].mxu0  ;;  %v10312_v14 = vld [vmem:[#allocation2 + $0x8] sm:$0xff] }
 0x731   :  { %v1173_v50 = vadd.f32 %v6941_v51, %v10111_v42  ;;  %v1167_v52 = vpop.f32.mrb[63].mxu0  ;;  %v10318_v51 = vld [vmem:[#allocation2 + $0x18] sm:$0xff] }
 0x732   :  { %v1168_v54 = vadd.f32 %v1167_v52, %v10114_v43  ;;  %8703 = vmatprep.subr.bf16.mxu1 %v8702_v16  ;;  %v10324_v52 = vld [vmem:[#allocation2 + $0x28] sm:$0xff] }
 0x733   :  { %8705 = vmatpush3.bf16.msra.mxu1 %v8702_v16  ;;  %v10315_v16 = vld [vmem:[#allocation2 + $0x10] sm:$0xff] }
 0x734   :  { %v8706_v53 = vpack.c.bf16 %v1173_v50, %v1168_v54  ;;  %v10321_v50 = vld [vmem:[#allocation2 + $0x20] sm:$0xff]  ;;  %v10327_v54 = vld [vmem:[#allocation2 + $0x30] sm:$0xff] }
 0x736   :  { %8707 = vmatprep.subr.bf16.mxu1 %v8706_v53 }
 0x737   :  { %8709 = vmatpush3.bf16.msra.mxu1 %v8706_v53  ;;  %v10330_v53 = vld [vmem:[#allocation2 + $0x38] sm:$0xff] }
 0x73a   :  { %6975 = vmatmul.mubr.f32.vlgmr.msra.gmra.mrb[48].mxu1 %v10008_v18  ;;  %v10293_v18 = vld [vmem:[#allocation2] sm:$0xff] }
 0x73b   :  { %6977 = vmatprep.mubr.f32.mxu1 %v10010_v19 }
 0x73e   :  { %6978 = vmatmul.mubr.f32.gmra.mrb[50].mxu1 %v10014_v20 }
 0x73f   :  { %6980 = vmatprep.mubr.f32.mxu1 %v10016_v21 }
 0x742   :  { %6981 = vmatmul.mubr.f32.gmra.mrb[52].mxu1 %v10020_v22 }
 0x743   :  { %6983 = vmatprep.mubr.f32.mxu1 %v10022_v23 }
 0x746   :  { %6984 = vmatmul.mubr.f32.gmra.mrb[54].mxu1 %v10026_v24 }
 0x747   :  { %6986 = vmatprep.mubr.f32.mxu1 %v10028_v25 }
 0x74a   :  { %6987 = vmatmul.mubr.f32.gmra.mrb[56].mxu1 %v10032_v26 }
 0x74b   :  { %6989 = vmatprep.mubr.f32.mxu1 %v10034_v27 }
 0x74e   :  { %6990 = vmatmul.mubr.f32.gmra.mrb[58].mxu1 %v10038_v28 }
 0x74f   :  { %6992 = vmatprep.mubr.f32.mxu1 %v10040_v29 }
 0x752   :  { %6993 = vmatmul.mubr.f32.gmra.mrb[60].mxu1 %v10044_v30 }
 0x753   :  { %6995 = vmatprep.mubr.f32.mxu1 %v10046_v31 }
 0x756   :  { %6996 = vmatmul.mubr.f32.gmra.mrb[62].mxu1 %v10050_v32 }
 0x757   :  { %7086 = vmatprep.mubr.f32.mxu1 %v10293_v18 }
 0x80d   :  { %v6976_v19 = vpop.f32.mrb[48].mxu1 }
 0x80e   :  { %v1248_v20 = vadd.f32 %v6976_v19, %v10055_v33  ;;  %v1242_v21 = vpop.f32.mrb[49].mxu1  ;;  %v10333_v19 = vld [vmem:[#allocation2 + $0x40] sm:$0xff] }
 0x80f   :  { %v1243_v22 = vadd.f32 %v1242_v21, %v10058_v34  ;;  %v10339_v21 = vld [vmem:[#allocation2 + $0x50] sm:$0xff] }
 0x811   :  { %v8710_v23 = vpack.c.bf16 %v1248_v20, %v1243_v22  ;;  %v6979_v24 = vpop.f32.mrb[50].mxu1  ;;  %v10336_v20 = vld [vmem:[#allocation2 + $0x48] sm:$0xff]  ;;  %v10342_v22 = vld [vmem:[#allocation2 + $0x58] sm:$0xff] }
 0x812   :  { %v1258_v25 = vadd.f32 %v6979_v24, %v10063_v39  ;;  %v1252_v26 = vpop.f32.mrb[51].mxu1  ;;  %v10348_v24 = vld [vmem:[#allocation2 + $0x68] sm:$0xff] }
 0x813   :  { %v1253_v27 = vadd.f32 %v1252_v26, %v10066_v41  ;;  %8711 = vmatprep.subr.bf16.mxu0 %v8710_v23  ;;  %v10354_v26 = vld [vmem:[#allocation2 + $0x78] sm:$0xff] }
 0x814   :  { %8713 = vmatpush3.bf16.msra.mxu0 %v8710_v23  ;;  %v10345_v23 = vld [vmem:[#allocation2 + $0x60] sm:$0xff] }
 0x815   :  { %v8714_v28 = vpack.c.bf16 %v1258_v25, %v1253_v27  ;;  %v6982_v29 = vpop.f32.mrb[52].mxu1  ;;  %v10351_v25 = vld [vmem:[#allocation2 + $0x70] sm:$0xff] }
 0x816   :  { %v1268_v30 = vadd.f32 %v6982_v29, %v10071_v47  ;;  %v1262_v31 = vpop.f32.mrb[53].mxu1 }
 0x817   :  { %v1263_v32 = vadd.f32 %v1262_v31, %v10074_v49  ;;  %8715 = vmatprep.subr.bf16.mxu0 %v8714_v28 }
 0x818   :  { %8717 = vmatpush3.bf16.msra.mxu0 %v8714_v28 }
 0x819   :  { %v8718_v59 = vpack.c.bf16 %v1268_v30, %v1263_v32  ;;  %v6985_v55 = vpop.f32.mrb[54].mxu1 }
 0x81a   :  { %v1278_v61 = vadd.f32 %v6985_v55, %v10079_v56  ;;  %v1272_v62 = vpop.f32.mrb[55].mxu1 }
 0x81b   :  { %v1273_v58 = vadd.f32 %v1272_v62, %v10082_v57  ;;  %8719 = vmatprep.subr.bf16.mxu0 %v8718_v59 }
 0x81c   :  { %8721 = vmatpush3.bf16.msra.mxu0 %v8718_v59 }
 0x81d   :  { %v8722_v40 = vpack.c.bf16 %v1278_v61, %v1273_v58  ;;  %v6988_v3 = vpop.f32.mrb[56].mxu1 }
 0x81e   :  { %v1288_v60 = vadd.f32 %v6988_v3, %v10087_v0  ;;  %v1282_v5 = vpop.f32.mrb[57].mxu1 }
 0x81f   :  { %v1283_v7 = vadd.f32 %v1282_v5, %v10090_v2  ;;  %8723 = vmatprep.subr.bf16.mxu0 %v8722_v40 }
 0x820   :  { %8725 = vmatpush3.bf16.msra.mxu0 %v8722_v40 }
 0x821   :  { %v8726_v63 = vpack.c.bf16 %v1288_v60, %v1283_v7  ;;  %v6991_v12 = vpop.f32.mrb[58].mxu1 }
 0x822   :  { %v1298_v1 = vadd.f32 %v6991_v12, %v10095_v8  ;;  %v1292_v13 = vpop.f32.mrb[59].mxu1 }
 0x823   :  { %v1293_v15 = vadd.f32 %v1292_v13, %v10098_v10  ;;  %8727 = vmatprep.subr.bf16.mxu0 %v8726_v63 }
 0x824   :  { %8729 = vmatpush3.bf16.msra.mxu0 %v8726_v63 }
 0x825   :  { %v8730_v4 = vpack.c.bf16 %v1298_v1, %v1293_v15  ;;  %v6994_v36 = vpop.f32.mrb[60].mxu1 }
 0x826   :  { %v1308_v6 = vadd.f32 %v6994_v36, %v10103_v17  ;;  %v1302_v37 = vpop.f32.mrb[61].mxu1 }
 0x827   :  { %v1303_v38 = vadd.f32 %v1302_v37, %v10106_v35  ;;  %8731 = vmatprep.subr.bf16.mxu0 %v8730_v4 }
 0x828   :  { %8733 = vmatpush3.bf16.msra.mxu0 %v8730_v4 }
 0x829   :  { %v8734_v9 = vpack.c.bf16 %v1308_v6, %v1303_v38  ;;  %v6997_v44 = vpop.f32.mrb[62].mxu1 }
 0x82a   :  { %v1318_v11 = vadd.f32 %v6997_v44, %v10111_v42  ;;  %v1312_v46 = vpop.f32.mrb[63].mxu1 }
 0x82b   :  { %v1313_v45 = vadd.f32 %v1312_v46, %v10114_v43  ;;  %8735 = vmatprep.subr.bf16.mxu0 %v8734_v9 }
 0x82c   :  { %8737 = vmatpush3.bf16.msra.mxu0 %v8734_v9 }
 0x82d   :  { %v8738_v48 = vpack.c.bf16 %v1318_v11, %v1313_v45 }
 0x82f   :  { %8739 = vmatprep.subr.bf16.mxu0 %v8738_v48 }
 0x830   :  { %8741 = vmatpush3.bf16.msra.mxu0 %v8738_v48 }
 0x833   :  { %7031 = vmatmul.mubr.f32.vlgmr.msra.gmra.mrb[64].mxu0 %v10312_v14 }
 0x834   :  { %7033 = vmatprep.mubr.f32.mxu0 %v10315_v16 }
 0x837   :  { %7034 = vmatmul.mubr.f32.gmra.mrb[66].mxu0 %v10318_v51 }
 0x838   :  { %7036 = vmatprep.mubr.f32.mxu0 %v10321_v50 }
 0x83b   :  { %7037 = vmatmul.mubr.f32.gmra.mrb[68].mxu0 %v10324_v52 }
 0x83c   :  { %7039 = vmatprep.mubr.f32.mxu0 %v10327_v54 }
 0x83f   :  { %7040 = vmatmul.mubr.f32.gmra.mrb[70].mxu0 %v10330_v53 }
 0x840   :  { %7042 = vmatprep.mubr.f32.mxu0 %v10333_v19 }
 0x843   :  { %7043 = vmatmul.mubr.f32.gmra.mrb[72].mxu0 %v10336_v20 }
 0x844   :  { %7045 = vmatprep.mubr.f32.mxu0 %v10339_v21 }
 0x847   :  { %7046 = vmatmul.mubr.f32.gmra.mrb[74].mxu0 %v10342_v22 }
 0x848   :  { %7048 = vmatprep.mubr.f32.mxu0 %v10345_v23 }
 0x84b   :  { %7049 = vmatmul.mubr.f32.gmra.mrb[76].mxu0 %v10348_v24 }
 0x84c   :  { %7051 = vmatprep.mubr.f32.mxu0 %v10351_v25 }
 0x84f   :  { %7052 = vmatmul.mubr.f32.gmra.mrb[78].mxu0 %v10354_v26 }
 0x850   :  { %7142 = vmatprep.mubr.f32.mxu0 %v10293_v18 }
 0x906   :  { %v7032_v27 = vpop.f32.mrb[64].mxu0 }
 0x907   :  { %v1393_v28 = vadd.f32 %v7032_v27, %v10055_v33  ;;  %v1387_v29 = vpop.f32.mrb[65].mxu0 }
 0x908   :  { %v1388_v30 = vadd.f32 %v1387_v29, %v10058_v34 }
 0x90a   :  { %v8742_v31 = vpack.c.bf16 %v1393_v28, %v1388_v30  ;;  %v7035_v32 = vpop.f32.mrb[66].mxu0 }
 0x90b   :  { %v1403_v59 = vadd.f32 %v7035_v32, %v10063_v39  ;;  %v1397_v55 = vpop.f32.mrb[67].mxu0 }
 0x90c   :  { %v1398_v61 = vadd.f32 %v1397_v55, %v10066_v41  ;;  %8743 = vmatprep.subr.bf16.mxu1 %v8742_v31 }
 0x90d   :  { %8745 = vmatpush3.bf16.msra.mxu1 %v8742_v31 }
 0x90e   :  { %v8746_v62 = vpack.c.bf16 %v1403_v59, %v1398_v61  ;;  %v7038_v58 = vpop.f32.mrb[68].mxu0  ;;  %v1772_v61 = vld [vmem:[#allocation6] sm:$0xff] }
 0x90f   :  { %v1413_v40 = vadd.f32 %v7038_v58, %v10071_v47  ;;  %v1407_v3 = vpop.f32.mrb[69].mxu0  ;;  %v1774_v58 = vld [vmem:[#allocation6 + $0x10] sm:$0xff] }
 0x910   :  { %v1408_v60 = vadd.f32 %v1407_v3, %v10074_v49  ;;  %8747 = vmatprep.subr.bf16.mxu1 %v8746_v62  ;;  %v1775_v3 = vld [vmem:[#allocation6 + $0x18] sm:$0xff] }
 0x911   :  { %8749 = vmatpush3.bf16.msra.mxu1 %v8746_v62  ;;  %v1773_v62 = vld [vmem:[#allocation6 + $0x8] sm:$0xff] }
 0x912   :  { %v8750_v5 = vpack.c.bf16 %v1413_v40, %v1408_v60  ;;  %v7041_v7 = vpop.f32.mrb[70].mxu0  ;;  %v8806_v40 = vpack.c.bf16 %v1773_v62, %v1772_v61  ;;  %v8810_v60 = vpack.c.bf16 %v1775_v3, %v1774_v58 }
 0x913   :  { %v1423_v63 = vadd.f32 %v7041_v7, %v10079_v56  ;;  %v1417_v12 = vpop.f32.mrb[71].mxu0  ;;  %v1777_v7 = vld [vmem:[#allocation6 + $0x28] sm:$0xff] }
 0x914   :  { %v1418_v1 = vadd.f32 %v1417_v12, %v10082_v57  ;;  %8751 = vmatprep.subr.bf16.mxu1 %v8750_v5  ;;  %v1778_v12 = vld [vmem:[#allocation6 + $0x30] sm:$0xff] }
 0x915   :  { %8753 = vmatpush3.bf16.msra.mxu1 %v8750_v5  ;;  %v1776_v5 = vld [vmem:[#allocation6 + $0x20] sm:$0xff] }
 0x916   :  { %v8754_v13 = vpack.c.bf16 %v1423_v63, %v1418_v1  ;;  %v7044_v15 = vpop.f32.mrb[72].mxu0  ;;  %v8814_v63 = vpack.c.bf16 %v1777_v7, %v1776_v5  ;;  %v1779_v1 = vld [vmem:[#allocation6 + $0x38] sm:$0xff] }
 0x917   :  { %v1433_v4 = vadd.f32 %v7044_v15, %v10087_v0  ;;  %v1427_v36 = vpop.f32.mrb[73].mxu0  ;;  %v1780_v15 = vld [vmem:[#allocation6 + $0x40] sm:$0xff] }
 0x918   :  { %v1428_v6 = vadd.f32 %v1427_v36, %v10090_v2  ;;  %8755 = vmatprep.subr.bf16.mxu1 %v8754_v13 }
 0x919   :  { %8757 = vmatpush3.bf16.msra.mxu1 %v8754_v13  ;;  %v8818_v13 = vpack.c.bf16 %v1779_v1, %v1778_v12 }
 0x91a   :  { %v8758_v37 = vpack.c.bf16 %v1433_v4, %v1428_v6  ;;  %v7047_v38 = vpop.f32.mrb[74].mxu0  ;;  %v1781_v4 = vld [vmem:[#allocation6 + $0x48] sm:$0xff]  ;;  %v1782_v6 = vld [vmem:[#allocation6 + $0x50] sm:$0xff] }
 0x91b   :  { %v1443_v9 = vadd.f32 %v7047_v38, %v10095_v8  ;;  %v1437_v44 = vpop.f32.mrb[75].mxu0  ;;  %v8822_v36 = vpack.c.bf16 %v1781_v4, %v1780_v15 }
 0x91c   :  { %v1438_v11 = vadd.f32 %v1437_v44, %v10098_v10  ;;  %8759 = vmatprep.subr.bf16.mxu1 %v8758_v37  ;;  %v1785_v44 = vld [vmem:[#allocation6 + $0x68] sm:$0xff] }
 0x91d   :  { %8761 = vmatpush3.bf16.msra.mxu1 %v8758_v37  ;;  %v1783_v37 = vld [vmem:[#allocation6 + $0x58] sm:$0xff] }
 0x91e   :  { %v8762_v46 = vpack.c.bf16 %v1443_v9, %v1438_v11  ;;  %v7050_v45 = vpop.f32.mrb[76].mxu0  ;;  %v8826_v38 = vpack.c.bf16 %v1783_v37, %v1782_v6  ;;  %v1784_v9 = vld [vmem:[#allocation6 + $0x60] sm:$0xff] }
 0x91f   :  { %v1453_v48 = vadd.f32 %v7050_v45, %v10103_v17  ;;  %v1447_v27 = vpop.f32.mrb[77].mxu0  ;;  %v8830_v11 = vpack.c.bf16 %v1785_v44, %v1784_v9 }
 0x920   :  { %v1448_v28 = vadd.f32 %v1447_v27, %v10106_v35  ;;  %8763 = vmatprep.subr.bf16.mxu1 %v8762_v46 }
 0x921   :  { %8765 = vmatpush3.bf16.msra.mxu1 %v8762_v46 }
 0x922   :  { %v8766_v29 = vpack.c.bf16 %v1453_v48, %v1448_v28  ;;  %v7053_v30 = vpop.f32.mrb[78].mxu0 }
 0x923   :  { %v1463_v31 = vadd.f32 %v7053_v30, %v10111_v42  ;;  %v1457_v32 = vpop.f32.mrb[79].mxu0 }
 0x924   :  { %v1458_v59 = vadd.f32 %v1457_v32, %v10114_v43  ;;  %8767 = vmatprep.subr.bf16.mxu1 %v8766_v29 }
 0x925   :  { %8769 = vmatpush3.bf16.msra.mxu1 %v8766_v29 }
 0x926   :  { %v8770_v55 = vpack.c.bf16 %v1463_v31, %v1458_v59 }
 0x928   :  { %8771 = vmatprep.subr.bf16.mxu1 %v8770_v55 }
 0x929   :  { %8773 = vmatpush3.bf16.msra.mxu1 %v8770_v55 }
 0x92a   :  { %8807 = vmatprep.subr.bf16.mxu1 %v8806_v40 }
 0x92c   :  { %7087 = vmatmul.mubr.f32.vlgmr.msra.gmra.mrb[64].mxu1 %v10312_v14 }
 0x92d   :  { %7089 = vmatprep.mubr.f32.mxu1 %v10315_v16  ;;  %8809 = vmatpush3.bf16.msra.mxu1 %v8806_v40 }
 0x92e   :  { %8811 = vmatprep.subr.bf16.mxu1 %v8810_v60 }
 0x930   :  { %7090 = vmatmul.mubr.f32.gmra.mrb[66].mxu1 %v10318_v51 }
 0x931   :  { %7092 = vmatprep.mubr.f32.mxu1 %v10321_v50  ;;  %8813 = vmatpush3.bf16.msra.mxu1 %v8810_v60 }
 0x932   :  { %8815 = vmatprep.subr.bf16.mxu1 %v8814_v63 }
 0x934   :  { %7093 = vmatmul.mubr.f32.gmra.mrb[68].mxu1 %v10324_v52 }
 0x935   :  { %7095 = vmatprep.mubr.f32.mxu1 %v10327_v54  ;;  %8817 = vmatpush3.bf16.msra.mxu1 %v8814_v63 }
 0x936   :  { %8819 = vmatprep.subr.bf16.mxu1 %v8818_v13 }
 0x938   :  { %7096 = vmatmul.mubr.f32.gmra.mrb[70].mxu1 %v10330_v53 }
 0x939   :  { %7098 = vmatprep.mubr.f32.mxu1 %v10333_v19  ;;  %8821 = vmatpush3.bf16.msra.mxu1 %v8818_v13 }
 0x93a   :  { %8823 = vmatprep.subr.bf16.mxu1 %v8822_v36 }
 0x93c   :  { %7099 = vmatmul.mubr.f32.gmra.mrb[72].mxu1 %v10336_v20 }
 0x93d   :  { %7101 = vmatprep.mubr.f32.mxu1 %v10339_v21  ;;  %8825 = vmatpush3.bf16.msra.mxu1 %v8822_v36 }
 0x93e   :  { %8827 = vmatprep.subr.bf16.mxu1 %v8826_v38 }
 0x940   :  { %7102 = vmatmul.mubr.f32.gmra.mrb[74].mxu1 %v10342_v22 }
 0x941   :  { %7104 = vmatprep.mubr.f32.mxu1 %v10345_v23  ;;  %8829 = vmatpush3.bf16.msra.mxu1 %v8826_v38 }
 0x942   :  { %8831 = vmatprep.subr.bf16.mxu1 %v8830_v11 }
 0x944   :  { %7105 = vmatmul.mubr.f32.gmra.mrb[76].mxu1 %v10348_v24 }
 0x945   :  { %7107 = vmatprep.mubr.f32.mxu1 %v10351_v25  ;;  %8833 = vmatpush3.bf16.msra.mxu1 %v8830_v11 }
 0x948   :  { %7108 = vmatmul.mubr.f32.gmra.mrb[78].mxu1 %v10354_v26 }
 0x9ff   :  { %v7088_v46 = vpop.f32.mrb[64].mxu1 }
 0xa00   :  { %v1538_v45 = vadd.f32 %v7088_v46, %v10055_v33  ;;  %v1532_v48 = vpop.f32.mrb[65].mxu1 }
 0xa01   :  { %v1533_v27 = vadd.f32 %v1532_v48, %v10058_v34 }
 0xa03   :  { %v8774_v28 = vpack.c.bf16 %v1538_v45, %v1533_v27  ;;  %v7091_v29 = vpop.f32.mrb[66].mxu1 }
 0xa04   :  { %v1548_v30 = vadd.f32 %v7091_v29, %v10063_v39  ;;  %v1542_v31 = vpop.f32.mrb[67].mxu1 }
 0xa05   :  { %v1543_v32 = vadd.f32 %v1542_v31, %v10066_v41  ;;  %8775 = vmatprep.subr.bf16.mxu0 %v8774_v28 }
 0xa06   :  { %8777 = vmatpush3.bf16.msra.mxu0 %v8774_v28 }
 0xa07   :  { %v8778_v59 = vpack.c.bf16 %v1548_v30, %v1543_v32  ;;  %v7094_v55 = vpop.f32.mrb[68].mxu1  ;;  %v1786_v32 = vld [vmem:[#allocation6 + $0x70] sm:$0xff] }
 0xa08   :  { %v1558_v61 = vadd.f32 %v7094_v55, %v10071_v47  ;;  %v1552_v62 = vpop.f32.mrb[69].mxu1 }
 0xa09   :  { %v1553_v58 = vadd.f32 %v1552_v62, %v10074_v49  ;;  %8779 = vmatprep.subr.bf16.mxu0 %v8778_v59 }
 0xa0a   :  { %8781 = vmatpush3.bf16.msra.mxu0 %v8778_v59  ;;  %v1787_v59 = vld [vmem:[#allocation6 + $0x78] sm:$0xff] }
 0xa0b   :  { %v8782_v40 = vpack.c.bf16 %v1558_v61, %v1553_v58  ;;  %v7097_v3 = vpop.f32.mrb[70].mxu1  ;;  %v8834_v55 = vpack.c.bf16 %v1787_v59, %v1786_v32 }
 0xa0c   :  { %v1568_v60 = vadd.f32 %v7097_v3, %v10079_v56  ;;  %v1562_v5 = vpop.f32.mrb[71].mxu1 }
 0xa0d   :  { %v1563_v7 = vadd.f32 %v1562_v5, %v10082_v57  ;;  %8783 = vmatprep.subr.bf16.mxu0 %v8782_v40  ;;  %8835 = vmatprep.subr.bf16.mxu1 %v8834_v55 }
 0xa0e   :  { %8785 = vmatpush3.bf16.msra.mxu0 %v8782_v40  ;;  %8837 = vmatpush3.bf16.msra.mxu1 %v8834_v55 }
 0xa0f   :  { %v8786_v63 = vpack.c.bf16 %v1568_v60, %v1563_v7  ;;  %v7100_v12 = vpop.f32.mrb[72].mxu1 }
 0xa10   :  { %v1578_v1 = vadd.f32 %v7100_v12, %v10087_v0  ;;  %v1572_v13 = vpop.f32.mrb[73].mxu1 }
 0xa11   :  { %v1573_v15 = vadd.f32 %v1572_v13, %v10090_v2  ;;  %8787 = vmatprep.subr.bf16.mxu0 %v8786_v63 }
 0xa12   :  { %8789 = vmatpush3.bf16.msra.mxu0 %v8786_v63 }
 0xa13   :  { %v8790_v4 = vpack.c.bf16 %v1578_v1, %v1573_v15  ;;  %v7103_v36 = vpop.f32.mrb[74].mxu1 }
 0xa14   :  { %v1588_v6 = vadd.f32 %v7103_v36, %v10095_v8  ;;  %v1582_v37 = vpop.f32.mrb[75].mxu1 }
 0xa15   :  { %v1583_v38 = vadd.f32 %v1582_v37, %v10098_v10  ;;  %8791 = vmatprep.subr.bf16.mxu0 %v8790_v4 }
 0xa16   :  { %8793 = vmatpush3.bf16.msra.mxu0 %v8790_v4 }
 0xa17   :  { %v8794_v9 = vpack.c.bf16 %v1588_v6, %v1583_v38  ;;  %v7106_v44 = vpop.f32.mrb[76].mxu1 }
 0xa18   :  { %v1598_v11 = vadd.f32 %v7106_v44, %v10103_v17  ;;  %v1592_v46 = vpop.f32.mrb[77].mxu1 }
 0xa19   :  { %v1593_v45 = vadd.f32 %v1592_v46, %v10106_v35  ;;  %8795 = vmatprep.subr.bf16.mxu0 %v8794_v9 }
 0xa1a   :  { %8797 = vmatpush3.bf16.msra.mxu0 %v8794_v9 }
 0xa1b   :  { %v8798_v48 = vpack.c.bf16 %v1598_v11, %v1593_v45  ;;  %v7109_v27 = vpop.f32.mrb[78].mxu1 }
 0xa1c   :  { %v1608_v28 = vadd.f32 %v7109_v27, %v10111_v42  ;;  %v1602_v29 = vpop.f32.mrb[79].mxu1 }
 0xa1d   :  { %v1603_v30 = vadd.f32 %v1602_v29, %v10114_v43  ;;  %8799 = vmatprep.subr.bf16.mxu0 %v8798_v48 }
 0xa1e   :  { %8801 = vmatpush3.bf16.msra.mxu0 %v8798_v48 }
 0xa1f   :  { %v8802_v31 = vpack.c.bf16 %v1608_v28, %v1603_v30 }
 0xa21   :  { %8803 = vmatprep.subr.bf16.mxu0 %v8802_v31 }
 0xa22   :  { %8805 = vmatpush3.bf16.msra.mxu0 %v8802_v31 }
 0xa25   :  { %7143 = vmatmul.mubr.f32.vlgmr.msra.gmra.mrb[80].mxu0 %v10312_v14 }
 0xa26   :  { %7145 = vmatprep.mubr.f32.mxu0 %v10315_v16 }
 0xa29   :  { %7146 = vmatmul.mubr.f32.gmra.mrb[82].mxu0 %v10318_v51 }
 0xa2a   :  { %7148 = vmatprep.mubr.f32.mxu0 %v10321_v50 }
 0xa2d   :  { %7149 = vmatmul.mubr.f32.gmra.mrb[84].mxu0 %v10324_v52 }
 0xa2e   :  { %7151 = vmatprep.mubr.f32.mxu0 %v10327_v54 }
 0xa31   :  { %7152 = vmatmul.mubr.f32.gmra.mrb[86].mxu0 %v10330_v53 }
 0xa32   :  { %7154 = vmatprep.mubr.f32.mxu0 %v10333_v19 }
 0xa35   :  { %7155 = vmatmul.mubr.f32.gmra.mrb[88].mxu0 %v10336_v20 }
 0xa36   :  { %7157 = vmatprep.mubr.f32.mxu0 %v10339_v21 }
 0xa39   :  { %7158 = vmatmul.mubr.f32.gmra.mrb[90].mxu0 %v10342_v22 }
 0xa3a   :  { %7160 = vmatprep.mubr.f32.mxu0 %v10345_v23 }
 0xa3d   :  { %7161 = vmatmul.mubr.f32.gmra.mrb[92].mxu0 %v10348_v24 }
 0xa3e   :  { %7163 = vmatprep.mubr.f32.mxu0 %v10351_v25 }
 0xa41   :  { %7164 = vmatmul.mubr.f32.gmra.mrb[94].mxu0 %v10354_v26 }
 0xa42   :  { %7254 = vmatprep.mubr.f32.mxu0 %v10293_v18 }
 0xaf8   :  { %v7144_v61 = vpop.f32.mrb[80].mxu0 }
 0xaf9   :  { %v1683_v62 = vadd.f32 %v7144_v61, %v10055_v33  ;;  %v1677_v58 = vpop.f32.mrb[81].mxu0 }
 0xafa   :  { %v1678_v40 = vadd.f32 %v1677_v58, %v10058_v34 }
 0xafb   :  { %v1757_v5 = vmax.f32 %v1683_v62, 0.0 }
 0xafc   :  { %v1756_v3 = vmax.f32 %v1678_v40, 0.0  ;;  %v7147_v60 = vpop.f32.mrb[82].mxu0 }
 0xafd   :  { %v1693_v7 = vadd.f32 %v7147_v60, %v10063_v39  ;;  %v1687_v63 = vpop.f32.mrb[83].mxu0 }
 0xafe   :  { %v1688_v12 = vadd.f32 %v1687_v63, %v10066_v41  ;;  %7198 = vmatprep.mubr.f32.mxu1 %v1756_v3 }
 0xaff   :  { %7199 = vmatmul.mubr.f32.vlgmr.msra.gmra.mrb[80].mxu1 %v1757_v5  ;;  %v1759_v15 = vmax.f32 %v1693_v7, 0.0 }
 0xb00   :  { %v1758_v1 = vmax.f32 %v1688_v12, 0.0  ;;  %v7150_v13 = vpop.f32.mrb[84].mxu0 }
 0xb01   :  { %v1703_v4 = vadd.f32 %v7150_v13, %v10071_v47  ;;  %v1697_v36 = vpop.f32.mrb[85].mxu0 }
 0xb02   :  { %v1698_v33 = vadd.f32 %v1697_v36, %v10074_v49  ;;  %7201 = vmatprep.mubr.f32.mxu1 %v1758_v1 }
 0xb03   :  { %7202 = vmatmul.mubr.f32.gmra.mrb[82].mxu1 %v1759_v15  ;;  %v1761_v37 = vmax.f32 %v1703_v4, 0.0 }
 0xb04   :  { %v1760_v34 = vmax.f32 %v1698_v33, 0.0  ;;  %v7153_v6 = vpop.f32.mrb[86].mxu0 }
 0xb05   :  { %v1713_v39 = vadd.f32 %v7153_v6, %v10079_v56  ;;  %v1707_v38 = vpop.f32.mrb[87].mxu0 }
 0xb06   :  { %v1708_v41 = vadd.f32 %v1707_v38, %v10082_v57  ;;  %7204 = vmatprep.mubr.f32.mxu1 %v1760_v34 }
 0xb07   :  { %7205 = vmatmul.mubr.f32.gmra.mrb[84].mxu1 %v1761_v37  ;;  %v1763_v11 = vmax.f32 %v1713_v39, 0.0 }
 0xb08   :  { %v1762_v9 = vmax.f32 %v1708_v41, 0.0  ;;  %v7156_v44 = vpop.f32.mrb[88].mxu0 }
 0xb09   :  { %v1723_v47 = vadd.f32 %v7156_v44, %v10087_v0  ;;  %v1717_v46 = vpop.f32.mrb[89].mxu0 }
 0xb0a   :  { %v1718_v49 = vadd.f32 %v1717_v46, %v10090_v2  ;;  %7207 = vmatprep.mubr.f32.mxu1 %v1762_v9 }
 0xb0b   :  { %7208 = vmatmul.mubr.f32.gmra.mrb[86].mxu1 %v1763_v11  ;;  %v1765_v27 = vmax.f32 %v1723_v47, 0.0 }
 0xb0c   :  { %v1764_v45 = vmax.f32 %v1718_v49, 0.0  ;;  %v7159_v48 = vpop.f32.mrb[90].mxu0 }
 0xb0d   :  { %v1733_v56 = vadd.f32 %v7159_v48, %v10095_v8  ;;  %v1727_v28 = vpop.f32.mrb[91].mxu0 }
 0xb0e   :  { %v1728_v57 = vadd.f32 %v1727_v28, %v10098_v10  ;;  %7210 = vmatprep.mubr.f32.mxu1 %v1764_v45 }
 0xb0f   :  { %7211 = vmatmul.mubr.f32.gmra.mrb[88].mxu1 %v1765_v27  ;;  %v1767_v31 = vmax.f32 %v1733_v56, 0.0 }
 0xb10   :  { %v1766_v29 = vmax.f32 %v1728_v57, 0.0  ;;  %v7162_v30 = vpop.f32.mrb[92].mxu0 }
 0xb11   :  { %v1743_v0 = vadd.f32 %v7162_v30, %v10103_v17  ;;  %v1737_v32 = vpop.f32.mrb[93].mxu0  ;;  %v5459_v17 = vld [vmem:[%s11633_s5] ss:$0 sm:$0xff] }
 0xb12   :  { %v1738_v2 = vadd.f32 %v1737_v32, %v10106_v35  ;;  %7213 = vmatprep.mubr.f32.mxu1 %v1766_v29 }
 0xb13   :  { %7214 = vmatmul.mubr.f32.gmra.mrb[90].mxu1 %v1767_v31  ;;  %v1769_v61 = vmax.f32 %v1743_v0, 0.0 }
 0xb14   :  { %v1768_v59 = vmax.f32 %v1738_v2, 0.0  ;;  %v7165_v55 = vpop.f32.mrb[94].mxu0 }
 0xb15   :  { %v1753_v8 = vadd.f32 %v7165_v55, %v10111_v42  ;;  %v1747_v62 = vpop.f32.mrb[95].mxu0 }
 0xb16   :  { %v1748_v10 = vadd.f32 %v1747_v62, %v10114_v43  ;;  %7216 = vmatprep.mubr.f32.mxu1 %v1768_v59 }
 0xb17   :  { %7217 = vmatmul.mubr.f32.gmra.mrb[92].mxu1 %v1769_v61  ;;  %v1771_v40 = vmax.f32 %v1753_v8, 0.0 }
 0xb18   :  { %v1770_v58 = vmax.f32 %v1748_v10, 0.0 }
 0xb1a   :  { %7219 = vmatprep.mubr.f32.mxu1 %v1770_v58 }
 0xb1b   :  { %7220 = vmatmul.mubr.f32.gmra.mrb[94].mxu1 %v1771_v40 }
 0xb1c   :  { %7310 = vmatprep.mubr.f32.mxu1 %v10293_v18 }
 0xbd2   :  { %v7200_v35 = vpop.f32.mrb[80].mxu1 }
 0xbd3   :  { %v10441_v3 = vadd.f32 %v7200_v35, %v5459_v17  ;;  %v1861_v60 = vpop.f32.mrb[81].mxu1 }
 0xbd4   :  { %v10443_v42 = vadd.f32 %v5459_v17, %v1861_v60 }
 0xbd5   :  { %v10506_v55 = vmul.f32 0.1, %v10441_v3 }
 0xbd6   :  { %v8838_v43 = vpack.c.bf16 %v10441_v3, %v10443_v42  ;;  %v7203_v5 = vpop.f32.mrb[82].mxu1  ;;  %v10509_v61 = vmul.f32 0.1, %v10443_v42 }
 0xbd7   :  { %v10447_v7 = vadd.f32 %v7203_v5, %v5459_v17  ;;  %v1871_v63 = vpop.f32.mrb[83].mxu1 }
 0xbd8   :  { %v10449_v12 = vadd.f32 %v5459_v17, %v1871_v63  ;;  %8839 = vmatprep.subr.bf16.mxu0 %v8838_v43 }
 0xbd9   :  { %8841 = vmatpush3.bf16.msra.mxu0 %v8838_v43  ;;  %v10514_v40 = vmul.f32 0.1, %v10447_v7 }
 0xbda   :  { %v8842_v1 = vpack.c.bf16 %v10447_v7, %v10449_v12  ;;  %v7206_v13 = vpop.f32.mrb[84].mxu1 }
 0xbdb   :  { %v10453_v15 = vadd.f32 %v7206_v13, %v5459_v17  ;;  %v1881_v4 = vpop.f32.mrb[85].mxu1 }
 0xbdc   :  { %v10455_v36 = vadd.f32 %v5459_v17, %v1881_v4  ;;  %8843 = vmatprep.subr.bf16.mxu0 %v8842_v1 }
 0xbdd   :  { %8845 = vmatpush3.bf16.msra.mxu0 %v8842_v1  ;;  %v10522_v5 = vmul.f32 0.1, %v10453_v15 }
 0xbde   :  { %v8846_v33 = vpack.c.bf16 %v10453_v15, %v10455_v36  ;;  %v7209_v34 = vpop.f32.mrb[86].mxu1  ;;  %v10525_v63 = vmul.f32 0.1, %v10455_v36 }
 0xbdf   :  { %v10459_v6 = vadd.f32 %v7209_v34, %v5459_v17  ;;  %v1891_v37 = vpop.f32.mrb[87].mxu1 }
 0xbe0   :  { %v10461_v39 = vadd.f32 %v5459_v17, %v1891_v37  ;;  %8847 = vmatprep.subr.bf16.mxu0 %v8846_v33 }
 0xbe1   :  { %8849 = vmatpush3.bf16.msra.mxu0 %v8846_v33  ;;  %v10530_v33 = vmul.f32 0.1, %v10459_v6 }
 0xbe2   :  { %v8850_v38 = vpack.c.bf16 %v10459_v6, %v10461_v39  ;;  %v7212_v41 = vpop.f32.mrb[88].mxu1  ;;  %v10533_v34 = vmul.f32 0.1, %v10461_v39 }
 0xbe3   :  { %v10465_v9 = vadd.f32 %v7212_v41, %v5459_v17  ;;  %v1901_v44 = vpop.f32.mrb[89].mxu1 }
 0xbe4   :  { %v10467_v11 = vadd.f32 %v5459_v17, %v1901_v44  ;;  %8851 = vmatprep.subr.bf16.mxu0 %v8850_v38 }
 0xbe5   :  { %8853 = vmatpush3.bf16.msra.mxu0 %v8850_v38  ;;  %v10538_v44 = vmul.f32 0.1, %v10465_v9 }
 0xbe6   :  { %v8854_v47 = vpack.c.bf16 %v10465_v9, %v10467_v11  ;;  %v7215_v46 = vpop.f32.mrb[90].mxu1 }
 0xbe7   :  { %v10471_v49 = vadd.f32 %v7215_v46, %v5459_v17  ;;  %v1911_v45 = vpop.f32.mrb[91].mxu1 }
 0xbe8   :  { %v10473_v48 = vadd.f32 %v5459_v17, %v1911_v45  ;;  %8855 = vmatprep.subr.bf16.mxu0 %v8854_v47 }
 0xbe9   :  { %8857 = vmatpush3.bf16.msra.mxu0 %v8854_v47  ;;  %v10541_v47 = vmul.f32 0.1, %v10467_v11 }
 0xbea   :  { %v8858_v27 = vpack.c.bf16 %v10471_v49, %v10473_v48  ;;  %v7218_v56 = vpop.f32.mrb[92].mxu1 }
 0xbeb   :  { %v10477_v28 = vadd.f32 %v7218_v56, %v5459_v17  ;;  %v1921_v57 = vpop.f32.mrb[93].mxu1  ;;  %v10546_v56 = vmul.f32 0.1, %v10471_v49 }
 0xbec   :  { %v10479_v29 = vadd.f32 %v5459_v17, %v1921_v57  ;;  %8859 = vmatprep.subr.bf16.mxu0 %v8858_v27  ;;  %v10549_v57 = vmul.f32 0.1, %v10473_v48 }
 0xbed   :  { %8861 = vmatpush3.bf16.msra.mxu0 %v8858_v27 }
 0xbee   :  { %v8862_v30 = vpack.c.bf16 %v10477_v28, %v10479_v29  ;;  %v7221_v31 = vpop.f32.mrb[94].mxu1 }
 0xbef   :  { %v10483_v0 = vadd.f32 %v7221_v31, %v5459_v17  ;;  %v1931_v32 = vpop.f32.mrb[95].mxu1 }
 0xbf0   :  { %v10485_v2 = vadd.f32 %v5459_v17, %v1931_v32  ;;  %8863 = vmatprep.subr.bf16.mxu0 %v8862_v30  ;;  %v10517_v17 = vmul.f32 0.1, %v10449_v12 }
 0xbf1   :  { %8865 = vmatpush3.bf16.msra.mxu0 %v8862_v30 }
 0xbf2   :  { %v8866_v59 = vpack.c.bf16 %v10483_v0, %v10485_v2 }
 0xbf4   :  { %8867 = vmatprep.subr.bf16.mxu0 %v8866_v59 }
 0xbf5   :  { %8869 = vmatpush3.bf16.msra.mxu0 %v8866_v59  ;;  %v10554_v59 = vmul.f32 0.1, %v10477_v28 }
 0xbf8   :  { %7255 = vmatmul.mubr.f32.vlgmr.msra.gmra.mrb[96].mxu0 %v10312_v14 }
 0xbf9   :  { %7257 = vmatprep.mubr.f32.mxu0 %v10315_v16 }
 0xbfc   :  { %7258 = vmatmul.mubr.f32.gmra.mrb[98].mxu0 %v10318_v51 }
 0xbfd   :  { %7260 = vmatprep.mubr.f32.mxu0 %v10321_v50 }
 0xc00   :  { %7261 = vmatmul.mubr.f32.gmra.mrb[100].mxu0 %v10324_v52 }
 0xc01   :  { %7263 = vmatprep.mubr.f32.mxu0 %v10327_v54 }
 0xc04   :  { %7264 = vmatmul.mubr.f32.gmra.mrb[102].mxu0 %v10330_v53 }
 0xc05   :  { %7266 = vmatprep.mubr.f32.mxu0 %v10333_v19 }
 0xc08   :  { %7267 = vmatmul.mubr.f32.gmra.mrb[104].mxu0 %v10336_v20 }
 0xc09   :  { %7269 = vmatprep.mubr.f32.mxu0 %v10339_v21 }
 0xc0c   :  { %7270 = vmatmul.mubr.f32.gmra.mrb[106].mxu0 %v10342_v22 }
 0xc0d   :  { %7272 = vmatprep.mubr.f32.mxu0 %v10345_v23 }
 0xc10   :  { %7273 = vmatmul.mubr.f32.gmra.mrb[108].mxu0 %v10348_v24 }
 0xc11   :  { %7275 = vmatprep.mubr.f32.mxu0 %v10351_v25 }
 0xc14   :  { %7276 = vmatmul.mubr.f32.gmra.mrb[110].mxu0 %v10354_v26 }
 0xc15   :  { %7366 = vmatprep.mubr.f32.mxu0 %v10293_v18 }
 0xccb   :  { %v7256_v8 = vpop.f32.mrb[96].mxu0 }
 0xccc   :  { %v2028_v62 = vadd.f32 %v7256_v8, %v10506_v55  ;;  %v2022_v10 = vpop.f32.mrb[97].mxu0  ;;  %v10557_v8 = vmul.f32 0.1, %v10479_v29 }
 0xccd   :  { %v2023_v58 = vadd.f32 %v2022_v10, %v10509_v61 }
 0xccf   :  { %v8870_v35 = vpack.c.bf16 %v2028_v62, %v2023_v58  ;;  %v7259_v60 = vpop.f32.mrb[98].mxu0 }
 0xcd0   :  { %v2038_v3 = vadd.f32 %v7259_v60, %v10514_v40  ;;  %v2032_v43 = vpop.f32.mrb[99].mxu0  ;;  %v10565_v60 = vmul.f32 0.1, %v10485_v2 }
 0xcd1   :  { %v2033_v42 = vadd.f32 %v2032_v43, %v10517_v17  ;;  %8871 = vmatprep.subr.bf16.mxu1 %v8870_v35 }
 0xcd2   :  { %8873 = vmatpush3.bf16.msra.mxu1 %v8870_v35  ;;  %v10562_v35 = vmul.f32 0.1, %v10483_v0 }
 0xcd3   :  { %v8874_v7 = vpack.c.bf16 %v2038_v3, %v2033_v42  ;;  %v7262_v1 = vpop.f32.mrb[100].mxu0 }
 0xcd4   :  { %v2048_v12 = vadd.f32 %v7262_v1, %v10522_v5  ;;  %v2042_v13 = vpop.f32.mrb[101].mxu0 }
 0xcd5   :  { %v2043_v4 = vadd.f32 %v2042_v13, %v10525_v63  ;;  %8875 = vmatprep.subr.bf16.mxu1 %v8874_v7 }
 0xcd6   :  { %8877 = vmatpush3.bf16.msra.mxu1 %v8874_v7 }
 0xcd7   :  { %v8878_v15 = vpack.c.bf16 %v2048_v12, %v2043_v4  ;;  %v7265_v37 = vpop.f32.mrb[102].mxu0 }
 0xcd8   :  { %v2058_v36 = vadd.f32 %v7265_v37, %v10530_v33  ;;  %v2052_v38 = vpop.f32.mrb[103].mxu0 }
 0xcd9   :  { %v2053_v41 = vadd.f32 %v2052_v38, %v10533_v34  ;;  %8879 = vmatprep.subr.bf16.mxu1 %v8878_v15 }
 0xcda   :  { %8881 = vmatpush3.bf16.msra.mxu1 %v8878_v15 }
 0xcdb   :  { %v8882_v6 = vpack.c.bf16 %v2058_v36, %v2053_v41  ;;  %v7268_v46 = vpop.f32.mrb[104].mxu0 }
 0xcdc   :  { %v2068_v39 = vadd.f32 %v7268_v46, %v10538_v44  ;;  %v2062_v45 = vpop.f32.mrb[105].mxu0 }
 0xcdd   :  { %v2063_v27 = vadd.f32 %v2062_v45, %v10541_v47  ;;  %8883 = vmatprep.subr.bf16.mxu1 %v8882_v6 }
 0xcde   :  { %8885 = vmatpush3.bf16.msra.mxu1 %v8882_v6 }
 0xcdf   :  { %v8886_v9 = vpack.c.bf16 %v2068_v39, %v2063_v27  ;;  %v7271_v30 = vpop.f32.mrb[106].mxu0 }
 0xce0   :  { %v2078_v11 = vadd.f32 %v7271_v30, %v10546_v56  ;;  %v2072_v31 = vpop.f32.mrb[107].mxu0 }
 0xce1   :  { %v2073_v32 = vadd.f32 %v2072_v31, %v10549_v57  ;;  %8887 = vmatprep.subr.bf16.mxu1 %v8886_v9 }
 0xce2   :  { %8889 = vmatpush3.bf16.msra.mxu1 %v8886_v9 }
 0xce3   :  { %v8890_v49 = vpack.c.bf16 %v2078_v11, %v2073_v32  ;;  %v7274_v62 = vpop.f32.mrb[108].mxu0 }
 0xce4   :  { %v2088_v48 = vadd.f32 %v7274_v62, %v10554_v59  ;;  %v2082_v10 = vpop.f32.mrb[109].mxu0 }
 0xce5   :  { %v2083_v58 = vadd.f32 %v2082_v10, %v10557_v8  ;;  %8891 = vmatprep.subr.bf16.mxu1 %v8890_v49 }
 0xce6   :  { %8893 = vmatpush3.bf16.msra.mxu1 %v8890_v49 }
 0xce7   :  { %v8894_v28 = vpack.c.bf16 %v2088_v48, %v2083_v58  ;;  %v7277_v3 = vpop.f32.mrb[110].mxu0 }
 0xce8   :  { %v2098_v29 = vadd.f32 %v7277_v3, %v10562_v35  ;;  %v2092_v43 = vpop.f32.mrb[111].mxu0 }
 0xce9   :  { %v2093_v42 = vadd.f32 %v2092_v43, %v10565_v60  ;;  %8895 = vmatprep.subr.bf16.mxu1 %v8894_v28 }
 0xcea   :  { %8897 = vmatpush3.bf16.msra.mxu1 %v8894_v28 }
 0xceb   :  { %v8898_v7 = vpack.c.bf16 %v2098_v29, %v2093_v42 }
 0xced   :  { %8899 = vmatprep.subr.bf16.mxu1 %v8898_v7 }
 0xcee   :  { %8901 = vmatpush3.bf16.msra.mxu1 %v8898_v7 }
 0xcf1   :  { %7311 = vmatmul.mubr.f32.vlgmr.msra.gmra.mrb[96].mxu1 %v10312_v14 }
 0xcf2   :  { %7313 = vmatprep.mubr.f32.mxu1 %v10315_v16 }
 0xcf5   :  { %7314 = vmatmul.mubr.f32.gmra.mrb[98].mxu1 %v10318_v51 }
 0xcf6   :  { %7316 = vmatprep.mubr.f32.mxu1 %v10321_v50 }
 0xcf9   :  { %7317 = vmatmul.mubr.f32.gmra.mrb[100].mxu1 %v10324_v52 }
 0xcfa   :  { %7319 = vmatprep.mubr.f32.mxu1 %v10327_v54 }
 0xcfd   :  { %7320 = vmatmul.mubr.f32.gmra.mrb[102].mxu1 %v10330_v53 }
 0xcfe   :  { %7322 = vmatprep.mubr.f32.mxu1 %v10333_v19 }
 0xd01   :  { %7323 = vmatmul.mubr.f32.gmra.mrb[104].mxu1 %v10336_v20 }
 0xd02   :  { %7325 = vmatprep.mubr.f32.mxu1 %v10339_v21 }
 0xd05   :  { %7326 = vmatmul.mubr.f32.gmra.mrb[106].mxu1 %v10342_v22 }
 0xd06   :  { %7328 = vmatprep.mubr.f32.mxu1 %v10345_v23 }
 0xd09   :  { %7329 = vmatmul.mubr.f32.gmra.mrb[108].mxu1 %v10348_v24 }
 0xd0a   :  { %7331 = vmatprep.mubr.f32.mxu1 %v10351_v25 }
 0xd0d   :  { %7332 = vmatmul.mubr.f32.gmra.mrb[110].mxu1 %v10354_v26 }
 0xd0e   :  { %7422 = vmatprep.mubr.f32.mxu1 %v10293_v18 }
 0xdc4   :  { %v7312_v0 = vpop.f32.mrb[96].mxu1 }
 0xdc5   :  { %v2173_v2 = vadd.f32 %v7312_v0, %v10506_v55  ;;  %v2167_v1 = vpop.f32.mrb[97].mxu1 }
 0xdc6   :  { %v2168_v12 = vadd.f32 %v2167_v1, %v10509_v61 }
 0xdc8   :  { %v8902_v13 = vpack.c.bf16 %v2173_v2, %v2168_v12  ;;  %v7315_v4 = vpop.f32.mrb[98].mxu1 }
 0xdc9   :  { %v2183_v15 = vadd.f32 %v7315_v4, %v10514_v40  ;;  %v2177_v37 = vpop.f32.mrb[99].mxu1 }
 0xdca   :  { %v2178_v36 = vadd.f32 %v2177_v37, %v10517_v17  ;;  %8903 = vmatprep.subr.bf16.mxu0 %v8902_v13 }
 0xdcb   :  { %8905 = vmatpush3.bf16.msra.mxu0 %v8902_v13 }
 0xdcc   :  { %v8906_v38 = vpack.c.bf16 %v2183_v15, %v2178_v36  ;;  %v7318_v41 = vpop.f32.mrb[100].mxu1 }
 0xdcd   :  { %v2193_v6 = vadd.f32 %v7318_v41, %v10522_v5  ;;  %v2187_v18 = vpop.f32.mrb[101].mxu1 }
 0xdce   :  { %v2188_v46 = vadd.f32 %v2187_v18, %v10525_v63  ;;  %8907 = vmatprep.subr.bf16.mxu0 %v8906_v38 }
 0xdcf   :  { %8909 = vmatpush3.bf16.msra.mxu0 %v8906_v38 }
 0xdd0   :  { %v8910_v39 = vpack.c.bf16 %v2193_v6, %v2188_v46  ;;  %v7321_v45 = vpop.f32.mrb[102].mxu1 }
 0xdd1   :  { %v2203_v27 = vadd.f32 %v7321_v45, %v10530_v33  ;;  %v2197_v9 = vpop.f32.mrb[103].mxu1 }
 0xdd2   :  { %v2198_v30 = vadd.f32 %v2197_v9, %v10533_v34  ;;  %8911 = vmatprep.subr.bf16.mxu0 %v8910_v39 }
 0xdd3   :  { %8913 = vmatpush3.bf16.msra.mxu0 %v8910_v39 }
 0xdd4   :  { %v8914_v11 = vpack.c.bf16 %v2203_v27, %v2198_v30  ;;  %v7324_v31 = vpop.f32.mrb[104].mxu1 }
 0xdd5   :  { %v2213_v32 = vadd.f32 %v7324_v31, %v10538_v44  ;;  %v2207_v49 = vpop.f32.mrb[105].mxu1 }
 0xdd6   :  { %v2208_v62 = vadd.f32 %v2207_v49, %v10541_v47  ;;  %8915 = vmatprep.subr.bf16.mxu0 %v8914_v11 }
 0xdd7   :  { %8917 = vmatpush3.bf16.msra.mxu0 %v8914_v11 }
 0xdd8   :  { %v8918_v48 = vpack.c.bf16 %v2213_v32, %v2208_v62  ;;  %v7327_v10 = vpop.f32.mrb[106].mxu1 }
 0xdd9   :  { %v2223_v58 = vadd.f32 %v7327_v10, %v10546_v56  ;;  %v2217_v28 = vpop.f32.mrb[107].mxu1 }
 0xdda   :  { %v2218_v3 = vadd.f32 %v2217_v28, %v10549_v57  ;;  %8919 = vmatprep.subr.bf16.mxu0 %v8918_v48 }
 0xddb   :  { %8921 = vmatpush3.bf16.msra.mxu0 %v8918_v48 }
 0xddc   :  { %v8922_v29 = vpack.c.bf16 %v2223_v58, %v2218_v3  ;;  %v7330_v43 = vpop.f32.mrb[108].mxu1 }
 0xddd   :  { %v2233_v42 = vadd.f32 %v7330_v43, %v10554_v59  ;;  %v2227_v7 = vpop.f32.mrb[109].mxu1 }
 0xdde   :  { %v2228_v0 = vadd.f32 %v2227_v7, %v10557_v8  ;;  %8923 = vmatprep.subr.bf16.mxu0 %v8922_v29 }
 0xddf   :  { %8925 = vmatpush3.bf16.msra.mxu0 %v8922_v29 }
 0xde0   :  { %v8926_v2 = vpack.c.bf16 %v2233_v42, %v2228_v0  ;;  %v7333_v1 = vpop.f32.mrb[110].mxu1  ;;  %v10635_v0 = vld [vmem:[#allocation2 + $0x8] sm:$0xff] }
 0xde1   :  { %v2243_v12 = vadd.f32 %v7333_v1, %v10562_v35  ;;  %v2237_v13 = vpop.f32.mrb[111].mxu1  ;;  %v10641_v1 = vld [vmem:[#allocation2 + $0x18] sm:$0xff] }
 0xde2   :  { %v2238_v4 = vadd.f32 %v2237_v13, %v10565_v60  ;;  %8927 = vmatprep.subr.bf16.mxu0 %v8926_v2  ;;  %v10647_v13 = vld [vmem:[#allocation2 + $0x28] sm:$0xff] }
 0xde3   :  { %8929 = vmatpush3.bf16.msra.mxu0 %v8926_v2  ;;  %v10638_v2 = vld [vmem:[#allocation2 + $0x10] sm:$0xff] }
 0xde4   :  { %v8930_v15 = vpack.c.bf16 %v2243_v12, %v2238_v4  ;;  %v10644_v12 = vld [vmem:[#allocation2 + $0x20] sm:$0xff]  ;;  %v10650_v4 = vld [vmem:[#allocation2 + $0x30] sm:$0xff] }
 0xde6   :  { %8931 = vmatprep.subr.bf16.mxu0 %v8930_v15 }
 0xde7   :  { %8933 = vmatpush3.bf16.msra.mxu0 %v8930_v15  ;;  %v10653_v15 = vld [vmem:[#allocation2 + $0x38] sm:$0xff] }
 0xdea   :  { %7367 = vmatmul.mubr.f32.vlgmr.msra.gmra.mrb[112].mxu0 %v10312_v14  ;;  %v10616_v14 = vld [vmem:[#allocation2] sm:$0xff] }
 0xdeb   :  { %7369 = vmatprep.mubr.f32.mxu0 %v10315_v16 }
 0xdee   :  { %7370 = vmatmul.mubr.f32.gmra.mrb[114].mxu0 %v10318_v51 }
 0xdef   :  { %7372 = vmatprep.mubr.f32.mxu0 %v10321_v50 }
 0xdf2   :  { %7373 = vmatmul.mubr.f32.gmra.mrb[116].mxu0 %v10324_v52 }
 0xdf3   :  { %7375 = vmatprep.mubr.f32.mxu0 %v10327_v54 }
 0xdf6   :  { %7376 = vmatmul.mubr.f32.gmra.mrb[118].mxu0 %v10330_v53 }
 0xdf7   :  { %7378 = vmatprep.mubr.f32.mxu0 %v10333_v19 }
 0xdfa   :  { %7379 = vmatmul.mubr.f32.gmra.mrb[120].mxu0 %v10336_v20 }
 0xdfb   :  { %7381 = vmatprep.mubr.f32.mxu0 %v10339_v21 }
 0xdfe   :  { %7382 = vmatmul.mubr.f32.gmra.mrb[122].mxu0 %v10342_v22 }
 0xdff   :  { %7384 = vmatprep.mubr.f32.mxu0 %v10345_v23 }
 0xe02   :  { %7385 = vmatmul.mubr.f32.gmra.mrb[124].mxu0 %v10348_v24 }
 0xe03   :  { %7387 = vmatprep.mubr.f32.mxu0 %v10351_v25 }
 0xe06   :  { %7388 = vmatmul.mubr.f32.gmra.mrb[126].mxu0 %v10354_v26 }
 0xe07   :  { %7478 = vmatprep.mubr.f32.mxu0 %v10616_v14 }
 0xebd   :  { %v7368_v16 = vpop.f32.mrb[112].mxu0 }
 0xebe   :  { %v2318_v51 = vadd.f32 %v7368_v16, %v10506_v55  ;;  %v2312_v50 = vpop.f32.mrb[113].mxu0  ;;  %v10656_v16 = vld [vmem:[#allocation2 + $0x40] sm:$0xff] }
 0xebf   :  { %v2313_v52 = vadd.f32 %v2312_v50, %v10509_v61  ;;  %v10662_v50 = vld [vmem:[#allocation2 + $0x50] sm:$0xff] }
 0xec1   :  { %v8934_v54 = vpack.c.bf16 %v2318_v51, %v2313_v52  ;;  %v7371_v53 = vpop.f32.mrb[114].mxu0  ;;  %v10659_v51 = vld [vmem:[#allocation2 + $0x48] sm:$0xff]  ;;  %v10665_v52 = vld [vmem:[#allocation2 + $0x58] sm:$0xff] }
 0xec2   :  { %v2328_v19 = vadd.f32 %v7371_v53, %v10514_v40  ;;  %v2322_v20 = vpop.f32.mrb[115].mxu0  ;;  %v10671_v53 = vld [vmem:[#allocation2 + $0x68] sm:$0xff] }
 0xec3   :  { %v2323_v21 = vadd.f32 %v2322_v20, %v10517_v17  ;;  %8935 = vmatprep.subr.bf16.mxu1 %v8934_v54  ;;  %v10677_v20 = vld [vmem:[#allocation2 + $0x78] sm:$0xff] }
 0xec4   :  { %8937 = vmatpush3.bf16.msra.mxu1 %v8934_v54  ;;  %v10668_v54 = vld [vmem:[#allocation2 + $0x60] sm:$0xff] }
 0xec5   :  { %v8938_v22 = vpack.c.bf16 %v2328_v19, %v2323_v21  ;;  %v7374_v23 = vpop.f32.mrb[116].mxu0  ;;  %v10674_v19 = vld [vmem:[#allocation2 + $0x70] sm:$0xff] }
 0xec6   :  { %v2338_v24 = vadd.f32 %v7374_v23, %v10522_v5  ;;  %v2332_v25 = vpop.f32.mrb[117].mxu0 }
 0xec7   :  { %v2333_v26 = vadd.f32 %v2332_v25, %v10525_v63  ;;  %8939 = vmatprep.subr.bf16.mxu1 %v8938_v22 }
 0xec8   :  { %8941 = vmatpush3.bf16.msra.mxu1 %v8938_v22 }
 0xec9   :  { %v8942_v37 = vpack.c.bf16 %v2338_v24, %v2333_v26  ;;  %v7377_v36 = vpop.f32.mrb[118].mxu0 }
 0xeca   :  { %v2348_v38 = vadd.f32 %v7377_v36, %v10530_v33  ;;  %v2342_v41 = vpop.f32.mrb[119].mxu0 }
 0xecb   :  { %v2343_v6 = vadd.f32 %v2342_v41, %v10533_v34  ;;  %8943 = vmatprep.subr.bf16.mxu1 %v8942_v37 }
 0xecc   :  { %8945 = vmatpush3.bf16.msra.mxu1 %v8942_v37 }
 0xecd   :  { %v8946_v18 = vpack.c.bf16 %v2348_v38, %v2343_v6  ;;  %v7380_v46 = vpop.f32.mrb[120].mxu0 }
 0xece   :  { %v2358_v39 = vadd.f32 %v7380_v46, %v10538_v44  ;;  %v2352_v45 = vpop.f32.mrb[121].mxu0 }
 0xecf   :  { %v2353_v27 = vadd.f32 %v2352_v45, %v10541_v47  ;;  %8947 = vmatprep.subr.bf16.mxu1 %v8946_v18 }
 0xed0   :  { %8949 = vmatpush3.bf16.msra.mxu1 %v8946_v18 }
 0xed1   :  { %v8950_v9 = vpack.c.bf16 %v2358_v39, %v2353_v27  ;;  %v7383_v30 = vpop.f32.mrb[122].mxu0 }
 0xed2   :  { %v2368_v11 = vadd.f32 %v7383_v30, %v10546_v56  ;;  %v2362_v31 = vpop.f32.mrb[123].mxu0 }
 0xed3   :  { %v2363_v32 = vadd.f32 %v2362_v31, %v10549_v57  ;;  %8951 = vmatprep.subr.bf16.mxu1 %v8950_v9 }
 0xed4   :  { %8953 = vmatpush3.bf16.msra.mxu1 %v8950_v9 }
 0xed5   :  { %v8954_v49 = vpack.c.bf16 %v2368_v11, %v2363_v32  ;;  %v7386_v62 = vpop.f32.mrb[124].mxu0 }
 0xed6   :  { %v2378_v48 = vadd.f32 %v7386_v62, %v10554_v59  ;;  %v2372_v10 = vpop.f32.mrb[125].mxu0 }
 0xed7   :  { %v2373_v58 = vadd.f32 %v2372_v10, %v10557_v8  ;;  %8955 = vmatprep.subr.bf16.mxu1 %v8954_v49 }
 0xed8   :  { %8957 = vmatpush3.bf16.msra.mxu1 %v8954_v49 }
 0xed9   :  { %v8958_v28 = vpack.c.bf16 %v2378_v48, %v2373_v58  ;;  %v7389_v3 = vpop.f32.mrb[126].mxu0 }
 0xeda   :  { %v2388_v29 = vadd.f32 %v7389_v3, %v10562_v35  ;;  %v2382_v43 = vpop.f32.mrb[127].mxu0 }
 0xedb   :  { %v2383_v42 = vadd.f32 %v2382_v43, %v10565_v60  ;;  %8959 = vmatprep.subr.bf16.mxu1 %v8958_v28 }
 0xedc   :  { %8961 = vmatpush3.bf16.msra.mxu1 %v8958_v28 }
 0xedd   :  { %v8962_v7 = vpack.c.bf16 %v2388_v29, %v2383_v42 }
 0xedf   :  { %8963 = vmatprep.subr.bf16.mxu1 %v8962_v7 }
 0xee0   :  { %8965 = vmatpush3.bf16.msra.mxu1 %v8962_v7 }
 0xee3   :  { %7423 = vmatmul.mubr.f32.vlgmr.msra.gmra.mrb[112].mxu1 %v10635_v0 }
 0xee4   :  { %7425 = vmatprep.mubr.f32.mxu1 %v10638_v2 }
 0xee7   :  { %7426 = vmatmul.mubr.f32.gmra.mrb[114].mxu1 %v10641_v1 }
 0xee8   :  { %7428 = vmatprep.mubr.f32.mxu1 %v10644_v12 }
 0xeeb   :  { %7429 = vmatmul.mubr.f32.gmra.mrb[116].mxu1 %v10647_v13 }
 0xeec   :  { %7431 = vmatprep.mubr.f32.mxu1 %v10650_v4 }
 0xeef   :  { %7432 = vmatmul.mubr.f32.gmra.mrb[118].mxu1 %v10653_v15 }
 0xef0   :  { %7434 = vmatprep.mubr.f32.mxu1 %v10656_v16 }
 0xef3   :  { %7435 = vmatmul.mubr.f32.gmra.mrb[120].mxu1 %v10659_v51 }
 0xef4   :  { %7437 = vmatprep.mubr.f32.mxu1 %v10662_v50 }
 0xef7   :  { %7438 = vmatmul.mubr.f32.gmra.mrb[122].mxu1 %v10665_v52 }
 0xef8   :  { %7440 = vmatprep.mubr.f32.mxu1 %v10668_v54 }
 0xefb   :  { %7441 = vmatmul.mubr.f32.gmra.mrb[124].mxu1 %v10671_v53 }
 0xefc   :  { %7443 = vmatprep.mubr.f32.mxu1 %v10674_v19 }
 0xeff   :  { %7444 = vmatmul.mubr.f32.gmra.mrb[126].mxu1 %v10677_v20 }
 0xf00   :  { %7534 = vmatprep.mubr.f32.mxu1 %v10616_v14 }
 0xfb6   :  { %v7424_v21 = vpop.f32.mrb[112].mxu1 }
 0xfb7   :  { %v2463_v22 = vadd.f32 %v7424_v21, %v10506_v55  ;;  %v2457_v23 = vpop.f32.mrb[113].mxu1 }
 0xfb8   :  { %v2458_v24 = vadd.f32 %v2457_v23, %v10509_v61 }
 0xfba   :  { %v8966_v25 = vpack.c.bf16 %v2463_v22, %v2458_v24  ;;  %v7427_v26 = vpop.f32.mrb[114].mxu1 }
 0xfbb   :  { %v2473_v37 = vadd.f32 %v7427_v26, %v10514_v40  ;;  %v2467_v36 = vpop.f32.mrb[115].mxu1 }
 0xfbc   :  { %v2468_v38 = vadd.f32 %v2467_v36, %v10517_v17  ;;  %8967 = vmatprep.subr.bf16.mxu0 %v8966_v25 }
 0xfbd   :  { %8969 = vmatpush3.bf16.msra.mxu0 %v8966_v25 }
 0xfbe   :  { %v8970_v41 = vpack.c.bf16 %v2473_v37, %v2468_v38  ;;  %v7430_v6 = vpop.f32.mrb[116].mxu1 }
 0xfbf   :  { %v2483_v18 = vadd.f32 %v7430_v6, %v10522_v5  ;;  %v2477_v46 = vpop.f32.mrb[117].mxu1 }
 0xfc0   :  { %v2478_v39 = vadd.f32 %v2477_v46, %v10525_v63  ;;  %8971 = vmatprep.subr.bf16.mxu0 %v8970_v41 }
 0xfc1   :  { %8973 = vmatpush3.bf16.msra.mxu0 %v8970_v41 }
 0xfc2   :  { %v8974_v45 = vpack.c.bf16 %v2483_v18, %v2478_v39  ;;  %v7433_v27 = vpop.f32.mrb[118].mxu1 }
 0xfc3   :  { %v2493_v9 = vadd.f32 %v7433_v27, %v10530_v33  ;;  %v2487_v30 = vpop.f32.mrb[119].mxu1 }
 0xfc4   :  { %v2488_v11 = vadd.f32 %v2487_v30, %v10533_v34  ;;  %8975 = vmatprep.subr.bf16.mxu0 %v8974_v45 }
 0xfc5   :  { %8977 = vmatpush3.bf16.msra.mxu0 %v8974_v45 }
 0xfc6   :  { %v8978_v31 = vpack.c.bf16 %v2493_v9, %v2488_v11  ;;  %v7436_v32 = vpop.f32.mrb[120].mxu1 }
 0xfc7   :  { %v2503_v49 = vadd.f32 %v7436_v32, %v10538_v44  ;;  %v2497_v62 = vpop.f32.mrb[121].mxu1 }
 0xfc8   :  { %v2498_v48 = vadd.f32 %v2497_v62, %v10541_v47  ;;  %8979 = vmatprep.subr.bf16.mxu0 %v8978_v31 }
 0xfc9   :  { %8981 = vmatpush3.bf16.msra.mxu0 %v8978_v31 }
 0xfca   :  { %v8982_v10 = vpack.c.bf16 %v2503_v49, %v2498_v48  ;;  %v7439_v58 = vpop.f32.mrb[122].mxu1 }
 0xfcb   :  { %v2513_v28 = vadd.f32 %v7439_v58, %v10546_v56  ;;  %v2507_v3 = vpop.f32.mrb[123].mxu1 }
 0xfcc   :  { %v2508_v29 = vadd.f32 %v2507_v3, %v10549_v57  ;;  %8983 = vmatprep.subr.bf16.mxu0 %v8982_v10 }
 0xfcd   :  { %8985 = vmatpush3.bf16.msra.mxu0 %v8982_v10 }
 0xfce   :  { %v8986_v43 = vpack.c.bf16 %v2513_v28, %v2508_v29  ;;  %v7442_v42 = vpop.f32.mrb[124].mxu1 }
 0xfcf   :  { %v2523_v7 = vadd.f32 %v7442_v42, %v10554_v59  ;;  %v2517_v21 = vpop.f32.mrb[125].mxu1 }
 0xfd0   :  { %v2518_v22 = vadd.f32 %v2517_v21, %v10557_v8  ;;  %8987 = vmatprep.subr.bf16.mxu0 %v8986_v43 }
 0xfd1   :  { %8989 = vmatpush3.bf16.msra.mxu0 %v8986_v43 }
 0xfd2   :  { %v8990_v23 = vpack.c.bf16 %v2523_v7, %v2518_v22  ;;  %v7445_v24 = vpop.f32.mrb[126].mxu1 }
 0xfd3   :  { %v2533_v25 = vadd.f32 %v7445_v24, %v10562_v35  ;;  %v2527_v26 = vpop.f32.mrb[127].mxu1 }
 0xfd4   :  { %v2528_v37 = vadd.f32 %v2527_v26, %v10565_v60  ;;  %8991 = vmatprep.subr.bf16.mxu0 %v8990_v23 }
 0xfd5   :  { %8993 = vmatpush3.bf16.msra.mxu0 %v8990_v23 }
 0xfd6   :  { %v8994_v36 = vpack.c.bf16 %v2533_v25, %v2528_v37 }
 0xfd8   :  { %8995 = vmatprep.subr.bf16.mxu0 %v8994_v36 }
 0xfd9   :  { %8997 = vmatpush3.bf16.msra.mxu0 %v8994_v36 }
 0xfdc   :  { %7479 = vmatmul.mubr.f32.vlgmr.msra.gmra.mrb[128].mxu0 %v10635_v0 }
 0xfdd   :  { %7481 = vmatprep.mubr.f32.mxu0 %v10638_v2 }
 0xfe0   :  { %7482 = vmatmul.mubr.f32.gmra.mrb[130].mxu0 %v10641_v1 }
 0xfe1   :  { %7484 = vmatprep.mubr.f32.mxu0 %v10644_v12 }
 0xfe4   :  { %7485 = vmatmul.mubr.f32.gmra.mrb[132].mxu0 %v10647_v13 }
 0xfe5   :  { %7487 = vmatprep.mubr.f32.mxu0 %v10650_v4 }
 0xfe8   :  { %7488 = vmatmul.mubr.f32.gmra.mrb[134].mxu0 %v10653_v15 }
 0xfe9   :  { %7490 = vmatprep.mubr.f32.mxu0 %v10656_v16 }
 0xfec   :  { %7491 = vmatmul.mubr.f32.gmra.mrb[136].mxu0 %v10659_v51 }
 0xfed   :  { %7493 = vmatprep.mubr.f32.mxu0 %v10662_v50 }
 0xff0   :  { %7494 = vmatmul.mubr.f32.gmra.mrb[138].mxu0 %v10665_v52 }
 0xff1   :  { %7496 = vmatprep.mubr.f32.mxu0 %v10668_v54 }
 0xff4   :  { %7497 = vmatmul.mubr.f32.gmra.mrb[140].mxu0 %v10671_v53 }
 0xff5   :  { %7499 = vmatprep.mubr.f32.mxu0 %v10674_v19 }
 0xff8   :  { %7500 = vmatmul.mubr.f32.gmra.mrb[142].mxu0 %v10677_v20 }
 0xff9   :  { %7590 = vmatprep.mubr.f32.mxu0 %v10616_v14 }
0x10af   :  { %v7480_v38 = vpop.f32.mrb[128].mxu0 }
0x10b0   :  { %v2608_v41 = vadd.f32 %v7480_v38, %v10506_v55  ;;  %v2602_v6 = vpop.f32.mrb[129].mxu0 }
0x10b1   :  { %v2603_v18 = vadd.f32 %v2602_v6, %v10509_v61 }
0x10b3   :  { %v8998_v46 = vpack.c.bf16 %v2608_v41, %v2603_v18  ;;  %v7483_v39 = vpop.f32.mrb[130].mxu0 }
0x10b4   :  { %v2618_v45 = vadd.f32 %v7483_v39, %v10514_v40  ;;  %v2612_v27 = vpop.f32.mrb[131].mxu0 }
0x10b5   :  { %v2613_v9 = vadd.f32 %v2612_v27, %v10517_v17  ;;  %8999 = vmatprep.subr.bf16.mxu1 %v8998_v46 }
0x10b6   :  { %9001 = vmatpush3.bf16.msra.mxu1 %v8998_v46 }
0x10b7   :  { %v9002_v30 = vpack.c.bf16 %v2618_v45, %v2613_v9  ;;  %v7486_v11 = vpop.f32.mrb[132].mxu0 }
0x10b8   :  { %v2628_v31 = vadd.f32 %v7486_v11, %v10522_v5  ;;  %v2622_v32 = vpop.f32.mrb[133].mxu0 }
0x10b9   :  { %v2623_v49 = vadd.f32 %v2622_v32, %v10525_v63  ;;  %9003 = vmatprep.subr.bf16.mxu1 %v9002_v30 }
0x10ba   :  { %9005 = vmatpush3.bf16.msra.mxu1 %v9002_v30 }
0x10bb   :  { %v9006_v62 = vpack.c.bf16 %v2628_v31, %v2623_v49  ;;  %v7489_v48 = vpop.f32.mrb[134].mxu0 }
0x10bc   :  { %v2638_v10 = vadd.f32 %v7489_v48, %v10530_v33  ;;  %v2632_v58 = vpop.f32.mrb[135].mxu0 }
0x10bd   :  { %v2633_v28 = vadd.f32 %v2632_v58, %v10533_v34  ;;  %9007 = vmatprep.subr.bf16.mxu1 %v9006_v62 }
0x10be   :  { %9009 = vmatpush3.bf16.msra.mxu1 %v9006_v62 }
0x10bf   :  { %v9010_v3 = vpack.c.bf16 %v2638_v10, %v2633_v28  ;;  %v7492_v29 = vpop.f32.mrb[136].mxu0 }
0x10c0   :  { %v2648_v43 = vadd.f32 %v7492_v29, %v10538_v44  ;;  %v2642_v42 = vpop.f32.mrb[137].mxu0 }
0x10c1   :  { %v2643_v7 = vadd.f32 %v2642_v42, %v10541_v47  ;;  %9011 = vmatprep.subr.bf16.mxu1 %v9010_v3 }
0x10c2   :  { %9013 = vmatpush3.bf16.msra.mxu1 %v9010_v3 }
0x10c3   :  { %v9014_v21 = vpack.c.bf16 %v2648_v43, %v2643_v7  ;;  %v7495_v22 = vpop.f32.mrb[138].mxu0 }
0x10c4   :  { %v2658_v23 = vadd.f32 %v7495_v22, %v10546_v56  ;;  %v2652_v24 = vpop.f32.mrb[139].mxu0 }
0x10c5   :  { %v2653_v25 = vadd.f32 %v2652_v24, %v10549_v57  ;;  %9015 = vmatprep.subr.bf16.mxu1 %v9014_v21 }
0x10c6   :  { %9017 = vmatpush3.bf16.msra.mxu1 %v9014_v21 }
0x10c7   :  { %v9018_v26 = vpack.c.bf16 %v2658_v23, %v2653_v25  ;;  %v7498_v37 = vpop.f32.mrb[140].mxu0 }
0x10c8   :  { %v2668_v36 = vadd.f32 %v7498_v37, %v10554_v59  ;;  %v2662_v38 = vpop.f32.mrb[141].mxu0 }
0x10c9   :  { %v2663_v41 = vadd.f32 %v2662_v38, %v10557_v8  ;;  %9019 = vmatprep.subr.bf16.mxu1 %v9018_v26 }
0x10ca   :  { %9021 = vmatpush3.bf16.msra.mxu1 %v9018_v26 }
0x10cb   :  { %v9022_v6 = vpack.c.bf16 %v2668_v36, %v2663_v41  ;;  %v7501_v18 = vpop.f32.mrb[142].mxu0 }
0x10cc   :  { %v2678_v46 = vadd.f32 %v7501_v18, %v10562_v35  ;;  %v2672_v39 = vpop.f32.mrb[143].mxu0 }
0x10cd   :  { %v2673_v45 = vadd.f32 %v2672_v39, %v10565_v60  ;;  %9023 = vmatprep.subr.bf16.mxu1 %v9022_v6 }
0x10ce   :  { %9025 = vmatpush3.bf16.msra.mxu1 %v9022_v6 }
0x10cf   :  { %v9026_v27 = vpack.c.bf16 %v2678_v46, %v2673_v45 }
0x10d1   :  { %9027 = vmatprep.subr.bf16.mxu1 %v9026_v27 }
0x10d2   :  { %9029 = vmatpush3.bf16.msra.mxu1 %v9026_v27 }
0x10d5   :  { %7535 = vmatmul.mubr.f32.vlgmr.msra.gmra.mrb[128].mxu1 %v10635_v0 }
0x10d6   :  { %7537 = vmatprep.mubr.f32.mxu1 %v10638_v2 }
0x10d9   :  { %7538 = vmatmul.mubr.f32.gmra.mrb[130].mxu1 %v10641_v1 }
0x10da   :  { %7540 = vmatprep.mubr.f32.mxu1 %v10644_v12 }
0x10dd   :  { %7541 = vmatmul.mubr.f32.gmra.mrb[132].mxu1 %v10647_v13 }
0x10de   :  { %7543 = vmatprep.mubr.f32.mxu1 %v10650_v4 }
0x10e1   :  { %7544 = vmatmul.mubr.f32.gmra.mrb[134].mxu1 %v10653_v15 }
0x10e2   :  { %7546 = vmatprep.mubr.f32.mxu1 %v10656_v16 }
0x10e5   :  { %7547 = vmatmul.mubr.f32.gmra.mrb[136].mxu1 %v10659_v51 }
0x10e6   :  { %7549 = vmatprep.mubr.f32.mxu1 %v10662_v50 }
0x10e9   :  { %7550 = vmatmul.mubr.f32.gmra.mrb[138].mxu1 %v10665_v52 }
0x10ea   :  { %7552 = vmatprep.mubr.f32.mxu1 %v10668_v54 }
0x10ed   :  { %7553 = vmatmul.mubr.f32.gmra.mrb[140].mxu1 %v10671_v53 }
0x10ee   :  { %7555 = vmatprep.mubr.f32.mxu1 %v10674_v19 }
0x10f1   :  { %7556 = vmatmul.mubr.f32.gmra.mrb[142].mxu1 %v10677_v20 }
0x10f2   :  { %7646 = vmatprep.mubr.f32.mxu1 %v10616_v14 }
0x11a8   :  { %v7536_v9 = vpop.f32.mrb[128].mxu1 }
0x11a9   :  { %v2753_v30 = vadd.f32 %v7536_v9, %v10506_v55  ;;  %v2747_v11 = vpop.f32.mrb[129].mxu1 }
0x11aa   :  { %v2748_v31 = vadd.f32 %v2747_v11, %v10509_v61 }
0x11ac   :  { %v9030_v32 = vpack.c.bf16 %v2753_v30, %v2748_v31  ;;  %v7539_v49 = vpop.f32.mrb[130].mxu1 }
0x11ad   :  { %v2763_v62 = vadd.f32 %v7539_v49, %v10514_v40  ;;  %v2757_v48 = vpop.f32.mrb[131].mxu1 }
0x11ae   :  { %v2758_v10 = vadd.f32 %v2757_v48, %v10517_v17  ;;  %9031 = vmatprep.subr.bf16.mxu0 %v9030_v32 }
0x11af   :  { %9033 = vmatpush3.bf16.msra.mxu0 %v9030_v32 }
0x11b0   :  { %v9034_v58 = vpack.c.bf16 %v2763_v62, %v2758_v10  ;;  %v7542_v28 = vpop.f32.mrb[132].mxu1 }
0x11b1   :  { %v2773_v3 = vadd.f32 %v7542_v28, %v10522_v5  ;;  %v2767_v29 = vpop.f32.mrb[133].mxu1 }
0x11b2   :  { %v2768_v43 = vadd.f32 %v2767_v29, %v10525_v63  ;;  %9035 = vmatprep.subr.bf16.mxu0 %v9034_v58 }
0x11b3   :  { %9037 = vmatpush3.bf16.msra.mxu0 %v9034_v58 }
0x11b4   :  { %v9038_v42 = vpack.c.bf16 %v2773_v3, %v2768_v43  ;;  %v7545_v7 = vpop.f32.mrb[134].mxu1 }
0x11b5   :  { %v2783_v21 = vadd.f32 %v7545_v7, %v10530_v33  ;;  %v2777_v22 = vpop.f32.mrb[135].mxu1 }
0x11b6   :  { %v2778_v23 = vadd.f32 %v2777_v22, %v10533_v34  ;;  %9039 = vmatprep.subr.bf16.mxu0 %v9038_v42 }
0x11b7   :  { %9041 = vmatpush3.bf16.msra.mxu0 %v9038_v42 }
0x11b8   :  { %v9042_v24 = vpack.c.bf16 %v2783_v21, %v2778_v23  ;;  %v7548_v25 = vpop.f32.mrb[136].mxu1 }
0x11b9   :  { %v2793_v26 = vadd.f32 %v7548_v25, %v10538_v44  ;;  %v2787_v37 = vpop.f32.mrb[137].mxu1 }
0x11ba   :  { %v2788_v36 = vadd.f32 %v2787_v37, %v10541_v47  ;;  %9043 = vmatprep.subr.bf16.mxu0 %v9042_v24 }
0x11bb   :  { %9045 = vmatpush3.bf16.msra.mxu0 %v9042_v24 }
0x11bc   :  { %v9046_v38 = vpack.c.bf16 %v2793_v26, %v2788_v36  ;;  %v7551_v41 = vpop.f32.mrb[138].mxu1 }
0x11bd   :  { %v2803_v6 = vadd.f32 %v7551_v41, %v10546_v56  ;;  %v2797_v18 = vpop.f32.mrb[139].mxu1 }
0x11be   :  { %v2798_v46 = vadd.f32 %v2797_v18, %v10549_v57  ;;  %9047 = vmatprep.subr.bf16.mxu0 %v9046_v38 }
0x11bf   :  { %9049 = vmatpush3.bf16.msra.mxu0 %v9046_v38 }
0x11c0   :  { %v9050_v39 = vpack.c.bf16 %v2803_v6, %v2798_v46  ;;  %v7554_v45 = vpop.f32.mrb[140].mxu1 }
0x11c1   :  { %v2813_v27 = vadd.f32 %v7554_v45, %v10554_v59  ;;  %v2807_v9 = vpop.f32.mrb[141].mxu1 }
0x11c2   :  { %v2808_v30 = vadd.f32 %v2807_v9, %v10557_v8  ;;  %9051 = vmatprep.subr.bf16.mxu0 %v9050_v39 }
0x11c3   :  { %9053 = vmatpush3.bf16.msra.mxu0 %v9050_v39 }
0x11c4   :  { %v9054_v11 = vpack.c.bf16 %v2813_v27, %v2808_v30  ;;  %v7557_v31 = vpop.f32.mrb[142].mxu1 }
0x11c5   :  { %v2823_v32 = vadd.f32 %v7557_v31, %v10562_v35  ;;  %v2817_v49 = vpop.f32.mrb[143].mxu1 }
0x11c6   :  { %v2818_v62 = vadd.f32 %v2817_v49, %v10565_v60  ;;  %9055 = vmatprep.subr.bf16.mxu0 %v9054_v11 }
0x11c7   :  { %9057 = vmatpush3.bf16.msra.mxu0 %v9054_v11 }
0x11c8   :  { %v9058_v48 = vpack.c.bf16 %v2823_v32, %v2818_v62 }
0x11ca   :  { %9059 = vmatprep.subr.bf16.mxu0 %v9058_v48 }
0x11cb   :  { %9061 = vmatpush3.bf16.msra.mxu0 %v9058_v48 }
0x11ce   :  { %7591 = vmatmul.mubr.f32.vlgmr.msra.gmra.mrb[144].mxu0 %v10635_v0 }
0x11cf   :  { %7593 = vmatprep.mubr.f32.mxu0 %v10638_v2 }
0x11d2   :  { %7594 = vmatmul.mubr.f32.gmra.mrb[146].mxu0 %v10641_v1 }
0x11d3   :  { %7596 = vmatprep.mubr.f32.mxu0 %v10644_v12 }
0x11d6   :  { %7597 = vmatmul.mubr.f32.gmra.mrb[148].mxu0 %v10647_v13 }
0x11d7   :  { %7599 = vmatprep.mubr.f32.mxu0 %v10650_v4 }
0x11da   :  { %7600 = vmatmul.mubr.f32.gmra.mrb[150].mxu0 %v10653_v15 }
0x11db   :  { %7602 = vmatprep.mubr.f32.mxu0 %v10656_v16 }
0x11de   :  { %7603 = vmatmul.mubr.f32.gmra.mrb[152].mxu0 %v10659_v51 }
0x11df   :  { %7605 = vmatprep.mubr.f32.mxu0 %v10662_v50 }
0x11e2   :  { %7606 = vmatmul.mubr.f32.gmra.mrb[154].mxu0 %v10665_v52 }
0x11e3   :  { %7608 = vmatprep.mubr.f32.mxu0 %v10668_v54 }
0x11e6   :  { %7609 = vmatmul.mubr.f32.gmra.mrb[156].mxu0 %v10671_v53 }
0x11e7   :  { %7611 = vmatprep.mubr.f32.mxu0 %v10674_v19 }
0x11ea   :  { %7612 = vmatmul.mubr.f32.gmra.mrb[158].mxu0 %v10677_v20 }
0x11eb   :  { %7702 = vmatprep.mubr.f32.mxu0 %v10616_v14 }
0x12a1   :  { %v7592_v10 = vpop.f32.mrb[144].mxu0 }
0x12a2   :  { %v2898_v58 = vadd.f32 %v7592_v10, %v10506_v55  ;;  %v2892_v28 = vpop.f32.mrb[145].mxu0 }
0x12a3   :  { %v2893_v3 = vadd.f32 %v2892_v28, %v10509_v61 }
0x12a5   :  { %v9062_v29 = vpack.c.bf16 %v2898_v58, %v2893_v3  ;;  %v7595_v43 = vpop.f32.mrb[146].mxu0 }
0x12a6   :  { %v2908_v42 = vadd.f32 %v7595_v43, %v10514_v40  ;;  %v2902_v7 = vpop.f32.mrb[147].mxu0 }
0x12a7   :  { %v2903_v21 = vadd.f32 %v2902_v7, %v10517_v17  ;;  %9063 = vmatprep.subr.bf16.mxu1 %v9062_v29 }
0x12a8   :  { %9065 = vmatpush3.bf16.msra.mxu1 %v9062_v29 }
0x12a9   :  { %v9066_v22 = vpack.c.bf16 %v2908_v42, %v2903_v21  ;;  %v7598_v23 = vpop.f32.mrb[148].mxu0 }
0x12aa   :  { %v2918_v24 = vadd.f32 %v7598_v23, %v10522_v5  ;;  %v2912_v25 = vpop.f32.mrb[149].mxu0 }
0x12ab   :  { %v2913_v26 = vadd.f32 %v2912_v25, %v10525_v63  ;;  %9067 = vmatprep.subr.bf16.mxu1 %v9066_v22 }
0x12ac   :  { %9069 = vmatpush3.bf16.msra.mxu1 %v9066_v22 }
0x12ad   :  { %v9070_v37 = vpack.c.bf16 %v2918_v24, %v2913_v26  ;;  %v7601_v36 = vpop.f32.mrb[150].mxu0 }
0x12ae   :  { %v2928_v38 = vadd.f32 %v7601_v36, %v10530_v33  ;;  %v2922_v41 = vpop.f32.mrb[151].mxu0 }
0x12af   :  { %v2923_v6 = vadd.f32 %v2922_v41, %v10533_v34  ;;  %9071 = vmatprep.subr.bf16.mxu1 %v9070_v37 }
0x12b0   :  { %9073 = vmatpush3.bf16.msra.mxu1 %v9070_v37 }
0x12b1   :  { %v9074_v18 = vpack.c.bf16 %v2928_v38, %v2923_v6  ;;  %v7604_v46 = vpop.f32.mrb[152].mxu0 }
0x12b2   :  { %v2938_v39 = vadd.f32 %v7604_v46, %v10538_v44  ;;  %v2932_v45 = vpop.f32.mrb[153].mxu0 }
0x12b3   :  { %v2933_v27 = vadd.f32 %v2932_v45, %v10541_v47  ;;  %9075 = vmatprep.subr.bf16.mxu1 %v9074_v18 }
0x12b4   :  { %9077 = vmatpush3.bf16.msra.mxu1 %v9074_v18 }
0x12b5   :  { %v9078_v9 = vpack.c.bf16 %v2938_v39, %v2933_v27  ;;  %v7607_v30 = vpop.f32.mrb[154].mxu0 }
0x12b6   :  { %v2948_v11 = vadd.f32 %v7607_v30, %v10546_v56  ;;  %v2942_v31 = vpop.f32.mrb[155].mxu0 }
0x12b7   :  { %v2943_v32 = vadd.f32 %v2942_v31, %v10549_v57  ;;  %9079 = vmatprep.subr.bf16.mxu1 %v9078_v9 }
0x12b8   :  { %9081 = vmatpush3.bf16.msra.mxu1 %v9078_v9 }
0x12b9   :  { %v9082_v49 = vpack.c.bf16 %v2948_v11, %v2943_v32  ;;  %v7610_v62 = vpop.f32.mrb[156].mxu0 }
0x12ba   :  { %v2958_v48 = vadd.f32 %v7610_v62, %v10554_v59  ;;  %v2952_v10 = vpop.f32.mrb[157].mxu0 }
0x12bb   :  { %v2953_v58 = vadd.f32 %v2952_v10, %v10557_v8  ;;  %9083 = vmatprep.subr.bf16.mxu1 %v9082_v49 }
0x12bc   :  { %9085 = vmatpush3.bf16.msra.mxu1 %v9082_v49 }
0x12bd   :  { %v9086_v28 = vpack.c.bf16 %v2958_v48, %v2953_v58  ;;  %v7613_v3 = vpop.f32.mrb[158].mxu0 }
0x12be   :  { %v2968_v29 = vadd.f32 %v7613_v3, %v10562_v35  ;;  %v2962_v43 = vpop.f32.mrb[159].mxu0 }
0x12bf   :  { %v2963_v42 = vadd.f32 %v2962_v43, %v10565_v60  ;;  %9087 = vmatprep.subr.bf16.mxu1 %v9086_v28 }
0x12c0   :  { %9089 = vmatpush3.bf16.msra.mxu1 %v9086_v28 }
0x12c1   :  { %v9090_v7 = vpack.c.bf16 %v2968_v29, %v2963_v42 }
0x12c3   :  { %9091 = vmatprep.subr.bf16.mxu1 %v9090_v7 }
0x12c4   :  { %9093 = vmatpush3.bf16.msra.mxu1 %v9090_v7 }
0x12c7   :  { %7647 = vmatmul.mubr.f32.vlgmr.msra.gmra.mrb[144].mxu1 %v10635_v0 }
0x12c8   :  { %7649 = vmatprep.mubr.f32.mxu1 %v10638_v2 }
0x12cb   :  { %7650 = vmatmul.mubr.f32.gmra.mrb[146].mxu1 %v10641_v1 }
0x12cc   :  { %7652 = vmatprep.mubr.f32.mxu1 %v10644_v12 }
0x12cf   :  { %7653 = vmatmul.mubr.f32.gmra.mrb[148].mxu1 %v10647_v13 }
0x12d0   :  { %7655 = vmatprep.mubr.f32.mxu1 %v10650_v4 }
0x12d3   :  { %7656 = vmatmul.mubr.f32.gmra.mrb[150].mxu1 %v10653_v15 }
0x12d4   :  { %7658 = vmatprep.mubr.f32.mxu1 %v10656_v16 }
0x12d7   :  { %7659 = vmatmul.mubr.f32.gmra.mrb[152].mxu1 %v10659_v51 }
0x12d8   :  { %7661 = vmatprep.mubr.f32.mxu1 %v10662_v50 }
0x12db   :  { %7662 = vmatmul.mubr.f32.gmra.mrb[154].mxu1 %v10665_v52 }
0x12dc   :  { %7664 = vmatprep.mubr.f32.mxu1 %v10668_v54 }
0x12df   :  { %7665 = vmatmul.mubr.f32.gmra.mrb[156].mxu1 %v10671_v53 }
0x12e0   :  { %7667 = vmatprep.mubr.f32.mxu1 %v10674_v19 }
0x12e3   :  { %7668 = vmatmul.mubr.f32.gmra.mrb[158].mxu1 %v10677_v20 }
0x12e4   :  { %7758 = vmatprep.mubr.f32.mxu1 %v10616_v14 }
0x139a   :  { %v7648_v21 = vpop.f32.mrb[144].mxu1 }
0x139b   :  { %v3043_v22 = vadd.f32 %v7648_v21, %v10506_v55  ;;  %v3037_v23 = vpop.f32.mrb[145].mxu1 }
0x139c   :  { %v3038_v24 = vadd.f32 %v3037_v23, %v10509_v61 }
0x139e   :  { %v9094_v25 = vpack.c.bf16 %v3043_v22, %v3038_v24  ;;  %v7651_v26 = vpop.f32.mrb[146].mxu1 }
0x139f   :  { %v3053_v37 = vadd.f32 %v7651_v26, %v10514_v40  ;;  %v3047_v36 = vpop.f32.mrb[147].mxu1 }
0x13a0   :  { %v3048_v38 = vadd.f32 %v3047_v36, %v10517_v17  ;;  %9095 = vmatprep.subr.bf16.mxu0 %v9094_v25  ;;  %v3422_v36 = vld [vmem:[#allocation7] sm:$0xff] }
0x13a1   :  { %9097 = vmatpush3.bf16.msra.mxu0 %v9094_v25 }
0x13a2   :  { %v9098_v41 = vpack.c.bf16 %v3053_v37, %v3048_v38  ;;  %v7654_v6 = vpop.f32.mrb[148].mxu1  ;;  %v3423_v38 = vld [vmem:[#allocation7 + $0x8] sm:$0xff] }
0x13a3   :  { %v3063_v18 = vadd.f32 %v7654_v6, %v10522_v5  ;;  %v3057_v14 = vpop.f32.mrb[149].mxu1  ;;  %v9158_v6 = vpack.c.bf16 %v3423_v38, %v3422_v36 }
0x13a4   :  { %v3058_v46 = vadd.f32 %v3057_v14, %v10525_v63  ;;  %9099 = vmatprep.subr.bf16.mxu0 %v9098_v41 }
0x13a5   :  { %9101 = vmatpush3.bf16.msra.mxu0 %v9098_v41  ;;  %v3424_v41 = vld [vmem:[#allocation7 + $0x10] sm:$0xff] }
0x13a6   :  { %v9102_v39 = vpack.c.bf16 %v3063_v18, %v3058_v46  ;;  %v7657_v45 = vpop.f32.mrb[150].mxu1  ;;  %v3425_v18 = vld [vmem:[#allocation7 + $0x18] sm:$0xff]  ;;  %v3426_v46 = vld [vmem:[#allocation7 + $0x20] sm:$0xff] }
0x13a7   :  { %v3073_v27 = vadd.f32 %v7657_v45, %v10530_v33  ;;  %v3067_v9 = vpop.f32.mrb[151].mxu1  ;;  %v9162_v14 = vpack.c.bf16 %v3425_v18, %v3424_v41 }
0x13a8   :  { %v3068_v30 = vadd.f32 %v3067_v9, %v10533_v34  ;;  %9103 = vmatprep.subr.bf16.mxu0 %v9102_v39  ;;  %v3429_v9 = vld [vmem:[#allocation7 + $0x38] sm:$0xff] }
0x13a9   :  { %9105 = vmatpush3.bf16.msra.mxu0 %v9102_v39  ;;  %v3427_v39 = vld [vmem:[#allocation7 + $0x28] sm:$0xff] }
0x13aa   :  { %v9106_v11 = vpack.c.bf16 %v3073_v27, %v3068_v30  ;;  %v7660_v31 = vpop.f32.mrb[152].mxu1  ;;  %v9166_v45 = vpack.c.bf16 %v3427_v39, %v3426_v46  ;;  %v3428_v27 = vld [vmem:[#allocation7 + $0x30] sm:$0xff] }
0x13ab   :  { %v3083_v32 = vadd.f32 %v7660_v31, %v10538_v44  ;;  %v3077_v49 = vpop.f32.mrb[153].mxu1  ;;  %v9170_v30 = vpack.c.bf16 %v3429_v9, %v3428_v27  ;;  %v3431_v31 = vld [vmem:[#allocation7 + $0x48] sm:$0xff] }
0x13ac   :  { %v3078_v62 = vadd.f32 %v3077_v49, %v10541_v47  ;;  %9107 = vmatprep.subr.bf16.mxu0 %v9106_v11  ;;  %v3432_v49 = vld [vmem:[#allocation7 + $0x50] sm:$0xff] }
0x13ad   :  { %9109 = vmatpush3.bf16.msra.mxu0 %v9106_v11  ;;  %v3430_v11 = vld [vmem:[#allocation7 + $0x40] sm:$0xff] }
0x13ae   :  { %v9110_v48 = vpack.c.bf16 %v3083_v32, %v3078_v62  ;;  %v7663_v10 = vpop.f32.mrb[154].mxu1  ;;  %v9174_v32 = vpack.c.bf16 %v3431_v31, %v3430_v11  ;;  %v3433_v62 = vld [vmem:[#allocation7 + $0x58] sm:$0xff] }
0x13af   :  { %v3093_v58 = vadd.f32 %v7663_v10, %v10546_v56  ;;  %v3087_v28 = vpop.f32.mrb[155].mxu1  ;;  %v3434_v10 = vld [vmem:[#allocation7 + $0x60] sm:$0xff] }
0x13b0   :  { %v3088_v3 = vadd.f32 %v3087_v28, %v10549_v57  ;;  %9111 = vmatprep.subr.bf16.mxu0 %v9110_v48 }
0x13b1   :  { %9113 = vmatpush3.bf16.msra.mxu0 %v9110_v48  ;;  %v9178_v48 = vpack.c.bf16 %v3433_v62, %v3432_v49 }
0x13b2   :  { %v9114_v29 = vpack.c.bf16 %v3093_v58, %v3088_v3  ;;  %v7666_v43 = vpop.f32.mrb[156].mxu1  ;;  %v3435_v58 = vld [vmem:[#allocation7 + $0x68] sm:$0xff] }
0x13b3   :  { %v3103_v42 = vadd.f32 %v7666_v43, %v10554_v59  ;;  %v3097_v7 = vpop.f32.mrb[157].mxu1  ;;  %v9182_v28 = vpack.c.bf16 %v3435_v58, %v3434_v10 }
0x13b4   :  { %v3098_v21 = vadd.f32 %v3097_v7, %v10557_v8  ;;  %9115 = vmatprep.subr.bf16.mxu0 %v9114_v29 }
0x13b5   :  { %9117 = vmatpush3.bf16.msra.mxu0 %v9114_v29 }
0x13b6   :  { %v9118_v22 = vpack.c.bf16 %v3103_v42, %v3098_v21  ;;  %v7669_v23 = vpop.f32.mrb[158].mxu1 }
0x13b7   :  { %v3113_v24 = vadd.f32 %v7669_v23, %v10562_v35  ;;  %v3107_v25 = vpop.f32.mrb[159].mxu1 }
0x13b8   :  { %v3108_v26 = vadd.f32 %v3107_v25, %v10565_v60  ;;  %9119 = vmatprep.subr.bf16.mxu0 %v9118_v22 }
0x13b9   :  { %9121 = vmatpush3.bf16.msra.mxu0 %v9118_v22 }
0x13ba   :  { %v9122_v37 = vpack.c.bf16 %v3113_v24, %v3108_v26 }
0x13bc   :  { %9123 = vmatprep.subr.bf16.mxu0 %v9122_v37 }
0x13bd   :  { %9125 = vmatpush3.bf16.msra.mxu0 %v9122_v37 }
0x13be   :  { %9159 = vmatprep.subr.bf16.mxu0 %v9158_v6 }
0x13c0   :  { %7703 = vmatmul.mubr.f32.vlgmr.msra.gmra.mrb[160].mxu0 %v10635_v0 }
0x13c1   :  { %7705 = vmatprep.mubr.f32.mxu0 %v10638_v2  ;;  %9161 = vmatpush3.bf16.msra.mxu0 %v9158_v6 }
0x13c2   :  { %9163 = vmatprep.subr.bf16.mxu0 %v9162_v14 }
0x13c4   :  { %7706 = vmatmul.mubr.f32.gmra.mrb[162].mxu0 %v10641_v1 }
0x13c5   :  { %7708 = vmatprep.mubr.f32.mxu0 %v10644_v12  ;;  %9165 = vmatpush3.bf16.msra.mxu0 %v9162_v14 }
0x13c6   :  { %9167 = vmatprep.subr.bf16.mxu0 %v9166_v45 }
0x13c8   :  { %7709 = vmatmul.mubr.f32.gmra.mrb[164].mxu0 %v10647_v13 }
0x13c9   :  { %7711 = vmatprep.mubr.f32.mxu0 %v10650_v4  ;;  %9169 = vmatpush3.bf16.msra.mxu0 %v9166_v45 }
0x13ca   :  { %9171 = vmatprep.subr.bf16.mxu0 %v9170_v30 }
0x13cc   :  { %7712 = vmatmul.mubr.f32.gmra.mrb[166].mxu0 %v10653_v15 }
0x13cd   :  { %7714 = vmatprep.mubr.f32.mxu0 %v10656_v16  ;;  %9173 = vmatpush3.bf16.msra.mxu0 %v9170_v30 }
0x13ce   :  { %9175 = vmatprep.subr.bf16.mxu0 %v9174_v32 }
0x13d0   :  { %7715 = vmatmul.mubr.f32.gmra.mrb[168].mxu0 %v10659_v51 }
0x13d1   :  { %7717 = vmatprep.mubr.f32.mxu0 %v10662_v50  ;;  %9177 = vmatpush3.bf16.msra.mxu0 %v9174_v32 }
0x13d2   :  { %9179 = vmatprep.subr.bf16.mxu0 %v9178_v48 }
0x13d4   :  { %7718 = vmatmul.mubr.f32.gmra.mrb[170].mxu0 %v10665_v52 }
0x13d5   :  { %7720 = vmatprep.mubr.f32.mxu0 %v10668_v54  ;;  %9181 = vmatpush3.bf16.msra.mxu0 %v9178_v48 }
0x13d6   :  { %9183 = vmatprep.subr.bf16.mxu0 %v9182_v28 }
0x13d8   :  { %7721 = vmatmul.mubr.f32.gmra.mrb[172].mxu0 %v10671_v53 }
0x13d9   :  { %7723 = vmatprep.mubr.f32.mxu0 %v10674_v19  ;;  %9185 = vmatpush3.bf16.msra.mxu0 %v9182_v28 }
0x13dc   :  { %7724 = vmatmul.mubr.f32.gmra.mrb[174].mxu0 %v10677_v20 }
0x1493   :  { %v7704_v3 = vpop.f32.mrb[160].mxu0 }
0x1494   :  { %v3188_v29 = vadd.f32 %v7704_v3, %v10506_v55  ;;  %v3182_v43 = vpop.f32.mrb[161].mxu0 }
0x1495   :  { %v3183_v42 = vadd.f32 %v3182_v43, %v10509_v61 }
0x1497   :  { %v9126_v7 = vpack.c.bf16 %v3188_v29, %v3183_v42  ;;  %v7707_v21 = vpop.f32.mrb[162].mxu0 }
0x1498   :  { %v3198_v22 = vadd.f32 %v7707_v21, %v10514_v40  ;;  %v3192_v23 = vpop.f32.mrb[163].mxu0 }
0x1499   :  { %v3193_v24 = vadd.f32 %v3192_v23, %v10517_v17  ;;  %9127 = vmatprep.subr.bf16.mxu1 %v9126_v7 }
0x149a   :  { %9129 = vmatpush3.bf16.msra.mxu1 %v9126_v7 }
0x149b   :  { %v9130_v25 = vpack.c.bf16 %v3198_v22, %v3193_v24  ;;  %v7710_v26 = vpop.f32.mrb[164].mxu0 }
0x149c   :  { %v3208_v37 = vadd.f32 %v7710_v26, %v10522_v5  ;;  %v3202_v36 = vpop.f32.mrb[165].mxu0 }
0x149d   :  { %v3203_v38 = vadd.f32 %v3202_v36, %v10525_v63  ;;  %9131 = vmatprep.subr.bf16.mxu1 %v9130_v25 }
0x149e   :  { %9133 = vmatpush3.bf16.msra.mxu1 %v9130_v25 }
0x149f   :  { %v9134_v41 = vpack.c.bf16 %v3208_v37, %v3203_v38  ;;  %v7713_v6 = vpop.f32.mrb[166].mxu0 }
0x14a0   :  { %v3218_v18 = vadd.f32 %v7713_v6, %v10530_v33  ;;  %v3212_v14 = vpop.f32.mrb[167].mxu0 }
0x14a1   :  { %v3213_v46 = vadd.f32 %v3212_v14, %v10533_v34  ;;  %9135 = vmatprep.subr.bf16.mxu1 %v9134_v41 }
0x14a2   :  { %9137 = vmatpush3.bf16.msra.mxu1 %v9134_v41 }
0x14a3   :  { %v9138_v39 = vpack.c.bf16 %v3218_v18, %v3213_v46  ;;  %v7716_v45 = vpop.f32.mrb[168].mxu0 }
0x14a4   :  { %v3228_v27 = vadd.f32 %v7716_v45, %v10538_v44  ;;  %v3222_v9 = vpop.f32.mrb[169].mxu0 }
0x14a5   :  { %v3223_v30 = vadd.f32 %v3222_v9, %v10541_v47  ;;  %9139 = vmatprep.subr.bf16.mxu1 %v9138_v39 }
0x14a6   :  { %9141 = vmatpush3.bf16.msra.mxu1 %v9138_v39 }
0x14a7   :  { %v9142_v11 = vpack.c.bf16 %v3228_v27, %v3223_v30  ;;  %v7719_v31 = vpop.f32.mrb[170].mxu0 }
0x14a8   :  { %v3238_v32 = vadd.f32 %v7719_v31, %v10546_v56  ;;  %v3232_v49 = vpop.f32.mrb[171].mxu0 }
0x14a9   :  { %v3233_v62 = vadd.f32 %v3232_v49, %v10549_v57  ;;  %9143 = vmatprep.subr.bf16.mxu1 %v9142_v11 }
0x14aa   :  { %9145 = vmatpush3.bf16.msra.mxu1 %v9142_v11 }
0x14ab   :  { %v9146_v48 = vpack.c.bf16 %v3238_v32, %v3233_v62  ;;  %v7722_v10 = vpop.f32.mrb[172].mxu0 }
0x14ac   :  { %v3248_v58 = vadd.f32 %v7722_v10, %v10554_v59  ;;  %v3242_v28 = vpop.f32.mrb[173].mxu0 }
0x14ad   :  { %v3243_v3 = vadd.f32 %v3242_v28, %v10557_v8  ;;  %9147 = vmatprep.subr.bf16.mxu1 %v9146_v48 }
0x14ae   :  { %9149 = vmatpush3.bf16.msra.mxu1 %v9146_v48 }
0x14af   :  { %v9150_v29 = vpack.c.bf16 %v3248_v58, %v3243_v3  ;;  %v7725_v43 = vpop.f32.mrb[174].mxu0 }
0x14b0   :  { %v3258_v42 = vadd.f32 %v7725_v43, %v10562_v35  ;;  %v3252_v7 = vpop.f32.mrb[175].mxu0 }
0x14b1   :  { %v3253_v21 = vadd.f32 %v3252_v7, %v10565_v60  ;;  %9151 = vmatprep.subr.bf16.mxu1 %v9150_v29 }
0x14b2   :  { %9153 = vmatpush3.bf16.msra.mxu1 %v9150_v29 }
0x14b3   :  { %v9154_v22 = vpack.c.bf16 %v3258_v42, %v3253_v21 }
0x14b5   :  { %9155 = vmatprep.subr.bf16.mxu1 %v9154_v22 }
0x14b6   :  { %9157 = vmatpush3.bf16.msra.mxu1 %v9154_v22 }
0x14b9   :  { %7759 = vmatmul.mubr.f32.vlgmr.msra.gmra.mrb[160].mxu1 %v10635_v0  ;;  %v10871_v0 = vld [vmem:[#allocation2] sm:$0xff] }
0x14ba   :  { %7761 = vmatprep.mubr.f32.mxu1 %v10638_v2  ;;  %v3436_v2 = vld [vmem:[#allocation7 + $0x70] sm:$0xff] }
0x14bd   :  { %7762 = vmatmul.mubr.f32.gmra.mrb[162].mxu1 %v10641_v1  ;;  %v3437_v1 = vld [vmem:[#allocation7 + $0x78] sm:$0xff] }
0x14be   :  { %7764 = vmatprep.mubr.f32.mxu1 %v10644_v12  ;;  %v9186_v12 = vpack.c.bf16 %v3437_v1, %v3436_v2 }
0x14c0   :  { %9187 = vmatprep.subr.bf16.mxu0 %v9186_v12 }
0x14c1   :  { %7765 = vmatmul.mubr.f32.gmra.mrb[164].mxu1 %v10647_v13  ;;  %9189 = vmatpush3.bf16.msra.mxu0 %v9186_v12 }
0x14c2   :  { %7767 = vmatprep.mubr.f32.mxu1 %v10650_v4 }
0x14c5   :  { %7768 = vmatmul.mubr.f32.gmra.mrb[166].mxu1 %v10653_v15 }
0x14c6   :  { %7770 = vmatprep.mubr.f32.mxu1 %v10656_v16 }
0x14c9   :  { %7771 = vmatmul.mubr.f32.gmra.mrb[168].mxu1 %v10659_v51 }
0x14ca   :  { %7773 = vmatprep.mubr.f32.mxu1 %v10662_v50 }
0x14cd   :  { %7774 = vmatmul.mubr.f32.gmra.mrb[170].mxu1 %v10665_v52 }
0x14ce   :  { %7776 = vmatprep.mubr.f32.mxu1 %v10668_v54 }
0x14d1   :  { %7777 = vmatmul.mubr.f32.gmra.mrb[172].mxu1 %v10671_v53 }
0x14d2   :  { %7779 = vmatprep.mubr.f32.mxu1 %v10674_v19 }
0x14d5   :  { %7780 = vmatmul.mubr.f32.gmra.mrb[174].mxu1 %v10677_v20 }
0x14d6   :  { %7870 = vmatprep.mubr.f32.mxu1 %v10871_v0 }
0x158c   :  { %v7760_v13 = vpop.f32.mrb[160].mxu1 }
0x158d   :  { %v3333_v4 = vadd.f32 %v7760_v13, %v10506_v55  ;;  %v3327_v15 = vpop.f32.mrb[161].mxu1 }
0x158e   :  { %v3328_v16 = vadd.f32 %v3327_v15, %v10509_v61 }
0x158f   :  { %v3407_v52 = vmax.f32 %v3333_v4, 0.0 }
0x1590   :  { %v3406_v51 = vmax.f32 %v3328_v16, 0.0  ;;  %v7763_v50 = vpop.f32.mrb[162].mxu1 }
0x1591   :  { %v3343_v54 = vadd.f32 %v7763_v50, %v10514_v40  ;;  %v3337_v53 = vpop.f32.mrb[163].mxu1 }
0x1592   :  { %v3338_v19 = vadd.f32 %v3337_v53, %v10517_v17  ;;  %7814 = vmatprep.mubr.f32.mxu0 %v3406_v51 }
0x1593   :  { %7815 = vmatmul.mubr.f32.vlgmr.msra.gmra.mrb[176].mxu0 %v3407_v52  ;;  %v3409_v24 = vmax.f32 %v3343_v54, 0.0 }
0x1594   :  { %v3408_v20 = vmax.f32 %v3338_v19, 0.0  ;;  %v7766_v23 = vpop.f32.mrb[164].mxu1 }
0x1595   :  { %v3353_v25 = vadd.f32 %v7766_v23, %v10522_v5  ;;  %v3347_v26 = vpop.f32.mrb[165].mxu1 }
0x1596   :  { %v3348_v55 = vadd.f32 %v3347_v26, %v10525_v63  ;;  %7817 = vmatprep.mubr.f32.mxu0 %v3408_v20 }
0x1597   :  { %7818 = vmatmul.mubr.f32.gmra.mrb[178].mxu0 %v3409_v24  ;;  %v3411_v36 = vmax.f32 %v3353_v25, 0.0 }
0x1598   :  { %v3410_v61 = vmax.f32 %v3348_v55, 0.0  ;;  %v7769_v37 = vpop.f32.mrb[166].mxu1 }
0x1599   :  { %v3363_v40 = vadd.f32 %v7769_v37, %v10530_v33  ;;  %v3357_v38 = vpop.f32.mrb[167].mxu1 }
0x159a   :  { %v3358_v17 = vadd.f32 %v3357_v38, %v10533_v34  ;;  %7820 = vmatprep.mubr.f32.mxu0 %v3410_v61 }
0x159b   :  { %7821 = vmatmul.mubr.f32.gmra.mrb[180].mxu0 %v3411_v36  ;;  %v3413_v18 = vmax.f32 %v3363_v40, 0.0 }
0x159c   :  { %v3412_v41 = vmax.f32 %v3358_v17, 0.0  ;;  %v7772_v6 = vpop.f32.mrb[168].mxu1 }
0x159d   :  { %v3373_v5 = vadd.f32 %v7772_v6, %v10538_v44  ;;  %v3367_v14 = vpop.f32.mrb[169].mxu1 }
0x159e   :  { %v3368_v63 = vadd.f32 %v3367_v14, %v10541_v47  ;;  %7823 = vmatprep.mubr.f32.mxu0 %v3412_v41  ;;  %v10942_v14 = vld [vmem:[#allocation2 + $0x8] sm:$0xff] }
0x159f   :  { %7824 = vmatmul.mubr.f32.gmra.mrb[182].mxu0 %v3413_v18  ;;  %v3415_v45 = vmax.f32 %v3373_v5, 0.0 }
0x15a0   :  { %v3414_v46 = vmax.f32 %v3368_v63, 0.0  ;;  %v7775_v39 = vpop.f32.mrb[170].mxu1  ;;  %v10945_v63 = vld [vmem:[#allocation2 + $0x10] sm:$0xff] }
0x15a1   :  { %v3383_v33 = vadd.f32 %v7775_v39, %v10546_v56  ;;  %v3377_v27 = vpop.f32.mrb[171].mxu1  ;;  %v10951_v39 = vld [vmem:[#allocation2 + $0x20] sm:$0xff] }
0x15a2   :  { %v3378_v34 = vadd.f32 %v3377_v27, %v10549_v57  ;;  %7826 = vmatprep.mubr.f32.mxu0 %v3414_v46  ;;  %v10948_v46 = vld [vmem:[#allocation2 + $0x18] sm:$0xff] }
0x15a3   :  { %7827 = vmatmul.mubr.f32.gmra.mrb[184].mxu0 %v3415_v45  ;;  %v3417_v11 = vmax.f32 %v3383_v33, 0.0  ;;  %v10954_v45 = vld [vmem:[#allocation2 + $0x28] sm:$0xff]  ;;  %v10957_v33 = vld [vmem:[#allocation2 + $0x30] sm:$0xff]  ;;  %v10960_v27 = vld [vmem:[#allocation2 + $0x38] sm:$0xff] }
0x15a4   :  { %v3416_v9 = vmax.f32 %v3378_v34, 0.0  ;;  %v7778_v30 = vpop.f32.mrb[172].mxu1  ;;  %v10963_v34 = vld [vmem:[#allocation2 + $0x40] sm:$0xff] }
0x15a5   :  { %v3393_v44 = vadd.f32 %v7778_v30, %v10554_v59  ;;  %v3387_v31 = vpop.f32.mrb[173].mxu1  ;;  %v5460_v59 = vld [vmem:[%s11635_s7] ss:$0 sm:$0xff]  ;;  %v10969_v30 = vld [vmem:[#allocation2 + $0x50] sm:$0xff] }
0x15a6   :  { %v3388_v47 = vadd.f32 %v3387_v31, %v10557_v8  ;;  %7829 = vmatprep.mubr.f32.mxu0 %v3416_v9  ;;  %v10966_v9 = vld [vmem:[#allocation2 + $0x48] sm:$0xff] }
0x15a7   :  { %7830 = vmatmul.mubr.f32.gmra.mrb[186].mxu0 %v3417_v11  ;;  %v3419_v62 = vmax.f32 %v3393_v44, 0.0  ;;  %v10972_v11 = vld [vmem:[#allocation2 + $0x58] sm:$0xff]  ;;  %v10975_v44 = vld [vmem:[#allocation2 + $0x60] sm:$0xff]  ;;  %v10978_v31 = vld [vmem:[#allocation2 + $0x68] sm:$0xff] }
0x15a8   :  { %v3418_v32 = vmax.f32 %v3388_v47, 0.0  ;;  %v7781_v49 = vpop.f32.mrb[174].mxu1  ;;  %v10981_v47 = vld [vmem:[#allocation2 + $0x70] sm:$0xff] }
0x15a9   :  { %v3403_v56 = vadd.f32 %v7781_v49, %v10562_v35  ;;  %v3397_v48 = vpop.f32.mrb[175].mxu1 }
0x15aa   :  { %v3398_v57 = vadd.f32 %v3397_v48, %v10565_v60  ;;  %7832 = vmatprep.mubr.f32.mxu0 %v3418_v32  ;;  %v10984_v32 = vld [vmem:[#allocation2 + $0x78] sm:$0xff] }
0x15ab   :  { %7833 = vmatmul.mubr.f32.gmra.mrb[188].mxu0 %v3419_v62  ;;  %v3421_v58 = vmax.f32 %v3403_v56, 0.0 }
0x15ac   :  { %v3420_v10 = vmax.f32 %v3398_v57, 0.0 }
0x15ae   :  { %7835 = vmatprep.mubr.f32.mxu0 %v3420_v10 }
0x15af   :  { %7836 = vmatmul.mubr.f32.gmra.mrb[190].mxu0 %v3421_v58 }
0x15b0   :  { %7926 = vmatprep.mubr.f32.mxu0 %v10871_v0 }
0x1666   :  { %v7816_v8 = vpop.f32.mrb[176].mxu0 }
0x1667   :  { %v10894_v28 = vadd.f32 %v7816_v8, %v5460_v59  ;;  %v3511_v3 = vpop.f32.mrb[177].mxu0 }
0x1668   :  { %v10896_v35 = vadd.f32 %v5460_v59, %v3511_v3 }
0x1669   :  { %v10989_v49 = vmul.f32 0.1, %v10894_v28 }
0x166a   :  { %v9190_v60 = vpack.c.bf16 %v10894_v28, %v10896_v35  ;;  %v7819_v29 = vpop.f32.mrb[178].mxu0  ;;  %v10992_v62 = vmul.f32 0.1, %v10896_v35 }
0x166b   :  { %v10900_v43 = vadd.f32 %v7819_v29, %v5460_v59  ;;  %v3521_v42 = vpop.f32.mrb[179].mxu0 }
0x166c   :  { %v10902_v7 = vadd.f32 %v5460_v59, %v3521_v42  ;;  %9191 = vmatprep.subr.bf16.mxu1 %v9190_v60 }
0x166d   :  { %9193 = vmatpush3.bf16.msra.mxu1 %v9190_v60  ;;  %v10997_v58 = vmul.f32 0.1, %v10900_v43 }
0x166e   :  { %v9194_v21 = vpack.c.bf16 %v10900_v43, %v10902_v7  ;;  %v7822_v22 = vpop.f32.mrb[180].mxu0 }
0x166f   :  { %v10906_v2 = vadd.f32 %v7822_v22, %v5460_v59  ;;  %v3531_v1 = vpop.f32.mrb[181].mxu0 }
0x1670   :  { %v10908_v12 = vadd.f32 %v5460_v59, %v3531_v1  ;;  %9195 = vmatprep.subr.bf16.mxu1 %v9194_v21 }
0x1671   :  { %9197 = vmatpush3.bf16.msra.mxu1 %v9194_v21  ;;  %v11005_v29 = vmul.f32 0.1, %v10906_v2 }
0x1672   :  { %v9198_v13 = vpack.c.bf16 %v10906_v2, %v10908_v12  ;;  %v7825_v4 = vpop.f32.mrb[182].mxu0  ;;  %v11008_v42 = vmul.f32 0.1, %v10908_v12 }
0x1673   :  { %v10912_v15 = vadd.f32 %v7825_v4, %v5460_v59  ;;  %v3541_v16 = vpop.f32.mrb[183].mxu0 }
0x1674   :  { %v10914_v51 = vadd.f32 %v5460_v59, %v3541_v16  ;;  %9199 = vmatprep.subr.bf16.mxu1 %v9198_v13 }
0x1675   :  { %9201 = vmatpush3.bf16.msra.mxu1 %v9198_v13  ;;  %v11013_v13 = vmul.f32 0.1, %v10912_v15 }
0x1676   :  { %v9202_v50 = vpack.c.bf16 %v10912_v15, %v10914_v51  ;;  %v7828_v52 = vpop.f32.mrb[184].mxu0  ;;  %v11016_v4 = vmul.f32 0.1, %v10914_v51 }
0x1677   :  { %v10918_v54 = vadd.f32 %v7828_v52, %v5460_v59  ;;  %v3551_v53 = vpop.f32.mrb[185].mxu0 }
0x1678   :  { %v10920_v19 = vadd.f32 %v5460_v59, %v3551_v53  ;;  %9203 = vmatprep.subr.bf16.mxu1 %v9202_v50 }
0x1679   :  { %9205 = vmatpush3.bf16.msra.mxu1 %v9202_v50  ;;  %v11021_v53 = vmul.f32 0.1, %v10918_v54 }
0x167a   :  { %v9206_v20 = vpack.c.bf16 %v10918_v54, %v10920_v19  ;;  %v7831_v23 = vpop.f32.mrb[186].mxu0 }
0x167b   :  { %v10924_v24 = vadd.f32 %v7831_v23, %v5460_v59  ;;  %v3561_v25 = vpop.f32.mrb[187].mxu0 }
0x167c   :  { %v10926_v26 = vadd.f32 %v5460_v59, %v3561_v25  ;;  %9207 = vmatprep.subr.bf16.mxu1 %v9206_v20 }
0x167d   :  { %9209 = vmatpush3.bf16.msra.mxu1 %v9206_v20  ;;  %v11024_v20 = vmul.f32 0.1, %v10920_v19 }
0x167e   :  { %v9210_v55 = vpack.c.bf16 %v10924_v24, %v10926_v26  ;;  %v7834_v61 = vpop.f32.mrb[188].mxu0 }
0x167f   :  { %v10930_v37 = vadd.f32 %v7834_v61, %v5460_v59  ;;  %v3571_v36 = vpop.f32.mrb[189].mxu0  ;;  %v11029_v61 = vmul.f32 0.1, %v10924_v24 }
0x1680   :  { %v10932_v40 = vadd.f32 %v5460_v59, %v3571_v36  ;;  %9211 = vmatprep.subr.bf16.mxu1 %v9210_v55  ;;  %v11032_v36 = vmul.f32 0.1, %v10926_v26 }
0x1681   :  { %9213 = vmatpush3.bf16.msra.mxu1 %v9210_v55 }
0x1682   :  { %v9214_v38 = vpack.c.bf16 %v10930_v37, %v10932_v40  ;;  %v7837_v17 = vpop.f32.mrb[190].mxu0 }
0x1683   :  { %v10936_v41 = vadd.f32 %v7837_v17, %v5460_v59  ;;  %v3581_v6 = vpop.f32.mrb[191].mxu0 }
0x1684   :  { %v10938_v18 = vadd.f32 %v5460_v59, %v3581_v6  ;;  %9215 = vmatprep.subr.bf16.mxu1 %v9214_v38  ;;  %v11000_v59 = vmul.f32 0.1, %v10902_v7 }
0x1685   :  { %9217 = vmatpush3.bf16.msra.mxu1 %v9214_v38 }
0x1686   :  { %v9218_v5 = vpack.c.bf16 %v10936_v41, %v10938_v18 }
0x1688   :  { %9219 = vmatprep.subr.bf16.mxu1 %v9218_v5 }
0x1689   :  { %9221 = vmatpush3.bf16.msra.mxu1 %v9218_v5  ;;  %v11037_v5 = vmul.f32 0.1, %v10930_v37 }
0x168c   :  { %7871 = vmatmul.mubr.f32.vlgmr.msra.gmra.mrb[176].mxu1 %v10942_v14 }
0x168d   :  { %7873 = vmatprep.mubr.f32.mxu1 %v10945_v63 }
0x1690   :  { %7874 = vmatmul.mubr.f32.gmra.mrb[178].mxu1 %v10948_v46 }
0x1691   :  { %7876 = vmatprep.mubr.f32.mxu1 %v10951_v39 }
0x1694   :  { %7877 = vmatmul.mubr.f32.gmra.mrb[180].mxu1 %v10954_v45 }
0x1695   :  { %7879 = vmatprep.mubr.f32.mxu1 %v10957_v33 }
0x1698   :  { %7880 = vmatmul.mubr.f32.gmra.mrb[182].mxu1 %v10960_v27 }
0x1699   :  { %7882 = vmatprep.mubr.f32.mxu1 %v10963_v34 }
0x169c   :  { %7883 = vmatmul.mubr.f32.gmra.mrb[184].mxu1 %v10966_v9 }
0x169d   :  { %7885 = vmatprep.mubr.f32.mxu1 %v10969_v30 }
0x16a0   :  { %7886 = vmatmul.mubr.f32.gmra.mrb[186].mxu1 %v10972_v11 }
0x16a1   :  { %7888 = vmatprep.mubr.f32.mxu1 %v10975_v44 }
0x16a4   :  { %7889 = vmatmul.mubr.f32.gmra.mrb[188].mxu1 %v10978_v31 }
0x16a5   :  { %7891 = vmatprep.mubr.f32.mxu1 %v10981_v47 }
0x16a8   :  { %7892 = vmatmul.mubr.f32.gmra.mrb[190].mxu1 %v10984_v32 }
0x16a9   :  { %7982 = vmatprep.mubr.f32.mxu1 %v10871_v0 }
0x175f   :  { %v7872_v56 = vpop.f32.mrb[176].mxu1 }
0x1760   :  { %v3678_v48 = vadd.f32 %v7872_v56, %v10989_v49  ;;  %v3672_v57 = vpop.f32.mrb[177].mxu1  ;;  %v11040_v56 = vmul.f32 0.1, %v10932_v40 }
0x1761   :  { %v3673_v10 = vadd.f32 %v3672_v57, %v10992_v62 }
0x1763   :  { %v9222_v8 = vpack.c.bf16 %v3678_v48, %v3673_v10  ;;  %v7875_v3 = vpop.f32.mrb[178].mxu1 }
0x1764   :  { %v3688_v28 = vadd.f32 %v7875_v3, %v10997_v58  ;;  %v3682_v60 = vpop.f32.mrb[179].mxu1  ;;  %v11048_v3 = vmul.f32 0.1, %v10938_v18 }
0x1765   :  { %v3683_v35 = vadd.f32 %v3682_v60, %v11000_v59  ;;  %9223 = vmatprep.subr.bf16.mxu0 %v9222_v8 }
0x1766   :  { %9225 = vmatpush3.bf16.msra.mxu0 %v9222_v8  ;;  %v11045_v8 = vmul.f32 0.1, %v10936_v41 }
0x1767   :  { %v9226_v43 = vpack.c.bf16 %v3688_v28, %v3683_v35  ;;  %v7878_v21 = vpop.f32.mrb[180].mxu1 }
0x1768   :  { %v3698_v7 = vadd.f32 %v7878_v21, %v11005_v29  ;;  %v3692_v22 = vpop.f32.mrb[181].mxu1 }
0x1769   :  { %v3693_v1 = vadd.f32 %v3692_v22, %v11008_v42  ;;  %9227 = vmatprep.subr.bf16.mxu0 %v9226_v43 }
0x176a   :  { %9229 = vmatpush3.bf16.msra.mxu0 %v9226_v43 }
0x176b   :  { %v9230_v2 = vpack.c.bf16 %v3698_v7, %v3693_v1  ;;  %v7881_v16 = vpop.f32.mrb[182].mxu1 }
0x176c   :  { %v3708_v12 = vadd.f32 %v7881_v16, %v11013_v13  ;;  %v3702_v50 = vpop.f32.mrb[183].mxu1 }
0x176d   :  { %v3703_v52 = vadd.f32 %v3702_v50, %v11016_v4  ;;  %9231 = vmatprep.subr.bf16.mxu0 %v9230_v2 }
0x176e   :  { %9233 = vmatpush3.bf16.msra.mxu0 %v9230_v2 }
0x176f   :  { %v9234_v15 = vpack.c.bf16 %v3708_v12, %v3703_v52  ;;  %v7884_v23 = vpop.f32.mrb[184].mxu1 }
0x1770   :  { %v3718_v51 = vadd.f32 %v7884_v23, %v11021_v53  ;;  %v3712_v25 = vpop.f32.mrb[185].mxu1 }
0x1771   :  { %v3713_v55 = vadd.f32 %v3712_v25, %v11024_v20  ;;  %9235 = vmatprep.subr.bf16.mxu0 %v9234_v15 }
0x1772   :  { %9237 = vmatpush3.bf16.msra.mxu0 %v9234_v15 }
0x1773   :  { %v9238_v54 = vpack.c.bf16 %v3718_v51, %v3713_v55  ;;  %v7887_v38 = vpop.f32.mrb[186].mxu1 }
0x1774   :  { %v3728_v19 = vadd.f32 %v7887_v38, %v11029_v61  ;;  %v3722_v17 = vpop.f32.mrb[187].mxu1 }
0x1775   :  { %v3723_v6 = vadd.f32 %v3722_v17, %v11032_v36  ;;  %9239 = vmatprep.subr.bf16.mxu0 %v9238_v54 }
0x1776   :  { %9241 = vmatpush3.bf16.msra.mxu0 %v9238_v54 }
0x1777   :  { %v9242_v24 = vpack.c.bf16 %v3728_v19, %v3723_v6  ;;  %v7890_v48 = vpop.f32.mrb[188].mxu1 }
0x1778   :  { %v3738_v26 = vadd.f32 %v7890_v48, %v11037_v5  ;;  %v3732_v57 = vpop.f32.mrb[189].mxu1 }
0x1779   :  { %v3733_v10 = vadd.f32 %v3732_v57, %v11040_v56  ;;  %9243 = vmatprep.subr.bf16.mxu0 %v9242_v24 }
0x177a   :  { %9245 = vmatpush3.bf16.msra.mxu0 %v9242_v24 }
0x177b   :  { %v9246_v37 = vpack.c.bf16 %v3738_v26, %v3733_v10  ;;  %v7893_v28 = vpop.f32.mrb[190].mxu1 }
0x177c   :  { %v3748_v40 = vadd.f32 %v7893_v28, %v11045_v8  ;;  %v3742_v60 = vpop.f32.mrb[191].mxu1 }
0x177d   :  { %v3743_v35 = vadd.f32 %v3742_v60, %v11048_v3  ;;  %9247 = vmatprep.subr.bf16.mxu0 %v9246_v37 }
0x177e   :  { %9249 = vmatpush3.bf16.msra.mxu0 %v9246_v37 }
0x177f   :  { %v9250_v43 = vpack.c.bf16 %v3748_v40, %v3743_v35 }
0x1781   :  { %9251 = vmatprep.subr.bf16.mxu0 %v9250_v43 }
0x1782   :  { %9253 = vmatpush3.bf16.msra.mxu0 %v9250_v43 }
0x1785   :  { %7927 = vmatmul.mubr.f32.vlgmr.msra.gmra.mrb[192].mxu0 %v10942_v14 }
0x1786   :  { %7929 = vmatprep.mubr.f32.mxu0 %v10945_v63 }
0x1789   :  { %7930 = vmatmul.mubr.f32.gmra.mrb[194].mxu0 %v10948_v46 }
0x178a   :  { %7932 = vmatprep.mubr.f32.mxu0 %v10951_v39 }
0x178d   :  { %7933 = vmatmul.mubr.f32.gmra.mrb[196].mxu0 %v10954_v45 }
0x178e   :  { %7935 = vmatprep.mubr.f32.mxu0 %v10957_v33 }
0x1791   :  { %7936 = vmatmul.mubr.f32.gmra.mrb[198].mxu0 %v10960_v27 }
0x1792   :  { %7938 = vmatprep.mubr.f32.mxu0 %v10963_v34 }
0x1795   :  { %7939 = vmatmul.mubr.f32.gmra.mrb[200].mxu0 %v10966_v9 }
0x1796   :  { %7941 = vmatprep.mubr.f32.mxu0 %v10969_v30 }
0x1799   :  { %7942 = vmatmul.mubr.f32.gmra.mrb[202].mxu0 %v10972_v11 }
0x179a   :  { %7944 = vmatprep.mubr.f32.mxu0 %v10975_v44 }
0x179d   :  { %7945 = vmatmul.mubr.f32.gmra.mrb[204].mxu0 %v10978_v31 }
0x179e   :  { %7947 = vmatprep.mubr.f32.mxu0 %v10981_v47 }
0x17a1   :  { %7948 = vmatmul.mubr.f32.gmra.mrb[206].mxu0 %v10984_v32 }
0x17a2   :  { %8038 = vmatprep.mubr.f32.mxu0 %v10871_v0 }
0x1858   :  { %v7928_v41 = vpop.f32.mrb[192].mxu0 }
0x1859   :  { %v3823_v18 = vadd.f32 %v7928_v41, %v10989_v49  ;;  %v3817_v21 = vpop.f32.mrb[193].mxu0 }
0x185a   :  { %v3818_v7 = vadd.f32 %v3817_v21, %v10992_v62 }
0x185c   :  { %v9254_v22 = vpack.c.bf16 %v3823_v18, %v3818_v7  ;;  %v7931_v1 = vpop.f32.mrb[194].mxu0 }
0x185d   :  { %v3833_v2 = vadd.f32 %v7931_v1, %v10997_v58  ;;  %v3827_v16 = vpop.f32.mrb[195].mxu0 }
0x185e   :  { %v3828_v12 = vadd.f32 %v3827_v16, %v11000_v59  ;;  %9255 = vmatprep.subr.bf16.mxu1 %v9254_v22 }
0x185f   :  { %9257 = vmatpush3.bf16.msra.mxu1 %v9254_v22 }
0x1860   :  { %v9258_v50 = vpack.c.bf16 %v3833_v2, %v3828_v12  ;;  %v7934_v52 = vpop.f32.mrb[196].mxu0 }
0x1861   :  { %v3843_v15 = vadd.f32 %v7934_v52, %v11005_v29  ;;  %v3837_v23 = vpop.f32.mrb[197].mxu0 }
0x1862   :  { %v3838_v51 = vadd.f32 %v3837_v23, %v11008_v42  ;;  %9259 = vmatprep.subr.bf16.mxu1 %v9258_v50 }
0x1863   :  { %9261 = vmatpush3.bf16.msra.mxu1 %v9258_v50 }
0x1864   :  { %v9262_v25 = vpack.c.bf16 %v3843_v15, %v3838_v51  ;;  %v7937_v55 = vpop.f32.mrb[198].mxu0 }
0x1865   :  { %v3853_v54 = vadd.f32 %v7937_v55, %v11013_v13  ;;  %v3847_v38 = vpop.f32.mrb[199].mxu0 }
0x1866   :  { %v3848_v19 = vadd.f32 %v3847_v38, %v11016_v4  ;;  %9263 = vmatprep.subr.bf16.mxu1 %v9262_v25 }
0x1867   :  { %9265 = vmatpush3.bf16.msra.mxu1 %v9262_v25 }
0x1868   :  { %v9266_v17 = vpack.c.bf16 %v3853_v54, %v3848_v19  ;;  %v7940_v6 = vpop.f32.mrb[200].mxu0 }
0x1869   :  { %v3863_v24 = vadd.f32 %v7940_v6, %v11021_v53  ;;  %v3857_v48 = vpop.f32.mrb[201].mxu0 }
0x186a   :  { %v3858_v26 = vadd.f32 %v3857_v48, %v11024_v20  ;;  %9267 = vmatprep.subr.bf16.mxu1 %v9266_v17 }
0x186b   :  { %9269 = vmatpush3.bf16.msra.mxu1 %v9266_v17 }
0x186c   :  { %v9270_v57 = vpack.c.bf16 %v3863_v24, %v3858_v26  ;;  %v7943_v10 = vpop.f32.mrb[202].mxu0 }
0x186d   :  { %v3873_v37 = vadd.f32 %v7943_v10, %v11029_v61  ;;  %v3867_v28 = vpop.f32.mrb[203].mxu0 }
0x186e   :  { %v3868_v40 = vadd.f32 %v3867_v28, %v11032_v36  ;;  %9271 = vmatprep.subr.bf16.mxu1 %v9270_v57 }
0x186f   :  { %9273 = vmatpush3.bf16.msra.mxu1 %v9270_v57 }
0x1870   :  { %v9274_v60 = vpack.c.bf16 %v3873_v37, %v3868_v40  ;;  %v7946_v35 = vpop.f32.mrb[204].mxu0 }
0x1871   :  { %v3883_v43 = vadd.f32 %v7946_v35, %v11037_v5  ;;  %v3877_v41 = vpop.f32.mrb[205].mxu0 }
0x1872   :  { %v3878_v18 = vadd.f32 %v3877_v41, %v11040_v56  ;;  %9275 = vmatprep.subr.bf16.mxu1 %v9274_v60 }
0x1873   :  { %9277 = vmatpush3.bf16.msra.mxu1 %v9274_v60 }
0x1874   :  { %v9278_v21 = vpack.c.bf16 %v3883_v43, %v3878_v18  ;;  %v7949_v7 = vpop.f32.mrb[206].mxu0 }
0x1875   :  { %v3893_v22 = vadd.f32 %v7949_v7, %v11045_v8  ;;  %v3887_v1 = vpop.f32.mrb[207].mxu0 }
0x1876   :  { %v3888_v2 = vadd.f32 %v3887_v1, %v11048_v3  ;;  %9279 = vmatprep.subr.bf16.mxu1 %v9278_v21 }
0x1877   :  { %9281 = vmatpush3.bf16.msra.mxu1 %v9278_v21 }
0x1878   :  { %v9282_v16 = vpack.c.bf16 %v3893_v22, %v3888_v2 }
0x187a   :  { %9283 = vmatprep.subr.bf16.mxu1 %v9282_v16 }
0x187b   :  { %9285 = vmatpush3.bf16.msra.mxu1 %v9282_v16 }
0x187e   :  { %7983 = vmatmul.mubr.f32.vlgmr.msra.gmra.mrb[192].mxu1 %v10942_v14 }
0x187f   :  { %7985 = vmatprep.mubr.f32.mxu1 %v10945_v63 }
0x1882   :  { %7986 = vmatmul.mubr.f32.gmra.mrb[194].mxu1 %v10948_v46 }
0x1883   :  { %7988 = vmatprep.mubr.f32.mxu1 %v10951_v39 }
0x1886   :  { %7989 = vmatmul.mubr.f32.gmra.mrb[196].mxu1 %v10954_v45 }
0x1887   :  { %7991 = vmatprep.mubr.f32.mxu1 %v10957_v33 }
0x188a   :  { %7992 = vmatmul.mubr.f32.gmra.mrb[198].mxu1 %v10960_v27 }
0x188b   :  { %7994 = vmatprep.mubr.f32.mxu1 %v10963_v34 }
0x188e   :  { %7995 = vmatmul.mubr.f32.gmra.mrb[200].mxu1 %v10966_v9 }
0x188f   :  { %7997 = vmatprep.mubr.f32.mxu1 %v10969_v30 }
0x1892   :  { %7998 = vmatmul.mubr.f32.gmra.mrb[202].mxu1 %v10972_v11 }
0x1893   :  { %8000 = vmatprep.mubr.f32.mxu1 %v10975_v44 }
0x1896   :  { %8001 = vmatmul.mubr.f32.gmra.mrb[204].mxu1 %v10978_v31 }
0x1897   :  { %8003 = vmatprep.mubr.f32.mxu1 %v10981_v47 }
0x189a   :  { %8004 = vmatmul.mubr.f32.gmra.mrb[206].mxu1 %v10984_v32 }
0x189b   :  { %8094 = vmatprep.mubr.f32.mxu1 %v10871_v0 }
0x1951   :  { %v7984_v12 = vpop.f32.mrb[192].mxu1 }
0x1952   :  { %v3968_v50 = vadd.f32 %v7984_v12, %v10989_v49  ;;  %v3962_v52 = vpop.f32.mrb[193].mxu1 }
0x1953   :  { %v3963_v15 = vadd.f32 %v3962_v52, %v10992_v62 }
0x1955   :  { %v9286_v23 = vpack.c.bf16 %v3968_v50, %v3963_v15  ;;  %v7987_v51 = vpop.f32.mrb[194].mxu1 }
0x1956   :  { %v3978_v25 = vadd.f32 %v7987_v51, %v10997_v58  ;;  %v3972_v55 = vpop.f32.mrb[195].mxu1 }
0x1957   :  { %v3973_v54 = vadd.f32 %v3972_v55, %v11000_v59  ;;  %9287 = vmatprep.subr.bf16.mxu0 %v9286_v23 }
0x1958   :  { %9289 = vmatpush3.bf16.msra.mxu0 %v9286_v23 }
0x1959   :  { %v9290_v38 = vpack.c.bf16 %v3978_v25, %v3973_v54  ;;  %v7990_v19 = vpop.f32.mrb[196].mxu1 }
0x195a   :  { %v3988_v17 = vadd.f32 %v7990_v19, %v11005_v29  ;;  %v3982_v6 = vpop.f32.mrb[197].mxu1 }
0x195b   :  { %v3983_v24 = vadd.f32 %v3982_v6, %v11008_v42  ;;  %9291 = vmatprep.subr.bf16.mxu0 %v9290_v38 }
0x195c   :  { %9293 = vmatpush3.bf16.msra.mxu0 %v9290_v38 }
0x195d   :  { %v9294_v48 = vpack.c.bf16 %v3988_v17, %v3983_v24  ;;  %v7993_v26 = vpop.f32.mrb[198].mxu1 }
0x195e   :  { %v3998_v57 = vadd.f32 %v7993_v26, %v11013_v13  ;;  %v3992_v10 = vpop.f32.mrb[199].mxu1 }
0x195f   :  { %v3993_v37 = vadd.f32 %v3992_v10, %v11016_v4  ;;  %9295 = vmatprep.subr.bf16.mxu0 %v9294_v48 }
0x1960   :  { %9297 = vmatpush3.bf16.msra.mxu0 %v9294_v48 }
0x1961   :  { %v9298_v28 = vpack.c.bf16 %v3998_v57, %v3993_v37  ;;  %v7996_v40 = vpop.f32.mrb[200].mxu1 }
0x1962   :  { %v4008_v60 = vadd.f32 %v7996_v40, %v11021_v53  ;;  %v4002_v35 = vpop.f32.mrb[201].mxu1 }
0x1963   :  { %v4003_v43 = vadd.f32 %v4002_v35, %v11024_v20  ;;  %9299 = vmatprep.subr.bf16.mxu0 %v9298_v28 }
0x1964   :  { %9301 = vmatpush3.bf16.msra.mxu0 %v9298_v28 }
0x1965   :  { %v9302_v41 = vpack.c.bf16 %v4008_v60, %v4003_v43  ;;  %v7999_v18 = vpop.f32.mrb[202].mxu1 }
0x1966   :  { %v4018_v21 = vadd.f32 %v7999_v18, %v11029_v61  ;;  %v4012_v7 = vpop.f32.mrb[203].mxu1 }
0x1967   :  { %v4013_v22 = vadd.f32 %v4012_v7, %v11032_v36  ;;  %9303 = vmatprep.subr.bf16.mxu0 %v9302_v41 }
0x1968   :  { %9305 = vmatpush3.bf16.msra.mxu0 %v9302_v41 }
0x1969   :  { %v9306_v1 = vpack.c.bf16 %v4018_v21, %v4013_v22  ;;  %v8002_v2 = vpop.f32.mrb[204].mxu1 }
0x196a   :  { %v4028_v16 = vadd.f32 %v8002_v2, %v11037_v5  ;;  %v4022_v12 = vpop.f32.mrb[205].mxu1 }
0x196b   :  { %v4023_v50 = vadd.f32 %v4022_v12, %v11040_v56  ;;  %9307 = vmatprep.subr.bf16.mxu0 %v9306_v1 }
0x196c   :  { %9309 = vmatpush3.bf16.msra.mxu0 %v9306_v1 }
0x196d   :  { %v9310_v52 = vpack.c.bf16 %v4028_v16, %v4023_v50  ;;  %v8005_v15 = vpop.f32.mrb[206].mxu1 }
0x196e   :  { %v4038_v23 = vadd.f32 %v8005_v15, %v11045_v8  ;;  %v4032_v51 = vpop.f32.mrb[207].mxu1 }
0x196f   :  { %v4033_v25 = vadd.f32 %v4032_v51, %v11048_v3  ;;  %9311 = vmatprep.subr.bf16.mxu0 %v9310_v52 }
0x1970   :  { %9313 = vmatpush3.bf16.msra.mxu0 %v9310_v52 }
0x1971   :  { %v9314_v55 = vpack.c.bf16 %v4038_v23, %v4033_v25 }
0x1973   :  { %9315 = vmatprep.subr.bf16.mxu0 %v9314_v55 }
0x1974   :  { %9317 = vmatpush3.bf16.msra.mxu0 %v9314_v55 }
0x1977   :  { %8039 = vmatmul.mubr.f32.vlgmr.msra.gmra.mrb[208].mxu0 %v10942_v14 }
0x1978   :  { %8041 = vmatprep.mubr.f32.mxu0 %v10945_v63 }
0x197b   :  { %8042 = vmatmul.mubr.f32.gmra.mrb[210].mxu0 %v10948_v46 }
0x197c   :  { %8044 = vmatprep.mubr.f32.mxu0 %v10951_v39 }
0x197f   :  { %8045 = vmatmul.mubr.f32.gmra.mrb[212].mxu0 %v10954_v45 }
0x1980   :  { %8047 = vmatprep.mubr.f32.mxu0 %v10957_v33 }
0x1983   :  { %8048 = vmatmul.mubr.f32.gmra.mrb[214].mxu0 %v10960_v27 }
0x1984   :  { %8050 = vmatprep.mubr.f32.mxu0 %v10963_v34 }
0x1987   :  { %8051 = vmatmul.mubr.f32.gmra.mrb[216].mxu0 %v10966_v9 }
0x1988   :  { %8053 = vmatprep.mubr.f32.mxu0 %v10969_v30 }
0x198b   :  { %8054 = vmatmul.mubr.f32.gmra.mrb[218].mxu0 %v10972_v11 }
0x198c   :  { %8056 = vmatprep.mubr.f32.mxu0 %v10975_v44 }
0x198f   :  { %8057 = vmatmul.mubr.f32.gmra.mrb[220].mxu0 %v10978_v31 }
0x1990   :  { %8059 = vmatprep.mubr.f32.mxu0 %v10981_v47 }
0x1993   :  { %8060 = vmatmul.mubr.f32.gmra.mrb[222].mxu0 %v10984_v32 }
0x1994   :  { %8150 = vmatprep.mubr.f32.mxu0 %v10871_v0 }
0x1a4a   :  { %v8040_v54 = vpop.f32.mrb[208].mxu0 }
0x1a4b   :  { %v4113_v38 = vadd.f32 %v8040_v54, %v10989_v49  ;;  %v4107_v19 = vpop.f32.mrb[209].mxu0 }
0x1a4c   :  { %v4108_v17 = vadd.f32 %v4107_v19, %v10992_v62 }
0x1a4e   :  { %v9318_v6 = vpack.c.bf16 %v4113_v38, %v4108_v17  ;;  %v8043_v24 = vpop.f32.mrb[210].mxu0 }
0x1a4f   :  { %v4123_v48 = vadd.f32 %v8043_v24, %v10997_v58  ;;  %v4117_v26 = vpop.f32.mrb[211].mxu0 }
0x1a50   :  { %v4118_v57 = vadd.f32 %v4117_v26, %v11000_v59  ;;  %9319 = vmatprep.subr.bf16.mxu1 %v9318_v6 }
0x1a51   :  { %9321 = vmatpush3.bf16.msra.mxu1 %v9318_v6 }
0x1a52   :  { %v9322_v10 = vpack.c.bf16 %v4123_v48, %v4118_v57  ;;  %v8046_v37 = vpop.f32.mrb[212].mxu0 }
0x1a53   :  { %v4133_v28 = vadd.f32 %v8046_v37, %v11005_v29  ;;  %v4127_v40 = vpop.f32.mrb[213].mxu0 }
0x1a54   :  { %v4128_v60 = vadd.f32 %v4127_v40, %v11008_v42  ;;  %9323 = vmatprep.subr.bf16.mxu1 %v9322_v10 }
0x1a55   :  { %9325 = vmatpush3.bf16.msra.mxu1 %v9322_v10 }
0x1a56   :  { %v9326_v35 = vpack.c.bf16 %v4133_v28, %v4128_v60  ;;  %v8049_v43 = vpop.f32.mrb[214].mxu0 }
0x1a57   :  { %v4143_v41 = vadd.f32 %v8049_v43, %v11013_v13  ;;  %v4137_v18 = vpop.f32.mrb[215].mxu0 }
0x1a58   :  { %v4138_v21 = vadd.f32 %v4137_v18, %v11016_v4  ;;  %9327 = vmatprep.subr.bf16.mxu1 %v9326_v35 }
0x1a59   :  { %9329 = vmatpush3.bf16.msra.mxu1 %v9326_v35 }
0x1a5a   :  { %v9330_v7 = vpack.c.bf16 %v4143_v41, %v4138_v21  ;;  %v8052_v22 = vpop.f32.mrb[216].mxu0 }
0x1a5b   :  { %v4153_v1 = vadd.f32 %v8052_v22, %v11021_v53  ;;  %v4147_v2 = vpop.f32.mrb[217].mxu0 }
0x1a5c   :  { %v4148_v16 = vadd.f32 %v4147_v2, %v11024_v20  ;;  %9331 = vmatprep.subr.bf16.mxu1 %v9330_v7 }
0x1a5d   :  { %9333 = vmatpush3.bf16.msra.mxu1 %v9330_v7 }
0x1a5e   :  { %v9334_v12 = vpack.c.bf16 %v4153_v1, %v4148_v16  ;;  %v8055_v50 = vpop.f32.mrb[218].mxu0 }
0x1a5f   :  { %v4163_v52 = vadd.f32 %v8055_v50, %v11029_v61  ;;  %v4157_v15 = vpop.f32.mrb[219].mxu0 }
0x1a60   :  { %v4158_v23 = vadd.f32 %v4157_v15, %v11032_v36  ;;  %9335 = vmatprep.subr.bf16.mxu1 %v9334_v12 }
0x1a61   :  { %9337 = vmatpush3.bf16.msra.mxu1 %v9334_v12 }
0x1a62   :  { %v9338_v51 = vpack.c.bf16 %v4163_v52, %v4158_v23  ;;  %v8058_v25 = vpop.f32.mrb[220].mxu0 }
0x1a63   :  { %v4173_v55 = vadd.f32 %v8058_v25, %v11037_v5  ;;  %v4167_v54 = vpop.f32.mrb[221].mxu0 }
0x1a64   :  { %v4168_v38 = vadd.f32 %v4167_v54, %v11040_v56  ;;  %9339 = vmatprep.subr.bf16.mxu1 %v9338_v51 }
0x1a65   :  { %9341 = vmatpush3.bf16.msra.mxu1 %v9338_v51 }
0x1a66   :  { %v9342_v19 = vpack.c.bf16 %v4173_v55, %v4168_v38  ;;  %v8061_v17 = vpop.f32.mrb[222].mxu0 }
0x1a67   :  { %v4183_v6 = vadd.f32 %v8061_v17, %v11045_v8  ;;  %v4177_v24 = vpop.f32.mrb[223].mxu0 }
0x1a68   :  { %v4178_v48 = vadd.f32 %v4177_v24, %v11048_v3  ;;  %9343 = vmatprep.subr.bf16.mxu1 %v9342_v19 }
0x1a69   :  { %9345 = vmatpush3.bf16.msra.mxu1 %v9342_v19 }
0x1a6a   :  { %v9346_v26 = vpack.c.bf16 %v4183_v6, %v4178_v48 }
0x1a6c   :  { %9347 = vmatprep.subr.bf16.mxu1 %v9346_v26 }
0x1a6d   :  { %9349 = vmatpush3.bf16.msra.mxu1 %v9346_v26 }
0x1a70   :  { %8095 = vmatmul.mubr.f32.vlgmr.msra.gmra.mrb[208].mxu1 %v10942_v14 }
0x1a71   :  { %8097 = vmatprep.mubr.f32.mxu1 %v10945_v63 }
0x1a74   :  { %8098 = vmatmul.mubr.f32.gmra.mrb[210].mxu1 %v10948_v46 }
0x1a75   :  { %8100 = vmatprep.mubr.f32.mxu1 %v10951_v39 }
0x1a78   :  { %8101 = vmatmul.mubr.f32.gmra.mrb[212].mxu1 %v10954_v45 }
0x1a79   :  { %8103 = vmatprep.mubr.f32.mxu1 %v10957_v33 }
0x1a7c   :  { %8104 = vmatmul.mubr.f32.gmra.mrb[214].mxu1 %v10960_v27 }
0x1a7d   :  { %8106 = vmatprep.mubr.f32.mxu1 %v10963_v34 }
0x1a80   :  { %8107 = vmatmul.mubr.f32.gmra.mrb[216].mxu1 %v10966_v9 }
0x1a81   :  { %8109 = vmatprep.mubr.f32.mxu1 %v10969_v30 }
0x1a84   :  { %8110 = vmatmul.mubr.f32.gmra.mrb[218].mxu1 %v10972_v11 }
0x1a85   :  { %8112 = vmatprep.mubr.f32.mxu1 %v10975_v44 }
0x1a88   :  { %8113 = vmatmul.mubr.f32.gmra.mrb[220].mxu1 %v10978_v31 }
0x1a89   :  { %8115 = vmatprep.mubr.f32.mxu1 %v10981_v47 }
0x1a8c   :  { %8116 = vmatmul.mubr.f32.gmra.mrb[222].mxu1 %v10984_v32 }
0x1a8d   :  { %8206 = vmatprep.mubr.f32.mxu1 %v10871_v0 }
0x1b43   :  { %v8096_v57 = vpop.f32.mrb[208].mxu1 }
0x1b44   :  { %v4258_v10 = vadd.f32 %v8096_v57, %v10989_v49  ;;  %v4252_v37 = vpop.f32.mrb[209].mxu1 }
0x1b45   :  { %v4253_v28 = vadd.f32 %v4252_v37, %v10992_v62 }
0x1b47   :  { %v9350_v40 = vpack.c.bf16 %v4258_v10, %v4253_v28  ;;  %v8099_v60 = vpop.f32.mrb[210].mxu1 }
0x1b48   :  { %v4268_v35 = vadd.f32 %v8099_v60, %v10997_v58  ;;  %v4262_v43 = vpop.f32.mrb[211].mxu1 }
0x1b49   :  { %v4263_v41 = vadd.f32 %v4262_v43, %v11000_v59  ;;  %9351 = vmatprep.subr.bf16.mxu0 %v9350_v40  ;;  %v11195_v43 = vld [vmem:[#allocation2] sm:$0xff] }
0x1b4a   :  { %9353 = vmatpush3.bf16.msra.mxu0 %v9350_v40 }
0x1b4b   :  { %v9354_v18 = vpack.c.bf16 %v4268_v35, %v4263_v41  ;;  %v8102_v21 = vpop.f32.mrb[212].mxu1 }
0x1b4c   :  { %v4278_v7 = vadd.f32 %v8102_v21, %v11005_v29  ;;  %v4272_v0 = vpop.f32.mrb[213].mxu1 }
0x1b4d   :  { %v4273_v22 = vadd.f32 %v4272_v0, %v11008_v42  ;;  %9355 = vmatprep.subr.bf16.mxu0 %v9354_v18 }
0x1b4e   :  { %9357 = vmatpush3.bf16.msra.mxu0 %v9354_v18 }
0x1b4f   :  { %v9358_v1 = vpack.c.bf16 %v4278_v7, %v4273_v22  ;;  %v8105_v2 = vpop.f32.mrb[214].mxu1 }
0x1b50   :  { %v4288_v16 = vadd.f32 %v8105_v2, %v11013_v13  ;;  %v4282_v12 = vpop.f32.mrb[215].mxu1 }
0x1b51   :  { %v4283_v50 = vadd.f32 %v4282_v12, %v11016_v4  ;;  %9359 = vmatprep.subr.bf16.mxu0 %v9358_v1 }
0x1b52   :  { %9361 = vmatpush3.bf16.msra.mxu0 %v9358_v1 }
0x1b53   :  { %v9362_v52 = vpack.c.bf16 %v4288_v16, %v4283_v50  ;;  %v8108_v15 = vpop.f32.mrb[216].mxu1 }
0x1b54   :  { %v4298_v23 = vadd.f32 %v8108_v15, %v11021_v53  ;;  %v4292_v51 = vpop.f32.mrb[217].mxu1 }
0x1b55   :  { %v4293_v25 = vadd.f32 %v4292_v51, %v11024_v20  ;;  %9363 = vmatprep.subr.bf16.mxu0 %v9362_v52 }
0x1b56   :  { %9365 = vmatpush3.bf16.msra.mxu0 %v9362_v52 }
0x1b57   :  { %v9366_v55 = vpack.c.bf16 %v4298_v23, %v4293_v25  ;;  %v8111_v54 = vpop.f32.mrb[218].mxu1 }
0x1b58   :  { %v4308_v38 = vadd.f32 %v8111_v54, %v11029_v61  ;;  %v4302_v19 = vpop.f32.mrb[219].mxu1 }
0x1b59   :  { %v4303_v17 = vadd.f32 %v4302_v19, %v11032_v36  ;;  %9367 = vmatprep.subr.bf16.mxu0 %v9366_v55 }
0x1b5a   :  { %9369 = vmatpush3.bf16.msra.mxu0 %v9366_v55 }
0x1b5b   :  { %v9370_v6 = vpack.c.bf16 %v4308_v38, %v4303_v17  ;;  %v8114_v24 = vpop.f32.mrb[220].mxu1 }
0x1b5c   :  { %v4318_v48 = vadd.f32 %v8114_v24, %v11037_v5  ;;  %v4312_v26 = vpop.f32.mrb[221].mxu1 }
0x1b5d   :  { %v4313_v57 = vadd.f32 %v4312_v26, %v11040_v56  ;;  %9371 = vmatprep.subr.bf16.mxu0 %v9370_v6 }
0x1b5e   :  { %9373 = vmatpush3.bf16.msra.mxu0 %v9370_v6 }
0x1b5f   :  { %v9374_v10 = vpack.c.bf16 %v4318_v48, %v4313_v57  ;;  %v8117_v37 = vpop.f32.mrb[222].mxu1 }
0x1b60   :  { %v4328_v28 = vadd.f32 %v8117_v37, %v11045_v8  ;;  %v4322_v40 = vpop.f32.mrb[223].mxu1 }
0x1b61   :  { %v4323_v60 = vadd.f32 %v4322_v40, %v11048_v3  ;;  %9375 = vmatprep.subr.bf16.mxu0 %v9374_v10 }
0x1b62   :  { %9377 = vmatpush3.bf16.msra.mxu0 %v9374_v10 }
0x1b63   :  { %v9378_v35 = vpack.c.bf16 %v4328_v28, %v4323_v60 }
0x1b65   :  { %9379 = vmatprep.subr.bf16.mxu0 %v9378_v35 }
0x1b66   :  { %9381 = vmatpush3.bf16.msra.mxu0 %v9378_v35 }
0x1b69   :  { %8151 = vmatmul.mubr.f32.vlgmr.msra.gmra.mrb[224].mxu0 %v10942_v14 }
0x1b6a   :  { %8153 = vmatprep.mubr.f32.mxu0 %v10945_v63 }
0x1b6d   :  { %8154 = vmatmul.mubr.f32.gmra.mrb[226].mxu0 %v10948_v46 }
0x1b6e   :  { %8156 = vmatprep.mubr.f32.mxu0 %v10951_v39 }
0x1b71   :  { %8157 = vmatmul.mubr.f32.gmra.mrb[228].mxu0 %v10954_v45 }
0x1b72   :  { %8159 = vmatprep.mubr.f32.mxu0 %v10957_v33 }
0x1b75   :  { %8160 = vmatmul.mubr.f32.gmra.mrb[230].mxu0 %v10960_v27 }
0x1b76   :  { %8162 = vmatprep.mubr.f32.mxu0 %v10963_v34 }
0x1b79   :  { %8163 = vmatmul.mubr.f32.gmra.mrb[232].mxu0 %v10966_v9 }
0x1b7a   :  { %8165 = vmatprep.mubr.f32.mxu0 %v10969_v30 }
0x1b7d   :  { %8166 = vmatmul.mubr.f32.gmra.mrb[234].mxu0 %v10972_v11 }
0x1b7e   :  { %8168 = vmatprep.mubr.f32.mxu0 %v10975_v44 }
0x1b81   :  { %8169 = vmatmul.mubr.f32.gmra.mrb[236].mxu0 %v10978_v31 }
0x1b82   :  { %8171 = vmatprep.mubr.f32.mxu0 %v10981_v47 }
0x1b85   :  { %8172 = vmatmul.mubr.f32.gmra.mrb[238].mxu0 %v10984_v32 }
0x1b86   :  { %8262 = vmatprep.mubr.f32.mxu0 %v11195_v43 }
0x1c3c   :  { %v8152_v41 = vpop.f32.mrb[224].mxu0 }
0x1c3d   :  { %v4403_v18 = vadd.f32 %v8152_v41, %v10989_v49  ;;  %v4397_v21 = vpop.f32.mrb[225].mxu0 }
0x1c3e   :  { %v4398_v7 = vadd.f32 %v4397_v21, %v10992_v62 }
0x1c40   :  { %v9382_v0 = vpack.c.bf16 %v4403_v18, %v4398_v7  ;;  %v8155_v22 = vpop.f32.mrb[226].mxu0 }
0x1c41   :  { %v4413_v1 = vadd.f32 %v8155_v22, %v10997_v58  ;;  %v4407_v2 = vpop.f32.mrb[227].mxu0 }
0x1c42   :  { %v4408_v16 = vadd.f32 %v4407_v2, %v11000_v59  ;;  %9383 = vmatprep.subr.bf16.mxu1 %v9382_v0 }
0x1c43   :  { %9385 = vmatpush3.bf16.msra.mxu1 %v9382_v0 }
0x1c44   :  { %v9386_v12 = vpack.c.bf16 %v4413_v1, %v4408_v16  ;;  %v8158_v50 = vpop.f32.mrb[228].mxu0 }
0x1c45   :  { %v4423_v52 = vadd.f32 %v8158_v50, %v11005_v29  ;;  %v4417_v15 = vpop.f32.mrb[229].mxu0 }
0x1c46   :  { %v4418_v23 = vadd.f32 %v4417_v15, %v11008_v42  ;;  %9387 = vmatprep.subr.bf16.mxu1 %v9386_v12 }
0x1c47   :  { %9389 = vmatpush3.bf16.msra.mxu1 %v9386_v12 }
0x1c48   :  { %v9390_v51 = vpack.c.bf16 %v4423_v52, %v4418_v23  ;;  %v8161_v25 = vpop.f32.mrb[230].mxu0 }
0x1c49   :  { %v4433_v55 = vadd.f32 %v8161_v25, %v11013_v13  ;;  %v4427_v54 = vpop.f32.mrb[231].mxu0 }
0x1c4a   :  { %v4428_v38 = vadd.f32 %v4427_v54, %v11016_v4  ;;  %9391 = vmatprep.subr.bf16.mxu1 %v9390_v51 }
0x1c4b   :  { %9393 = vmatpush3.bf16.msra.mxu1 %v9390_v51 }
0x1c4c   :  { %v9394_v19 = vpack.c.bf16 %v4433_v55, %v4428_v38  ;;  %v8164_v17 = vpop.f32.mrb[232].mxu0 }
0x1c4d   :  { %v4443_v6 = vadd.f32 %v8164_v17, %v11021_v53  ;;  %v4437_v24 = vpop.f32.mrb[233].mxu0 }
0x1c4e   :  { %v4438_v48 = vadd.f32 %v4437_v24, %v11024_v20  ;;  %9395 = vmatprep.subr.bf16.mxu1 %v9394_v19 }
0x1c4f   :  { %9397 = vmatpush3.bf16.msra.mxu1 %v9394_v19 }
0x1c50   :  { %v9398_v26 = vpack.c.bf16 %v4443_v6, %v4438_v48  ;;  %v8167_v57 = vpop.f32.mrb[234].mxu0 }
0x1c51   :  { %v4453_v10 = vadd.f32 %v8167_v57, %v11029_v61  ;;  %v4447_v37 = vpop.f32.mrb[235].mxu0 }
0x1c52   :  { %v4448_v28 = vadd.f32 %v4447_v37, %v11032_v36  ;;  %9399 = vmatprep.subr.bf16.mxu1 %v9398_v26 }
0x1c53   :  { %9401 = vmatpush3.bf16.msra.mxu1 %v9398_v26 }
0x1c54   :  { %v9402_v40 = vpack.c.bf16 %v4453_v10, %v4448_v28  ;;  %v8170_v60 = vpop.f32.mrb[236].mxu0 }
0x1c55   :  { %v4463_v35 = vadd.f32 %v8170_v60, %v11037_v5  ;;  %v4457_v41 = vpop.f32.mrb[237].mxu0 }
0x1c56   :  { %v4458_v18 = vadd.f32 %v4457_v41, %v11040_v56  ;;  %9403 = vmatprep.subr.bf16.mxu1 %v9402_v40 }
0x1c57   :  { %9405 = vmatpush3.bf16.msra.mxu1 %v9402_v40 }
0x1c58   :  { %v9406_v21 = vpack.c.bf16 %v4463_v35, %v4458_v18  ;;  %v8173_v7 = vpop.f32.mrb[238].mxu0  ;;  %v11246_v18 = vld [vmem:[#allocation2 + $0x8] sm:$0xff] }
0x1c59   :  { %v4473_v0 = vadd.f32 %v8173_v7, %v11045_v8  ;;  %v4467_v22 = vpop.f32.mrb[239].mxu0  ;;  %v11252_v7 = vld [vmem:[#allocation2 + $0x18] sm:$0xff] }
0x1c5a   :  { %v4468_v1 = vadd.f32 %v4467_v22, %v11048_v3  ;;  %9407 = vmatprep.subr.bf16.mxu1 %v9406_v21  ;;  %v11258_v22 = vld [vmem:[#allocation2 + $0x28] sm:$0xff] }
0x1c5b   :  { %9409 = vmatpush3.bf16.msra.mxu1 %v9406_v21  ;;  %v11249_v21 = vld [vmem:[#allocation2 + $0x10] sm:$0xff] }
0x1c5c   :  { %v9410_v2 = vpack.c.bf16 %v4473_v0, %v4468_v1  ;;  %v11255_v0 = vld [vmem:[#allocation2 + $0x20] sm:$0xff]  ;;  %v11261_v1 = vld [vmem:[#allocation2 + $0x30] sm:$0xff] }
0x1c5e   :  { %9411 = vmatprep.subr.bf16.mxu1 %v9410_v2 }
0x1c5f   :  { %9413 = vmatpush3.bf16.msra.mxu1 %v9410_v2  ;;  %v11264_v2 = vld [vmem:[#allocation2 + $0x38] sm:$0xff] }
0x1c62   :  { %8207 = vmatmul.mubr.f32.vlgmr.msra.gmra.mrb[224].mxu1 %v10942_v14 }
0x1c63   :  { %8209 = vmatprep.mubr.f32.mxu1 %v10945_v63 }
0x1c66   :  { %8210 = vmatmul.mubr.f32.gmra.mrb[226].mxu1 %v10948_v46 }
0x1c67   :  { %8212 = vmatprep.mubr.f32.mxu1 %v10951_v39 }
0x1c6a   :  { %8213 = vmatmul.mubr.f32.gmra.mrb[228].mxu1 %v10954_v45 }
0x1c6b   :  { %8215 = vmatprep.mubr.f32.mxu1 %v10957_v33 }
0x1c6e   :  { %8216 = vmatmul.mubr.f32.gmra.mrb[230].mxu1 %v10960_v27 }
0x1c6f   :  { %8218 = vmatprep.mubr.f32.mxu1 %v10963_v34 }
0x1c72   :  { %8219 = vmatmul.mubr.f32.gmra.mrb[232].mxu1 %v10966_v9 }
0x1c73   :  { %8221 = vmatprep.mubr.f32.mxu1 %v10969_v30 }
0x1c76   :  { %8222 = vmatmul.mubr.f32.gmra.mrb[234].mxu1 %v10972_v11 }
0x1c77   :  { %8224 = vmatprep.mubr.f32.mxu1 %v10975_v44 }
0x1c7a   :  { %8225 = vmatmul.mubr.f32.gmra.mrb[236].mxu1 %v10978_v31 }
0x1c7b   :  { %8227 = vmatprep.mubr.f32.mxu1 %v10981_v47 }
0x1c7e   :  { %8228 = vmatmul.mubr.f32.gmra.mrb[238].mxu1 %v10984_v32 }
0x1c7f   :  { %8318 = vmatprep.mubr.f32.mxu1 %v11195_v43 }
0x1d35   :  { %v8208_v14 = vpop.f32.mrb[224].mxu1 }
0x1d36   :  { %v4548_v63 = vadd.f32 %v8208_v14, %v10989_v49  ;;  %v4542_v46 = vpop.f32.mrb[225].mxu1  ;;  %v11267_v14 = vld [vmem:[#allocation2 + $0x40] sm:$0xff] }
0x1d37   :  { %v4543_v39 = vadd.f32 %v4542_v46, %v10992_v62  ;;  %v11273_v46 = vld [vmem:[#allocation2 + $0x50] sm:$0xff] }
0x1d39   :  { %v9414_v45 = vpack.c.bf16 %v4548_v63, %v4543_v39  ;;  %v8211_v33 = vpop.f32.mrb[226].mxu1  ;;  %v11270_v63 = vld [vmem:[#allocation2 + $0x48] sm:$0xff]  ;;  %v11276_v39 = vld [vmem:[#allocation2 + $0x58] sm:$0xff] }
0x1d3a   :  { %v4558_v27 = vadd.f32 %v8211_v33, %v10997_v58  ;;  %v4552_v34 = vpop.f32.mrb[227].mxu1  ;;  %v11282_v33 = vld [vmem:[#allocation2 + $0x68] sm:$0xff] }
0x1d3b   :  { %v4553_v9 = vadd.f32 %v4552_v34, %v11000_v59  ;;  %9415 = vmatprep.subr.bf16.mxu0 %v9414_v45  ;;  %v11288_v34 = vld [vmem:[#allocation2 + $0x78] sm:$0xff] }
0x1d3c   :  { %9417 = vmatpush3.bf16.msra.mxu0 %v9414_v45  ;;  %v11279_v45 = vld [vmem:[#allocation2 + $0x60] sm:$0xff] }
0x1d3d   :  { %v9418_v30 = vpack.c.bf16 %v4558_v27, %v4553_v9  ;;  %v8214_v11 = vpop.f32.mrb[228].mxu1  ;;  %v11285_v27 = vld [vmem:[#allocation2 + $0x70] sm:$0xff] }
0x1d3e   :  { %v4568_v44 = vadd.f32 %v8214_v11, %v11005_v29  ;;  %v4562_v31 = vpop.f32.mrb[229].mxu1 }
0x1d3f   :  { %v4563_v47 = vadd.f32 %v4562_v31, %v11008_v42  ;;  %9419 = vmatprep.subr.bf16.mxu0 %v9418_v30 }
0x1d40   :  { %9421 = vmatpush3.bf16.msra.mxu0 %v9418_v30 }
0x1d41   :  { %v9422_v32 = vpack.c.bf16 %v4568_v44, %v4563_v47  ;;  %v8217_v16 = vpop.f32.mrb[230].mxu1 }
0x1d42   :  { %v4578_v12 = vadd.f32 %v8217_v16, %v11013_v13  ;;  %v4572_v50 = vpop.f32.mrb[231].mxu1 }
0x1d43   :  { %v4573_v52 = vadd.f32 %v4572_v50, %v11016_v4  ;;  %9423 = vmatprep.subr.bf16.mxu0 %v9422_v32 }
0x1d44   :  { %9425 = vmatpush3.bf16.msra.mxu0 %v9422_v32 }
0x1d45   :  { %v9426_v15 = vpack.c.bf16 %v4578_v12, %v4573_v52  ;;  %v8220_v23 = vpop.f32.mrb[232].mxu1 }
0x1d46   :  { %v4588_v51 = vadd.f32 %v8220_v23, %v11021_v53  ;;  %v4582_v25 = vpop.f32.mrb[233].mxu1 }
0x1d47   :  { %v4583_v55 = vadd.f32 %v4582_v25, %v11024_v20  ;;  %9427 = vmatprep.subr.bf16.mxu0 %v9426_v15 }
0x1d48   :  { %9429 = vmatpush3.bf16.msra.mxu0 %v9426_v15 }
0x1d49   :  { %v9430_v54 = vpack.c.bf16 %v4588_v51, %v4583_v55  ;;  %v8223_v38 = vpop.f32.mrb[234].mxu1 }
0x1d4a   :  { %v4598_v19 = vadd.f32 %v8223_v38, %v11029_v61  ;;  %v4592_v17 = vpop.f32.mrb[235].mxu1 }
0x1d4b   :  { %v4593_v6 = vadd.f32 %v4592_v17, %v11032_v36  ;;  %9431 = vmatprep.subr.bf16.mxu0 %v9430_v54 }
0x1d4c   :  { %9433 = vmatpush3.bf16.msra.mxu0 %v9430_v54 }
0x1d4d   :  { %v9434_v24 = vpack.c.bf16 %v4598_v19, %v4593_v6  ;;  %v8226_v48 = vpop.f32.mrb[236].mxu1 }
0x1d4e   :  { %v4608_v26 = vadd.f32 %v8226_v48, %v11037_v5  ;;  %v4602_v57 = vpop.f32.mrb[237].mxu1 }
0x1d4f   :  { %v4603_v10 = vadd.f32 %v4602_v57, %v11040_v56  ;;  %9435 = vmatprep.subr.bf16.mxu0 %v9434_v24 }
0x1d50   :  { %9437 = vmatpush3.bf16.msra.mxu0 %v9434_v24 }
0x1d51   :  { %v9438_v37 = vpack.c.bf16 %v4608_v26, %v4603_v10  ;;  %v8229_v28 = vpop.f32.mrb[238].mxu1 }
0x1d52   :  { %v4618_v40 = vadd.f32 %v8229_v28, %v11045_v8  ;;  %v4612_v60 = vpop.f32.mrb[239].mxu1 }
0x1d53   :  { %v4613_v35 = vadd.f32 %v4612_v60, %v11048_v3  ;;  %9439 = vmatprep.subr.bf16.mxu0 %v9438_v37 }
0x1d54   :  { %9441 = vmatpush3.bf16.msra.mxu0 %v9438_v37 }
0x1d55   :  { %v9442_v41 = vpack.c.bf16 %v4618_v40, %v4613_v35 }
0x1d57   :  { %9443 = vmatprep.subr.bf16.mxu0 %v9442_v41 }
0x1d58   :  { %9445 = vmatpush3.bf16.msra.mxu0 %v9442_v41 }
0x1d5b   :  { %8263 = vmatmul.mubr.f32.vlgmr.msra.gmra.mrb[240].mxu0 %v11246_v18 }
0x1d5c   :  { %8265 = vmatprep.mubr.f32.mxu0 %v11249_v21 }
0x1d5f   :  { %8266 = vmatmul.mubr.f32.gmra.mrb[242].mxu0 %v11252_v7 }
0x1d60   :  { %8268 = vmatprep.mubr.f32.mxu0 %v11255_v0 }
0x1d63   :  { %8269 = vmatmul.mubr.f32.gmra.mrb[244].mxu0 %v11258_v22 }
0x1d64   :  { %8271 = vmatprep.mubr.f32.mxu0 %v11261_v1 }
0x1d67   :  { %8272 = vmatmul.mubr.f32.gmra.mrb[246].mxu0 %v11264_v2 }
0x1d68   :  { %8274 = vmatprep.mubr.f32.mxu0 %v11267_v14 }
0x1d6b   :  { %8275 = vmatmul.mubr.f32.gmra.mrb[248].mxu0 %v11270_v63 }
0x1d6c   :  { %8277 = vmatprep.mubr.f32.mxu0 %v11273_v46 }
0x1d6f   :  { %8278 = vmatmul.mubr.f32.gmra.mrb[250].mxu0 %v11276_v39 }
0x1d70   :  { %8280 = vmatprep.mubr.f32.mxu0 %v11279_v45 }
0x1d73   :  { %8281 = vmatmul.mubr.f32.gmra.mrb[252].mxu0 %v11282_v33 }
0x1d74   :  { %8283 = vmatprep.mubr.f32.mxu0 %v11285_v27 }
0x1d77   :  { %8284 = vmatmul.mubr.f32.gmra.mrb[254].mxu0 %v11288_v34 }
0x1d78   :  { %8374 = vmatprep.mubr.f32.mxu0 %v11195_v43 }
0x1e2e   :  { %v8264_v9 = vpop.f32.mrb[240].mxu0 }
0x1e2f   :  { %v4693_v30 = vadd.f32 %v8264_v9, %v10989_v49  ;;  %v4687_v11 = vpop.f32.mrb[241].mxu0 }
0x1e30   :  { %v4688_v44 = vadd.f32 %v4687_v11, %v10992_v62 }
0x1e32   :  { %v9446_v31 = vpack.c.bf16 %v4693_v30, %v4688_v44  ;;  %v8267_v47 = vpop.f32.mrb[242].mxu0 }
0x1e33   :  { %v4703_v32 = vadd.f32 %v8267_v47, %v10997_v58  ;;  %v4697_v16 = vpop.f32.mrb[243].mxu0 }
0x1e34   :  { %v4698_v12 = vadd.f32 %v4697_v16, %v11000_v59  ;;  %9447 = vmatprep.subr.bf16.mxu1 %v9446_v31  ;;  %v5072_v16 = vld [vmem:[%s11636_s8] sm:$0xff] }
0x1e35   :  { %9449 = vmatpush3.bf16.msra.mxu1 %v9446_v31 }
0x1e36   :  { %v9450_v50 = vpack.c.bf16 %v4703_v32, %v4698_v12  ;;  %v8270_v52 = vpop.f32.mrb[244].mxu0  ;;  %v5073_v12 = vld [vmem:[%s11636_s8 + $0x8] sm:$0xff] }
0x1e37   :  { %v4713_v15 = vadd.f32 %v8270_v52, %v11005_v29  ;;  %v4707_v43 = vpop.f32.mrb[245].mxu0  ;;  %v9510_v52 = vpack.c.bf16 %v5073_v12, %v5072_v16 }
0x1e38   :  { %v4708_v23 = vadd.f32 %v4707_v43, %v11008_v42  ;;  %9451 = vmatprep.subr.bf16.mxu1 %v9450_v50 }
0x1e39   :  { %9453 = vmatpush3.bf16.msra.mxu1 %v9450_v50  ;;  %v5074_v50 = vld [vmem:[%s11636_s8 + $0x10] sm:$0xff] }
0x1e3a   :  { %v9454_v51 = vpack.c.bf16 %v4713_v15, %v4708_v23  ;;  %v8273_v25 = vpop.f32.mrb[246].mxu0  ;;  %v5075_v15 = vld [vmem:[%s11636_s8 + $0x18] sm:$0xff]  ;;  %v5076_v23 = vld [vmem:[%s11636_s8 + $0x20] sm:$0xff] }
0x1e3b   :  { %v4723_v55 = vadd.f32 %v8273_v25, %v11013_v13  ;;  %v4717_v54 = vpop.f32.mrb[247].mxu0  ;;  %v9514_v43 = vpack.c.bf16 %v5075_v15, %v5074_v50 }
0x1e3c   :  { %v4718_v38 = vadd.f32 %v4717_v54, %v11016_v4  ;;  %9455 = vmatprep.subr.bf16.mxu1 %v9454_v51  ;;  %v5079_v54 = vld [vmem:[%s11636_s8 + $0x38] sm:$0xff] }
0x1e3d   :  { %9457 = vmatpush3.bf16.msra.mxu1 %v9454_v51  ;;  %v5077_v51 = vld [vmem:[%s11636_s8 + $0x28] sm:$0xff] }
0x1e3e   :  { %v9458_v19 = vpack.c.bf16 %v4723_v55, %v4718_v38  ;;  %v8276_v17 = vpop.f32.mrb[248].mxu0  ;;  %v9518_v25 = vpack.c.bf16 %v5077_v51, %v5076_v23  ;;  %v5078_v55 = vld [vmem:[%s11636_s8 + $0x30] sm:$0xff] }
0x1e3f   :  { %v4733_v6 = vadd.f32 %v8276_v17, %v11021_v53  ;;  %v4727_v24 = vpop.f32.mrb[249].mxu0  ;;  %v9522_v38 = vpack.c.bf16 %v5079_v54, %v5078_v55  ;;  %v5081_v17 = vld [vmem:[%s11636_s8 + $0x48] sm:$0xff] }
0x1e40   :  { %v4728_v48 = vadd.f32 %v4727_v24, %v11024_v20  ;;  %9459 = vmatprep.subr.bf16.mxu1 %v9458_v19  ;;  %v5082_v24 = vld [vmem:[%s11636_s8 + $0x50] sm:$0xff] }
0x1e41   :  { %9461 = vmatpush3.bf16.msra.mxu1 %v9458_v19  ;;  %v5080_v19 = vld [vmem:[%s11636_s8 + $0x40] sm:$0xff] }
0x1e42   :  { %v9462_v26 = vpack.c.bf16 %v4733_v6, %v4728_v48  ;;  %v8279_v57 = vpop.f32.mrb[250].mxu0  ;;  %v9526_v6 = vpack.c.bf16 %v5081_v17, %v5080_v19  ;;  %v5083_v48 = vld [vmem:[%s11636_s8 + $0x58] sm:$0xff] }
0x1e43   :  { %v4743_v10 = vadd.f32 %v8279_v57, %v11029_v61  ;;  %v4737_v37 = vpop.f32.mrb[251].mxu0  ;;  %v5084_v57 = vld [vmem:[%s11636_s8 + $0x60] sm:$0xff] }
0x1e44   :  { %v4738_v28 = vadd.f32 %v4737_v37, %v11032_v36  ;;  %9463 = vmatprep.subr.bf16.mxu1 %v9462_v26 }
0x1e45   :  { %9465 = vmatpush3.bf16.msra.mxu1 %v9462_v26  ;;  %v9530_v26 = vpack.c.bf16 %v5083_v48, %v5082_v24 }
0x1e46   :  { %v9466_v40 = vpack.c.bf16 %v4743_v10, %v4738_v28  ;;  %v8282_v60 = vpop.f32.mrb[252].mxu0  ;;  %v5085_v10 = vld [vmem:[%s11636_s8 + $0x68] sm:$0xff] }
0x1e47   :  { %v4753_v35 = vadd.f32 %v8282_v60, %v11037_v5  ;;  %v4747_v41 = vpop.f32.mrb[253].mxu0  ;;  %v9534_v37 = vpack.c.bf16 %v5085_v10, %v5084_v57 }
0x1e48   :  { %v4748_v9 = vadd.f32 %v4747_v41, %v11040_v56  ;;  %9467 = vmatprep.subr.bf16.mxu1 %v9466_v40 }
0x1e49   :  { %9469 = vmatpush3.bf16.msra.mxu1 %v9466_v40 }
0x1e4a   :  { %v9470_v30 = vpack.c.bf16 %v4753_v35, %v4748_v9  ;;  %v8285_v11 = vpop.f32.mrb[254].mxu0 }
0x1e4b   :  { %v4763_v44 = vadd.f32 %v8285_v11, %v11045_v8  ;;  %v4757_v31 = vpop.f32.mrb[255].mxu0 }
0x1e4c   :  { %v4758_v47 = vadd.f32 %v4757_v31, %v11048_v3  ;;  %9471 = vmatprep.subr.bf16.mxu1 %v9470_v30 }
0x1e4d   :  { %9473 = vmatpush3.bf16.msra.mxu1 %v9470_v30 }
0x1e4e   :  { %v9474_v32 = vpack.c.bf16 %v4763_v44, %v4758_v47 }
0x1e50   :  { %9475 = vmatprep.subr.bf16.mxu1 %v9474_v32 }
0x1e51   :  { %9477 = vmatpush3.bf16.msra.mxu1 %v9474_v32 }
0x1e52   :  { %9511 = vmatprep.subr.bf16.mxu1 %v9510_v52 }
0x1e54   :  { %8319 = vmatmul.mubr.f32.vlgmr.msra.gmra.mrb[240].mxu1 %v11246_v18 }
0x1e55   :  { %8321 = vmatprep.mubr.f32.mxu1 %v11249_v21  ;;  %9513 = vmatpush3.bf16.msra.mxu1 %v9510_v52 }
0x1e56   :  { %9515 = vmatprep.subr.bf16.mxu1 %v9514_v43 }
0x1e58   :  { %8322 = vmatmul.mubr.f32.gmra.mrb[242].mxu1 %v11252_v7 }
0x1e59   :  { %8324 = vmatprep.mubr.f32.mxu1 %v11255_v0  ;;  %9517 = vmatpush3.bf16.msra.mxu1 %v9514_v43 }
0x1e5a   :  { %9519 = vmatprep.subr.bf16.mxu1 %v9518_v25 }
0x1e5c   :  { %8325 = vmatmul.mubr.f32.gmra.mrb[244].mxu1 %v11258_v22 }
0x1e5d   :  { %8327 = vmatprep.mubr.f32.mxu1 %v11261_v1  ;;  %9521 = vmatpush3.bf16.msra.mxu1 %v9518_v25 }
0x1e5e   :  { %9523 = vmatprep.subr.bf16.mxu1 %v9522_v38 }
0x1e60   :  { %8328 = vmatmul.mubr.f32.gmra.mrb[246].mxu1 %v11264_v2 }
0x1e61   :  { %8330 = vmatprep.mubr.f32.mxu1 %v11267_v14  ;;  %9525 = vmatpush3.bf16.msra.mxu1 %v9522_v38 }
0x1e62   :  { %9527 = vmatprep.subr.bf16.mxu1 %v9526_v6 }
0x1e64   :  { %8331 = vmatmul.mubr.f32.gmra.mrb[248].mxu1 %v11270_v63 }
0x1e65   :  { %8333 = vmatprep.mubr.f32.mxu1 %v11273_v46  ;;  %9529 = vmatpush3.bf16.msra.mxu1 %v9526_v6 }
0x1e66   :  { %9531 = vmatprep.subr.bf16.mxu1 %v9530_v26 }
0x1e68   :  { %8334 = vmatmul.mubr.f32.gmra.mrb[250].mxu1 %v11276_v39 }
0x1e69   :  { %8336 = vmatprep.mubr.f32.mxu1 %v11279_v45  ;;  %9533 = vmatpush3.bf16.msra.mxu1 %v9530_v26 }
0x1e6a   :  { %9535 = vmatprep.subr.bf16.mxu1 %v9534_v37 }
0x1e6c   :  { %8337 = vmatmul.mubr.f32.gmra.mrb[252].mxu1 %v11282_v33 }
0x1e6d   :  { %8339 = vmatprep.mubr.f32.mxu1 %v11285_v27  ;;  %9537 = vmatpush3.bf16.msra.mxu1 %v9534_v37 }
0x1e70   :  { %8340 = vmatmul.mubr.f32.gmra.mrb[254].mxu1 %v11288_v34 }
0x1f27   :  { %v8320_v28 = vpop.f32.mrb[240].mxu1 }
0x1f28   :  { %v4838_v40 = vadd.f32 %v8320_v28, %v10989_v49  ;;  %v4832_v60 = vpop.f32.mrb[241].mxu1 }
0x1f29   :  { %v4833_v35 = vadd.f32 %v4832_v60, %v10992_v62 }
0x1f2b   :  { %v9478_v41 = vpack.c.bf16 %v4838_v40, %v4833_v35  ;;  %v8323_v9 = vpop.f32.mrb[242].mxu1 }
0x1f2c   :  { %v4848_v30 = vadd.f32 %v8323_v9, %v10997_v58  ;;  %v4842_v11 = vpop.f32.mrb[243].mxu1 }
0x1f2d   :  { %v4843_v44 = vadd.f32 %v4842_v11, %v11000_v59  ;;  %9479 = vmatprep.subr.bf16.mxu0 %v9478_v41 }
0x1f2e   :  { %9481 = vmatpush3.bf16.msra.mxu0 %v9478_v41 }
0x1f2f   :  { %v9482_v31 = vpack.c.bf16 %v4848_v30, %v4843_v44  ;;  %v8326_v47 = vpop.f32.mrb[244].mxu1 }
0x1f30   :  { %v4858_v32 = vadd.f32 %v8326_v47, %v11005_v29  ;;  %v4852_v16 = vpop.f32.mrb[245].mxu1 }
0x1f31   :  { %v4853_v12 = vadd.f32 %v4852_v16, %v11008_v42  ;;  %9483 = vmatprep.subr.bf16.mxu0 %v9482_v31 }
0x1f32   :  { %9485 = vmatpush3.bf16.msra.mxu0 %v9482_v31 }
0x1f33   :  { %v9486_v50 = vpack.c.bf16 %v4858_v32, %v4853_v12  ;;  %v8329_v52 = vpop.f32.mrb[246].mxu1 }
0x1f34   :  { %v4868_v15 = vadd.f32 %v8329_v52, %v11013_v13  ;;  %v4862_v43 = vpop.f32.mrb[247].mxu1 }
0x1f35   :  { %v4863_v23 = vadd.f32 %v4862_v43, %v11016_v4  ;;  %9487 = vmatprep.subr.bf16.mxu0 %v9486_v50 }
0x1f36   :  { %9489 = vmatpush3.bf16.msra.mxu0 %v9486_v50 }
0x1f37   :  { %v9490_v51 = vpack.c.bf16 %v4868_v15, %v4863_v23  ;;  %v8332_v25 = vpop.f32.mrb[248].mxu1 }
0x1f38   :  { %v4878_v55 = vadd.f32 %v8332_v25, %v11021_v53  ;;  %v4872_v54 = vpop.f32.mrb[249].mxu1 }
0x1f39   :  { %v4873_v38 = vadd.f32 %v4872_v54, %v11024_v20  ;;  %9491 = vmatprep.subr.bf16.mxu0 %v9490_v51 }
0x1f3a   :  { %9493 = vmatpush3.bf16.msra.mxu0 %v9490_v51 }
0x1f3b   :  { %v9494_v19 = vpack.c.bf16 %v4878_v55, %v4873_v38  ;;  %v8335_v17 = vpop.f32.mrb[250].mxu1 }
0x1f3c   :  { %v4888_v6 = vadd.f32 %v8335_v17, %v11029_v61  ;;  %v4882_v24 = vpop.f32.mrb[251].mxu1 }
0x1f3d   :  { %v4883_v48 = vadd.f32 %v4882_v24, %v11032_v36  ;;  %9495 = vmatprep.subr.bf16.mxu0 %v9494_v19 }
0x1f3e   :  { %9497 = vmatpush3.bf16.msra.mxu0 %v9494_v19 }
0x1f3f   :  { %v9498_v26 = vpack.c.bf16 %v4888_v6, %v4883_v48  ;;  %v8338_v57 = vpop.f32.mrb[252].mxu1 }
0x1f40   :  { %v4898_v10 = vadd.f32 %v8338_v57, %v11037_v5  ;;  %v4892_v37 = vpop.f32.mrb[253].mxu1 }
0x1f41   :  { %v4893_v28 = vadd.f32 %v4892_v37, %v11040_v56  ;;  %9499 = vmatprep.subr.bf16.mxu0 %v9498_v26 }
0x1f42   :  { %9501 = vmatpush3.bf16.msra.mxu0 %v9498_v26 }
0x1f43   :  { %v9502_v40 = vpack.c.bf16 %v4898_v10, %v4893_v28  ;;  %v8341_v60 = vpop.f32.mrb[254].mxu1 }
0x1f44   :  { %v4908_v35 = vadd.f32 %v8341_v60, %v11045_v8  ;;  %v4902_v41 = vpop.f32.mrb[255].mxu1 }
0x1f45   :  { %v4903_v9 = vadd.f32 %v4902_v41, %v11048_v3  ;;  %9503 = vmatprep.subr.bf16.mxu0 %v9502_v40 }
0x1f46   :  { %9505 = vmatpush3.bf16.msra.mxu0 %v9502_v40 }
0x1f47   :  { %v9506_v30 = vpack.c.bf16 %v4908_v35, %v4903_v9 }
0x1f49   :  { %9507 = vmatprep.subr.bf16.mxu0 %v9506_v30 }
0x1f4a   :  { %9509 = vmatpush3.bf16.msra.mxu0 %v9506_v30 }
0x1f4d   :  { %8375 = vmatmul.mubr.f32.vlgmr.msra.gmra.mrb[0].mxu0 %v11246_v18  ;;  %v5086_v18 = vld [vmem:[%s11636_s8 + $0x70] sm:$0xff] }
0x1f4e   :  { %8377 = vmatprep.mubr.f32.mxu0 %v11249_v21  ;;  %v5087_v21 = vld [vmem:[%s11636_s8 + $0x78] sm:$0xff] }
0x1f51   :  { %8378 = vmatmul.mubr.f32.gmra.mrb[2].mxu0 %v11252_v7  ;;  %v9538_v7 = vpack.c.bf16 %v5087_v21, %v5086_v18 }
0x1f52   :  { %8380 = vmatprep.mubr.f32.mxu0 %v11255_v0 }
0x1f53   :  { %9539 = vmatprep.subr.bf16.mxu1 %v9538_v7 }
0x1f54   :  { %9541 = vmatpush3.bf16.msra.mxu1 %v9538_v7 }
0x1f55   :  { %8381 = vmatmul.mubr.f32.gmra.mrb[4].mxu0 %v11258_v22 }
0x1f56   :  { %8383 = vmatprep.mubr.f32.mxu0 %v11261_v1 }
0x1f59   :  { %8384 = vmatmul.mubr.f32.gmra.mrb[6].mxu0 %v11264_v2 }
0x1f5a   :  { %8386 = vmatprep.mubr.f32.mxu0 %v11267_v14 }
0x1f5d   :  { %8387 = vmatmul.mubr.f32.gmra.mrb[8].mxu0 %v11270_v63 }
0x1f5e   :  { %8389 = vmatprep.mubr.f32.mxu0 %v11273_v46 }
0x1f61   :  { %8390 = vmatmul.mubr.f32.gmra.mrb[10].mxu0 %v11276_v39 }
0x1f62   :  { %8392 = vmatprep.mubr.f32.mxu0 %v11279_v45 }
0x1f65   :  { %8393 = vmatmul.mubr.f32.gmra.mrb[12].mxu0 %v11282_v33 }
0x1f66   :  { %8395 = vmatprep.mubr.f32.mxu0 %v11285_v27 }
0x1f69   :  { %8396 = vmatmul.mubr.f32.gmra.mrb[14].mxu0 %v11288_v34 }
0x2020   :  { %v8376_v0 = vpop.f32.mrb[0].mxu0 }
0x2021   :  { %v4983_v22 = vadd.f32 %v8376_v0, %v10989_v49  ;;  %v4977_v1 = vpop.f32.mrb[1].mxu0 }
0x2022   :  { %v4978_v2 = vadd.f32 %v4977_v1, %v10992_v62 }
0x2023   :  { %v5057_v46 = vmax.f32 %v4983_v22, 0.0 }
0x2024   :  { %v5056_v14 = vmax.f32 %v4978_v2, 0.0  ;;  %v8379_v63 = vpop.f32.mrb[2].mxu0 }
0x2025   :  { %v4993_v39 = vadd.f32 %v8379_v63, %v10997_v58  ;;  %v4987_v45 = vpop.f32.mrb[3].mxu0 }
0x2026   :  { %v4988_v33 = vadd.f32 %v4987_v45, %v11000_v59  ;;  %8430 = vmatprep.mubr.f32.mxu1 %v5056_v14 }
0x2027   :  { %8431 = vmatmul.mubr.f32.vlgmr.msra.gmra.mrb[0].mxu1 %v5057_v46  ;;  %v5059_v11 = vmax.f32 %v4993_v39, 0.0 }
0x2028   :  { %v5058_v27 = vmax.f32 %v4988_v33, 0.0  ;;  %v8382_v34 = vpop.f32.mrb[4].mxu0 }
0x2029   :  { %v5003_v44 = vadd.f32 %v8382_v34, %v11005_v29  ;;  %v4997_v31 = vpop.f32.mrb[5].mxu0 }
0x202a   :  { %v4998_v49 = vadd.f32 %v4997_v31, %v11008_v42  ;;  %8433 = vmatprep.mubr.f32.mxu1 %v5058_v27 }
0x202b   :  { %8434 = vmatmul.mubr.f32.gmra.mrb[2].mxu1 %v5059_v11  ;;  %v5061_v32 = vmax.f32 %v5003_v44, 0.0 }
0x202c   :  { %v5060_v62 = vmax.f32 %v4998_v49, 0.0  ;;  %v8385_v47 = vpop.f32.mrb[6].mxu0 }
0x202d   :  { %v5013_v58 = vadd.f32 %v8385_v47, %v11013_v13  ;;  %v5007_v16 = vpop.f32.mrb[7].mxu0 }
0x202e   :  { %v5008_v59 = vadd.f32 %v5007_v16, %v11016_v4  ;;  %8436 = vmatprep.mubr.f32.mxu1 %v5060_v62 }
0x202f   :  { %8437 = vmatmul.mubr.f32.gmra.mrb[4].mxu1 %v5061_v32  ;;  %v5063_v52 = vmax.f32 %v5013_v58, 0.0 }
0x2030   :  { %v5062_v12 = vmax.f32 %v5008_v59, 0.0  ;;  %v8388_v50 = vpop.f32.mrb[8].mxu0 }
0x2031   :  { %v5023_v29 = vadd.f32 %v8388_v50, %v11021_v53  ;;  %v5017_v15 = vpop.f32.mrb[9].mxu0 }
0x2032   :  { %v5018_v42 = vadd.f32 %v5017_v15, %v11024_v20  ;;  %8439 = vmatprep.mubr.f32.mxu1 %v5062_v12 }
0x2033   :  { %8440 = vmatmul.mubr.f32.gmra.mrb[6].mxu1 %v5063_v52  ;;  %v5065_v51 = vmax.f32 %v5023_v29, 0.0 }
0x2034   :  { %v5064_v43 = vmax.f32 %v5018_v42, 0.0  ;;  %v8391_v23 = vpop.f32.mrb[10].mxu0 }
0x2035   :  { %v5033_v13 = vadd.f32 %v8391_v23, %v11029_v61  ;;  %v5027_v25 = vpop.f32.mrb[11].mxu0 }
0x2036   :  { %v5028_v4 = vadd.f32 %v5027_v25, %v11032_v36  ;;  %8442 = vmatprep.mubr.f32.mxu1 %v5064_v43 }
0x2037   :  { %8443 = vmatmul.mubr.f32.gmra.mrb[8].mxu1 %v5065_v51  ;;  %v5067_v38 = vmax.f32 %v5033_v13, 0.0 }
0x2038   :  { %v5066_v55 = vmax.f32 %v5028_v4, 0.0  ;;  %v8394_v54 = vpop.f32.mrb[12].mxu0 }
0x2039   :  { %v5043_v53 = vadd.f32 %v8394_v54, %v11037_v5  ;;  %v5037_v19 = vpop.f32.mrb[13].mxu0  ;;  %v5240_v5 = vlaneseq }
0x203a   :  { %v5038_v20 = vadd.f32 %v5037_v19, %v11040_v56  ;;  %8445 = vmatprep.mubr.f32.mxu1 %v5066_v55  ;;  %v5461_v56 = vld [vmem:[%s11637_s9] ss:$0 sm:$0xff] }
0x203b   :  { %8446 = vmatmul.mubr.f32.gmra.mrb[10].mxu1 %v5067_v38  ;;  %v5069_v24 = vmax.f32 %v5043_v53, 0.0  ;;  %v11418_v10 = vand.u32 127, %v5240_v5 }
0x203c   :  { %v5068_v17 = vmax.f32 %v5038_v20, 0.0  ;;  %v8397_v6 = vpop.f32.mrb[14].mxu0 }
0x203d   :  { %v5053_v61 = vadd.f32 %v8397_v6, %v11045_v8  ;;  %v5047_v48 = vpop.f32.mrb[15].mxu0  ;;  %vm5242_vm0 = vcmp.lt.s32.totalorder %v11418_v10, 4 }
0x203e   :  { %v5048_v36 = vadd.f32 %v5047_v48, %v11048_v3  ;;  %8448 = vmatprep.mubr.f32.mxu1 %v5068_v17 }
0x203f   :  { %8449 = vmatmul.mubr.f32.gmra.mrb[12].mxu1 %v5069_v24  ;;  %v5071_v57 = vmax.f32 %v5053_v61, 0.0 }
0x2040   :  { %v5070_v26 = vmax.f32 %v5048_v36, 0.0 }
0x2042   :  { %8451 = vmatprep.mubr.f32.mxu1 %v5070_v26 }
0x2043   :  { %8452 = vmatmul.mubr.f32.gmra.mrb[14].mxu1 %v5071_v57 }
0x20fa   :  { %v8432_v37 = vpop.f32.mrb[0].mxu1 }
0x20fb   :  { %v5167_v8 = vadd.f32 %v8432_v37, %v5461_v56  ;;  %v5161_v28 = vpop.f32.mrb[1].mxu1 }
0x20fc   :  { %v5162_v40 = vadd.f32 %v5461_v56, %v5161_v28 }
0x20fd   :  { %v5244_v3 = vsel %vm5242_vm0, %v5167_v8, -1e+30 }
0x20fe   :  { %5261 = vmax.xlane.f32.xlu0 %v5244_v3  ;;  %v8435_v60 = vpop.f32.mrb[2].mxu1  ;;  %v5243_v18 = vsel %vm5242_vm0, %v5162_v40, -1e+30 }
0x20ff   :  { %v5177_v35 = vadd.f32 %v8435_v60, %v5461_v56  ;;  %v5171_v41 = vpop.f32.mrb[3].mxu1 }
0x2100   :  { %v5172_v9 = vadd.f32 %v5461_v56, %v5171_v41 }
0x2101   :  { %v5246_v30 = vsel %vm5242_vm0, %v5177_v35, -1e+30 }
0x2102   :  { %5265 = vmax.xlane.f32.xlu1 %v5246_v30  ;;  %v8438_v21 = vpop.f32.mrb[4].mxu1  ;;  %5259 = vmax.xlane.f32.xlu0 %v5243_v18  ;;  %v5245_v1 = vsel %vm5242_vm0, %v5172_v9, -1e+30 }
0x2103   :  { %v5181_v7 = vpop.f32.mrb[5].mxu1  ;;  %v5187_v22 = vadd.f32 %v8438_v21, %v5461_v56 }
0x2104   :  { %v5182_v0 = vadd.f32 %v5461_v56, %v5181_v7 }
0x2105   :  { %v5248_v45 = vsel %vm5242_vm0, %v5187_v22, -1e+30 }
0x2106   :  { %v8441_v2 = vpop.f32.mrb[6].mxu1  ;;  %5263 = vmax.xlane.f32.xlu1 %v5245_v1  ;;  %v5247_v14 = vsel %vm5242_vm0, %v5182_v0, -1e+30 }
0x2107   :  { %v5191_v63 = vpop.f32.mrb[7].mxu1  ;;  %5267 = vmax.xlane.f32.xlu0 %v5247_v14  ;;  %v5197_v39 = vadd.f32 %v8441_v2, %v5461_v56 }
0x2108   :  { %v5192_v46 = vadd.f32 %v5461_v56, %v5191_v63 }
0x2109   :  { %v5250_v31 = vsel %vm5242_vm0, %v5197_v39, -1e+30 }
0x210a   :  { %v8444_v33 = vpop.f32.mrb[8].mxu1  ;;  %5269 = vmax.xlane.f32.xlu1 %v5248_v45  ;;  %v5249_v27 = vsel %vm5242_vm0, %v5192_v46, -1e+30 }
0x210b   :  { %v5201_v34 = vpop.f32.mrb[9].mxu1  ;;  %5271 = vmax.xlane.f32.xlu0 %v5249_v27  ;;  %v5207_v44 = vadd.f32 %v8444_v33, %v5461_v56 }
0x210c   :  { %v5202_v11 = vadd.f32 %v5461_v56, %v5201_v34 }
0x210d   :  { %v11444_v16 = vsel %vm5242_vm0, %v5207_v44, -1e+30 }
0x210e   :  { %v8447_v49 = vpop.f32.mrb[10].mxu1  ;;  %5273 = vmax.xlane.f32.xlu1 %v5250_v31  ;;  %v5251_v62 = vsel %vm5242_vm0, %v5202_v11, -1e+30 }
0x210f   :  { %v5211_v47 = vpop.f32.mrb[11].mxu1  ;;  %5275 = vmax.xlane.f32.xlu0 %v5251_v62  ;;  %v5217_v58 = vadd.f32 %v8447_v49, %v5461_v56 }
0x2110   :  { %v5212_v32 = vadd.f32 %v5461_v56, %v5211_v47 }
0x2111   :  { %v11454_v15 = vsel %vm5242_vm0, %v5217_v58, -1e+30 }
0x2112   :  { %v8450_v59 = vpop.f32.mrb[12].mxu1  ;;  %5277 = vmax.xlane.f32.xlu1 %v11444_v16  ;;  %v11449_v12 = vsel %vm5242_vm0, %v5212_v32, -1e+30 }
0x2113   :  { %v5221_v50 = vpop.f32.mrb[13].mxu1  ;;  %5279 = vmax.xlane.f32.xlu0 %v11449_v12  ;;  %v5227_v29 = vadd.f32 %v8450_v59, %v5461_v56 }
0x2114   :  { %v5222_v52 = vadd.f32 %v5461_v56, %v5221_v50 }
0x2115   :  { %v11464_v25 = vsel %vm5242_vm0, %v5227_v29, -1e+30 }
0x2116   :  { %v8453_v42 = vpop.f32.mrb[14].mxu1  ;;  %5281 = vmax.xlane.f32.xlu1 %v11454_v15  ;;  %v11459_v43 = vsel %vm5242_vm0, %v5222_v52, -1e+30 }
0x2117   :  { %v5231_v23 = vpop.f32.mrb[15].mxu1  ;;  %5283 = vmax.xlane.f32.xlu0 %v11459_v43  ;;  %v5237_v13 = vadd.f32 %v8453_v42, %v5461_v56 }
0x2118   :  { %v5232_v51 = vadd.f32 %v5461_v56, %v5231_v23 }
0x2119   :  { %v11474_v55 = vsel %vm5242_vm0, %v5237_v13, -1e+30 }
0x211a   :  { %5285 = vmax.xlane.f32.xlu1 %v11464_v25  ;;  %v11469_v4 = vsel %vm5242_vm0, %v5232_v51, -1e+30 }
0x211b   :  { %5287 = vmax.xlane.f32.xlu0 %v11469_v4 }
0x211e   :  { %5289 = vmax.xlane.f32.xlu1 %v11474_v55 }
0x218b   :  { %v5262_v54 = vpop.xlane.xlu0 %5261 }
0x218c   :  { %v11477_v38 = vsub.f32 %v5244_v3, %v5262_v54 }
0x218e   :  { %v5309_v53 = vmul.f32 1.442695, %v11477_v38 }
0x218f   :  { %v5266_v19 = vpop.xlane.xlu1 %5265  ;;  %v5260_v20 = vpop.xlane.xlu0 %5259 }
0x2190   :  { %9548 = vpow2.f32 %v5309_v53  ;;  %v11480_v17 = vsub.f32 %v5246_v30, %v5266_v19  ;;  %v11482_v6 = vsub.f32 %v5243_v18, %v5260_v20 }
0x2192   :  { %v5313_v24 = vmul.f32 1.442695, %v11480_v17  ;;  %v5307_v61 = vmul.f32 1.442695, %v11482_v6 }
0x2193   :  { %v5264_v48 = vpop.xlane.xlu1 %5263 }
0x2194   :  { %9550 = vpow2.f32 %v5313_v24  ;;  %v11486_v36 = vsub.f32 %v5245_v1, %v5264_v48  ;;  %v5268_v26 = vpop.xlane.xlu0 %5267 }
0x2195   :  { %9552 = vpow2.f32 %v5307_v61  ;;  %v11488_v57 = vsub.f32 %v5247_v14, %v5268_v26 }
0x2196   :  { %v5311_v5 = vmul.f32 1.442695, %v11486_v36 }
0x2197   :  { %v5315_v56 = vmul.f32 1.442695, %v11488_v57  ;;  %v5270_v37 = vpop.xlane.xlu1 %5269 }
0x2198   :  { %9554 = vpow2.f32 %v5311_v5  ;;  %v11492_v8 = vsub.f32 %v5248_v45, %v5270_v37  ;;  %v5272_v28 = vpop.xlane.xlu0 %5271 }
0x2199   :  { %v11494_v40 = vsub.f32 %v5249_v27, %v5272_v28  ;;  %9556 = vpow2.f32 %v5315_v56 }
0x219a   :  { %v9549_v3 = vpop.eup %9548  ;;  %v5317_v60 = vmul.f32 1.442695, %v11492_v8 }
0x219b   :  { %v5319_v35 = vmul.f32 1.442695, %v11494_v40  ;;  %v5274_v41 = vpop.xlane.xlu1 %5273  ;;  %v5340_v9 = vsel %vm5242_vm0, %v9549_v3, 0.0 }
0x219c   :  { %9558 = vpow2.f32 %v5317_v60  ;;  %v11500_v30 = vsub.f32 %v5250_v31, %v5274_v41  ;;  %5357 = vadd.xlane.f32.xlu1 %v5340_v9  ;;  %v5276_v18 = vpop.xlane.xlu0 %5275 }
0x219d   :  { %v11502_v21 = vsub.f32 %v5251_v62, %v5276_v18  ;;  %9560 = vpow2.f32 %v5319_v35 }
0x219e   :  { %v9551_v7 = vpop.eup %9550  ;;  %v5321_v0 = vmul.f32 1.442695, %v11500_v30 }
0x219f   :  { %v9553_v22 = vpop.eup %9552  ;;  %v5323_v1 = vmul.f32 1.442695, %v11502_v21  ;;  %v5278_v2 = vpop.xlane.xlu1 %5277  ;;  %v5342_v14 = vsel %vm5242_vm0, %v9551_v7, 0.0 }
0x21a0   :  { %9562 = vpow2.f32 %v5321_v0  ;;  %v11509_v63 = vsub.f32 %v11444_v16, %v5278_v2  ;;  %5361 = vadd.xlane.f32.xlu1 %v5342_v14  ;;  %v5339_v46 = vsel %vm5242_vm0, %v9553_v22, 0.0  ;;  %v5280_v39 = vpop.xlane.xlu0 %5279 }
0x21a1   :  { %5355 = vadd.xlane.f32.xlu0 %v5339_v46  ;;  %v11514_v45 = vsub.f32 %v11449_v12, %v5280_v39  ;;  %9564 = vpow2.f32 %v5323_v1 }
0x21a2   :  { %v9555_v33 = vpop.eup %9554  ;;  %v5325_v27 = vmul.f32 1.442695, %v11509_v63 }
0x21a3   :  { %v5327_v34 = vmul.f32 1.442695, %v11514_v45  ;;  %v5282_v11 = vpop.xlane.xlu1 %5281  ;;  %v5341_v44 = vsel %vm5242_vm0, %v9555_v33, 0.0  ;;  %v9557_v62 = vpop.eup %9556 }
0x21a4   :  { %9566 = vpow2.f32 %v5325_v27  ;;  %v11521_v31 = vsub.f32 %v11454_v15, %v5282_v11  ;;  %v5284_v49 = vpop.xlane.xlu0 %5283  ;;  %v5343_v52 = vsel %vm5242_vm0, %v9557_v62, 0.0 }
0x21a5   :  { %5359 = vadd.xlane.f32.xlu0 %v5341_v44  ;;  %v11524_v47 = vsub.f32 %v11459_v43, %v5284_v49  ;;  %9568 = vpow2.f32 %v5327_v34 }
0x21a6   :  { %v9559_v32 = vpop.eup %9558  ;;  %v5329_v58 = vmul.f32 1.442695, %v11521_v31 }
0x21a7   :  { %v5331_v16 = vmul.f32 1.442695, %v11524_v47  ;;  %v5286_v59 = vpop.xlane.xlu1 %5285  ;;  %v5344_v12 = vsel %vm5242_vm0, %v9559_v32, 0.0  ;;  %v9561_v15 = vpop.eup %9560 }
0x21a8   :  { %9570 = vpow2.f32 %v5329_v58  ;;  %v11531_v50 = vsub.f32 %v11464_v25, %v5286_v59  ;;  %5365 = vadd.xlane.f32.xlu1 %v5344_v12  ;;  %v5288_v29 = vpop.xlane.xlu0 %5287  ;;  %v5345_v53 = vsel %vm5242_vm0, %v9561_v15, 0.0 }
0x21a9   :  { %5363 = vadd.xlane.f32.xlu0 %v5343_v52  ;;  %v11536_v42 = vsub.f32 %v11469_v4, %v5288_v29  ;;  %9572 = vpow2.f32 %v5331_v16 }
0x21aa   :  { %v9563_v43 = vpop.eup %9562  ;;  %v5333_v23 = vmul.f32 1.442695, %v11531_v50 }
0x21ab   :  { %v5335_v51 = vmul.f32 1.442695, %v11536_v42  ;;  %v5290_v13 = vpop.xlane.xlu1 %5289  ;;  %v5346_v25 = vsel %vm5242_vm0, %v9563_v43, 0.0  ;;  %v9565_v4 = vpop.eup %9564 }
0x21ac   :  { %9574 = vpow2.f32 %v5333_v23  ;;  %v11543_v54 = vsub.f32 %v11474_v55, %v5290_v13  ;;  %5369 = vadd.xlane.f32.xlu1 %v5346_v25  ;;  %v5347_v61 = vsel %vm5242_vm0, %v9565_v4, 0.0 }
0x21ad   :  { %5367 = vadd.xlane.f32.xlu0 %v5345_v53  ;;  %9576 = vpow2.f32 %v5335_v51 }
0x21ae   :  { %v9567_v19 = vpop.eup %9566  ;;  %v5337_v20 = vmul.f32 1.442695, %v11543_v54 }
0x21af   :  { %v5348_v24 = vsel %vm5242_vm0, %v9567_v19, 0.0  ;;  %v9569_v55 = vpop.eup %9568 }
0x21b0   :  { %9578 = vpow2.f32 %v5337_v20  ;;  %5373 = vadd.xlane.f32.xlu1 %v5348_v24  ;;  %v5349_v5 = vsel %vm5242_vm0, %v9569_v55, 0.0 }
0x21b1   :  { %5371 = vadd.xlane.f32.xlu0 %v5347_v61 }
0x21b2   :  { %v9571_v48 = vpop.eup %9570 }
0x21b3   :  { %v5350_v26 = vsel %vm5242_vm0, %v9571_v48, 0.0  ;;  %v9573_v56 = vpop.eup %9572 }
0x21b4   :  { %5377 = vadd.xlane.f32.xlu1 %v5350_v26  ;;  %v5351_v3 = vsel %vm5242_vm0, %v9573_v56, 0.0 }
0x21b5   :  { %5375 = vadd.xlane.f32.xlu0 %v5349_v5 }
0x21b6   :  { %v9575_v37 = vpop.eup %9574 }
0x21b7   :  { %v5352_v28 = vsel %vm5242_vm0, %v9575_v37, 0.0  ;;  %v9577_v60 = vpop.eup %9576 }
0x21b8   :  { %5381 = vadd.xlane.f32.xlu1 %v5352_v28  ;;  %v5353_v9 = vsel %vm5242_vm0, %v9577_v60, 0.0 }
0x21b9   :  { %5379 = vadd.xlane.f32.xlu0 %v5351_v3 }
0x21ba   :  { %v9579_v35 = vpop.eup %9578 }
0x21bb   :  { %v5354_v41 = vsel %vm5242_vm0, %v9579_v35, 0.0 }
0x21bc   :  { %5385 = vadd.xlane.f32.xlu1 %v5354_v41 }
0x21bd   :  { %5383 = vadd.xlane.f32.xlu0 %v5353_v9 }
0x2229   :  { %v5358_v18 = vpop.xlane.xlu1 %5357 }
0x222a   :  { %9580 = vlog2.f32 %v5358_v18 }
0x222d   :  { %v5362_v7 = vpop.xlane.xlu1 %5361 }
0x222e   :  { %9582 = vlog2.f32 %v5362_v7  ;;  %v5356_v0 = vpop.xlane.xlu0 %5355 }
0x222f   :  { %9584 = vlog2.f32 %v5356_v0 }
0x2232   :  { %v5360_v22 = vpop.xlane.xlu0 %5359 }
0x2233   :  { %9586 = vlog2.f32 %v5360_v22 }
0x2234   :  { %v9581_v1 = vpop.eup %9580 }
0x2235   :  { %v5390_v2 = vmul.f32 0.6931472, %v9581_v1  ;;  %v5366_v14 = vpop.xlane.xlu1 %5365 }
0x2236   :  { %9588 = vlog2.f32 %v5366_v14  ;;  %v5364_v46 = vpop.xlane.xlu0 %5363 }
0x2237   :  { %v5420_v39 = vsub.f32 %v11477_v38, %v5390_v2  ;;  %9590 = vlog2.f32 %v5364_v46 }
0x2238   :  { %v9583_v33 = vpop.eup %9582 }
0x2239   :  { %v9585_v10 = vpop.eup %9584  ;;  %5436 = vst [vmem:[%s11638_s10 + $0x8] sm:$0xff] %v5420_v39  ;;  %v5394_v27 = vmul.f32 0.6931472, %v9583_v33  ;;  %v5370_v34 = vpop.xlane.xlu1 %5369 }
0x223a   :  { %v5388_v11 = vmul.f32 0.6931472, %v9585_v10  ;;  %9592 = vlog2.f32 %v5370_v34  ;;  %v5368_v44 = vpop.xlane.xlu0 %5367 }
0x223b   :  { %v5422_v49 = vsub.f32 %v11480_v17, %v5394_v27  ;;  %9594 = vlog2.f32 %v5368_v44 }
0x223c   :  { %v5419_v62 = vsub.f32 %v11482_v6, %v5388_v11 }
0x223d   :  { %v9587_v32 = vpop.eup %9586  ;;  %5438 = vst [vmem:[%s11638_s10 + $0x18] sm:$0xff] %v5422_v49  ;;  %v5374_v38 = vpop.xlane.xlu1 %5373 }
0x223e   :  { %5435 = vst [vmem:[%s11638_s10] sm:$0xff] %v5419_v62  ;;  %v5392_v58 = vmul.f32 0.6931472, %v9587_v32  ;;  %9596 = vlog2.f32 %v5374_v38  ;;  %v5372_v16 = vpop.xlane.xlu0 %5371 }
0x223f   :  { %9598 = vlog2.f32 %v5372_v16 }
0x2240   :  { %v9589_v59 = vpop.eup %9588  ;;  %v5421_v17 = vsub.f32 %v11486_v36, %v5392_v58 }
0x2241   :  { %v9591_v12 = vpop.eup %9590  ;;  %v5398_v52 = vmul.f32 0.6931472, %v9589_v59  ;;  %v5378_v6 = vpop.xlane.xlu1 %5377 }
0x2242   :  { %5437 = vst [vmem:[%s11638_s10 + $0x10] sm:$0xff] %v5421_v17  ;;  %v5396_v29 = vmul.f32 0.6931472, %v9591_v12  ;;  %9600 = vlog2.f32 %v5378_v6  ;;  %v5376_v15 = vpop.xlane.xlu0 %5375 }
0x2243   :  { %v5424_v43 = vsub.f32 %v11492_v8, %v5398_v52  ;;  %9602 = vlog2.f32 %v5376_v15 }
0x2244   :  { %v9593_v23 = vpop.eup %9592  ;;  %v5423_v51 = vsub.f32 %v11488_v57, %v5396_v29 }
0x2245   :  { %v9595_v13 = vpop.eup %9594  ;;  %5440 = vst [vmem:[%s11638_s10 + $0x28] sm:$0xff] %v5424_v43  ;;  %v5402_v36 = vmul.f32 0.6931472, %v9593_v23  ;;  %v5382_v25 = vpop.xlane.xlu1 %5381 }
0x2246   :  { %5439 = vst [vmem:[%s11638_s10 + $0x20] sm:$0xff] %v5423_v51  ;;  %v5400_v53 = vmul.f32 0.6931472, %v9595_v13  ;;  %9604 = vlog2.f32 %v5382_v25  ;;  %v5380_v4 = vpop.xlane.xlu0 %5379 }
0x2247   :  { %v5426_v8 = vsub.f32 %v11500_v30, %v5402_v36  ;;  %9606 = vlog2.f32 %v5380_v4 }
0x2248   :  { %v9597_v19 = vpop.eup %9596  ;;  %v5425_v57 = vsub.f32 %v11494_v40, %v5400_v53 }
0x2249   :  { %v9599_v20 = vpop.eup %9598  ;;  %5442 = vst [vmem:[%s11638_s10 + $0x38] sm:$0xff] %v5426_v8  ;;  %v5406_v24 = vmul.f32 0.6931472, %v9597_v19  ;;  %v5386_v61 = vpop.xlane.xlu1 %5385 }
0x224a   :  { %5441 = vst [vmem:[%s11638_s10 + $0x30] sm:$0xff] %v5425_v57  ;;  %v5404_v55 = vmul.f32 0.6931472, %v9599_v20  ;;  %9608 = vlog2.f32 %v5386_v61  ;;  %v5384_v48 = vpop.xlane.xlu0 %5383 }
0x224b   :  { %v5428_v30 = vsub.f32 %v11509_v63, %v5406_v24  ;;  %9610 = vlog2.f32 %v5384_v48 }
0x224c   :  { %v9601_v26 = vpop.eup %9600  ;;  %v5427_v40 = vsub.f32 %v11502_v21, %v5404_v55 }
0x224d   :  { %v9603_v5 = vpop.eup %9602  ;;  %5444 = vst [vmem:[%s11638_s10 + $0x48] sm:$0xff] %v5428_v30  ;;  %v5410_v56 = vmul.f32 0.6931472, %v9601_v26 }
0x224e   :  { %5443 = vst [vmem:[%s11638_s10 + $0x40] sm:$0xff] %v5427_v40  ;;  %v5408_v37 = vmul.f32 0.6931472, %v9603_v5 }
0x224f   :  { %v5430_v28 = vsub.f32 %v11521_v31, %v5410_v56 }
0x2250   :  { %v9605_v3 = vpop.eup %9604  ;;  %v5429_v63 = vsub.f32 %v11514_v45, %v5408_v37 }
0x2251   :  { %v9607_v60 = vpop.eup %9606  ;;  %5446 = vst [vmem:[%s11638_s10 + $0x58] sm:$0xff] %v5430_v28  ;;  %v5414_v21 = vmul.f32 0.6931472, %v9605_v3 }
0x2252   :  { %5445 = vst [vmem:[%s11638_s10 + $0x50] sm:$0xff] %v5429_v63  ;;  %v5412_v35 = vmul.f32 0.6931472, %v9607_v60 }
0x2253   :  { %v5432_v41 = vsub.f32 %v11531_v50, %v5414_v21 }
0x2254   :  { %v9609_v9 = vpop.eup %9608  ;;  %v5431_v18 = vsub.f32 %v11524_v47, %v5412_v35 }
0x2255   :  { %v9611_v31 = vpop.eup %9610  ;;  %5448 = vst [vmem:[%s11638_s10 + $0x68] sm:$0xff] %v5432_v41  ;;  %v5418_v45 = vmul.f32 0.6931472, %v9609_v9 }
0x2256   :  { %5447 = vst [vmem:[%s11638_s10 + $0x60] sm:$0xff] %v5431_v18  ;;  %v5416_v7 = vmul.f32 0.6931472, %v9611_v31 }
0x2257   :  { %v5434_v0 = vsub.f32 %v11543_v54, %v5418_v45 }
0x2258   :  { %v5433_v22 = vsub.f32 %v11536_v42, %v5416_v7 }
0x2259   :  { %5450 = vst [vmem:[%s11638_s10 + $0x78] sm:$0xff] %v5434_v0 }
0x225a   :  { %5449 = vst [vmem:[%s11638_s10 + $0x70] sm:$0xff] %v5433_v22 }
0x225b   :  { %5455 = vsyncpa [#allocation3], 1 }
0x225c   :  { %5456 = vsyncpa [#allocation5], 1 }
0x225d   :  { %5457 = vsyncpa [#allocation8], 1 }

</bundles_post_ra>
